<compile_context>
chip_gen: v7x
topology: tpu7x:2x2x1
jax: 0.10.0
libtpu: 0.0.40
codegen_flags: <defaults>
</compile_context>

<pallas_src>
import functools

import jax
import jax.numpy as jnp
from jax.experimental import pallas as pl
from jax.experimental.pallas import tpu as pltpu


VMEM_LIMIT = 48 * 1024 * 1024  # fits v7x (64 MiB phys) and raises v5e's 16 MiB default


def _largest_divisor(n, cap):
    if n <= cap:
        return n
    for d in range(cap, 0, -1):
        if n % d == 0:
            return d
    return 1


def _pick_tho(h, wpad, cap_m=1024):
    """Largest divisor of h with tho * wpad <= cap_m (rows per conv grid step)."""
    best = 1
    for t in range(1, h + 1):
        if h % t == 0 and t * wpad <= cap_m:
            best = t
    return best


# ----------------------------------------------------------------------------
# Generic matmul + bias (+ReLU) kernel: out = act(x @ w + b)
# Accumulates directly into the resident f32 output block across the K axis.
# Used for the first conv layer (im2col, K=27) and the FC head.
# ----------------------------------------------------------------------------
def _mm_kernel(x_ref, w_ref, b_ref, o_ref, *, relu):
    k = pl.program_id(2)

    @pl.when(k == 0)
    def _():
        o_ref[...] = jnp.zeros_like(o_ref)

    o_ref[...] += jnp.dot(x_ref[...], w_ref[...],
                          preferred_element_type=jnp.float32).astype(o_ref.dtype)

    @pl.when(k == pl.num_programs(2) - 1)
    def _():
        r = o_ref[...].astype(jnp.float32) + b_ref[...]
        if relu:
            r = jnp.maximum(r, 0.0)
        o_ref[...] = r.astype(o_ref.dtype)


def matmul_bias_act(x, w, b, *, relu, out_dtype=jnp.float32):
    """x: (M, K), w: (K, N), b: (N,) -> (M, N). bf16 compute, f32 accumulation."""
    M, K = x.shape
    K2, N = w.shape
    assert K == K2
    x = x.astype(jnp.bfloat16)
    w = w.astype(jnp.bfloat16)
    b2 = b.reshape(1, N).astype(jnp.float32)

    tm = _largest_divisor(M, 2048)
    tn = _largest_divisor(N, 1024)
    tk = _largest_divisor(K, 3584)
    nk = K // tk
    # Accumulation into o_ref is only exact when the output is f32 or single-step.
    assert out_dtype == jnp.float32 or nk == 1

    kernel = functools.partial(_mm_kernel, relu=relu)
    return pl.pallas_call(
        kernel,
        out_shape=jax.ShapeDtypeStruct((M, N), out_dtype),
        grid_spec=pltpu.PrefetchScalarGridSpec(
            num_scalar_prefetch=0,
            grid=(M // tm, N // tn, nk),
            in_specs=[
                pl.BlockSpec((tm, tk), lambda i, j, k: (i, k)),
                pl.BlockSpec((tk, tn), lambda i, j, k: (k, j)),
                pl.BlockSpec((1, tn), lambda i, j, k: (0, j)),
            ],
            out_specs=pl.BlockSpec((tm, tn), lambda i, j, k: (i, j)),
        ),
        compiler_params=pltpu.CompilerParams(
            dimension_semantics=("parallel", "parallel", "arbitrary"),
            vmem_limit_bytes=VMEM_LIMIT),
    )(x, w, b2)


# ----------------------------------------------------------------------------
# Halo 3x3 conv (padding=1, stride=1) + ReLU.
# Full padded image per batch element stays resident in VMEM; each grid step
# computes `tho` output rows via 9 accumulated MXU dots over in-VMEM halo taps.
# ----------------------------------------------------------------------------
def _conv3x3_kernel(x_ref, w_ref, b_ref, o_ref, *, tho, wpad, cin):
    # x_ref: (1, H+2, wpad+2, cin)  bf16 (full padded image of one batch elem)
    # w_ref: (9*cin, cout)          bf16, rows ordered (dy, dx, cin)
    # b_ref: (1, cout)              f32
    # o_ref: (1, tho, wpad, cout)   bf16
    i = pl.program_id(1)
    cout = o_ref.shape[3]
    row0 = i * tho  # first conv output row of this block

    acc = None
    for t in range(9):
        dy, dx = t // 3, t % 3
        slab = x_ref[0, pl.ds(row0 + dy, tho), pl.ds(dx, wpad), :]  # (tho, wpad, cin)
        lhs = slab.reshape(tho * wpad, cin)
        part = jnp.dot(lhs, w_ref[pl.ds(t * cin, cin), :],
                       preferred_element_type=jnp.float32)
        acc = part if acc is None else acc + part

    acc = jnp.maximum(acc + b_ref[...], 0.0)
    o_ref[0] = acc.reshape(tho, wpad, cout).astype(o_ref.dtype)


def conv3x3_relu(x, w, b):
    """x: (B, H, W, Cin) NHWC, w: (3, 3, Cin, Cout) HWIO, b: (Cout,) -> bf16."""
    B, H, W, Cin = x.shape
    Cout = w.shape[-1]
    wpad = ((W + 7) // 8) * 8                       # keep in-kernel reshapes layout-free
    xp = jnp.pad(x.astype(jnp.bfloat16),
                 ((0, 0), (1, 1), (1, 1 + wpad - W), (0, 0)))  # (B, H+2, wpad+2, Cin)
    wr = w.reshape(9 * Cin, Cout).astype(jnp.bfloat16)
    br = b.reshape(1, Cout).astype(jnp.float32)

    tho = _pick_tho(H, wpad)
    kernel = functools.partial(_conv3x3_kernel, tho=tho, wpad=wpad, cin=Cin)
    y = pl.pallas_call(
        kernel,
        out_shape=jax.ShapeDtypeStruct((B, H, wpad, Cout), jnp.bfloat16),
        grid_spec=pltpu.PrefetchScalarGridSpec(
            num_scalar_prefetch=0,
            grid=(B, H // tho),
            in_specs=[
                pl.BlockSpec((1, H + 2, wpad + 2, Cin), lambda b_, i: (b_, 0, 0, 0)),
                pl.BlockSpec((9 * Cin, Cout), lambda b_, i: (0, 0)),
                pl.BlockSpec((1, Cout), lambda b_, i: (0, 0)),
            ],
            out_specs=pl.BlockSpec((1, tho, wpad, Cout), lambda b_, i: (b_, i, 0, 0)),
        ),
        compiler_params=pltpu.CompilerParams(
            dimension_semantics=("parallel", "parallel"),
            vmem_limit_bytes=VMEM_LIMIT),
    )(xp, wr, br)
    if wpad != W:
        y = y[:, :, :W, :]
    return y


def conv3x3_first(x, w, b):
    """First conv layer (Cin=3): cheap JAX im2col (K=27) + Pallas matmul."""
    B, H, W, C = x.shape
    Cout = w.shape[-1]
    xp = jnp.pad(x, ((0, 0), (1, 1), (1, 1), (0, 0)))
    cols = [xp[:, dy:dy + H, dx:dx + W, :] for dy in range(3) for dx in range(3)]
    lhs = jnp.concatenate(cols, axis=-1).astype(jnp.bfloat16).reshape(B * H * W, 9 * C)
    rhs = w.reshape(9 * C, Cout)
    y = matmul_bias_act(lhs, rhs, b, relu=True, out_dtype=jnp.bfloat16)
    return y.reshape(B, H, W, Cout)


# ----------------------------------------------------------------------------
# 2x2 max-pool, stride 2 (bf16).
# ----------------------------------------------------------------------------
def _maxpool_kernel(x_ref, o_ref):
    thr = o_ref.shape[1]
    wout = o_ref.shape[2]
    c = o_ref.shape[3]
    x = x_ref[0]                                     # (2*thr, wout, 2c)
    m = jnp.maximum(x[:, :, :c], x[:, :, c:])        # pool over W pairs
    m = m.reshape(thr, 2, wout, c)
    o_ref[0] = jnp.max(m, axis=1)                    # pool over H pairs


def maxpool2x2(x):
    """x: (B, H, W, C) -> (B, H//2, W//2, C)."""
    B, H, W, C = x.shape
    hout, wout = H // 2, W // 2
    xr = x.reshape(B, H, wout, 2 * C)                # contiguous reshape (glue)
    thr = 14 if hout % 14 == 0 else hout
    return pl.pallas_call(
        _maxpool_kernel,
        out_shape=jax.ShapeDtypeStruct((B, hout, wout, C), x.dtype),
        grid_spec=pltpu.PrefetchScalarGridSpec(
            num_scalar_prefetch=0,
            grid=(B, hout // thr),
            in_specs=[pl.BlockSpec((1, 2 * thr, wout, 2 * C),
                                   lambda b, i: (b, i, 0, 0))],
            out_specs=pl.BlockSpec((1, thr, wout, C),
                                   lambda b, i: (b, i, 0, 0)),
        ),
        compiler_params=pltpu.CompilerParams(
            dimension_semantics=("parallel", "parallel"),
            vmem_limit_bytes=VMEM_LIMIT),
    )(xr)


# ----------------------------------------------------------------------------
# VGG16 model
# ----------------------------------------------------------------------------
VGG_CFG = [64, 64, "M", 128, 128, "M", 256, 256, 256, "M",
           512, 512, 512, "M", 512, 512, 512, "M"]


def init_params(key):
    params = {"conv": [], "fc": []}
    cin = 3
    for v in VGG_CFG:
        if v == "M":
            continue
        key, k = jax.random.split(key)
        fan_in = 9 * cin
        w = (jax.random.normal(k, (3, 3, cin, v), jnp.float32)
             * (2.0 / fan_in) ** 0.5).astype(jnp.bfloat16)
        b = jnp.zeros((v,), jnp.float32)
        params["conv"].append((w, b))
        cin = v
    for din, dout in [(512 * 7 * 7, 4096), (4096, 4096), (4096, 6)]:
        key, k = jax.random.split(key)
        w = (jax.random.normal(k, (din, dout), jnp.float32)
             * (1.0 / din) ** 0.5).astype(jnp.bfloat16)
        b = jnp.zeros((dout,), jnp.float32)
        params["fc"].append((w, b))
    return params
    # TODO(synk): `pretrained` state_dict loading is out of scope (synthetic init).


def vgg16_forward(x_nchw, params):
    x = jnp.transpose(x_nchw, (0, 2, 3, 1))          # NCHW -> NHWC
    ci = 0
    for v in VGG_CFG:
        if v == "M":
            x = maxpool2x2(x)
        else:
            w, b = params["conv"][ci]
            ci += 1
            if ci == 1:
                x = conv3x3_first(x, w, b)
            else:
                x = conv3x3_relu(x, w, b)
    B = x.shape[0]
    x = jnp.transpose(x, (0, 3, 1, 2)).reshape(B, -1)  # match torch .view order
    (w1, b1), (w2, b2), (w3, b3) = params["fc"]
    x = matmul_bias_act(x, w1, b1, relu=True)
    x = matmul_bias_act(x.astype(jnp.bfloat16), w2, b2, relu=True)
    x = matmul_bias_act(x.astype(jnp.bfloat16), w3, b3, relu=False)
    return x


# ----------------------------------------------------------------------------
# Small correctness self-tests against pure-JAX references (bf16 tolerances).
# ----------------------------------------------------------------------------
def _rel_err(got, ref):
    got = got.astype(jnp.float32)
    ref = ref.astype(jnp.float32)
    return float(jnp.max(jnp.abs(got - ref)) / (jnp.max(jnp.abs(ref)) + 1e-6))


def _self_test(key):
    k1, k2, k3, k4, k5, k6 = jax.random.split(key, 6)

    # conv, width a multiple of 8
    xs = jax.random.normal(k1, (2, 16, 16, 64), jnp.float32)
    ws = jax.random.normal(k2, (3, 3, 64, 128), jnp.float32) * 0.05
    bs = jax.random.normal(k3, (128,), jnp.float32) * 0.1
    got = conv3x3_relu(xs, ws, bs)
    ref = jnp.maximum(
        jax.lax.conv_general_dilated(
            xs, ws, (1, 1), "SAME",
            dimension_numbers=("NHWC", "HWIO", "NHWC")) + bs, 0.0)
    assert got.shape == ref.shape
    assert _rel_err(got, ref) < 3e-2

    # conv, width not a multiple of 8 (exercises the wpad path)
    xs2 = jax.random.normal(k4, (1, 12, 12, 128), jnp.float32)
    ws2 = jax.random.normal(k5, (3, 3, 128, 128), jnp.float32) * 0.05
    bs2 = jnp.zeros((128,), jnp.float32)
    got2 = conv3x3_relu(xs2, ws2, bs2)
    ref2 = jnp.maximum(
        jax.lax.conv_general_dilated(
            xs2, ws2, (1, 1), "SAME",
            dimension_numbers=("NHWC", "HWIO", "NHWC")), 0.0)
    assert got2.shape == ref2.shape
    assert _rel_err(got2, ref2) < 3e-2

    # maxpool
    xp = jax.random.normal(k6, (2, 4, 4, 128), jnp.float32).astype(jnp.bfloat16)
    gotp = maxpool2x2(xp)
    refp = xp.astype(jnp.float32).reshape(2, 2, 2, 2, 2, 128).max(axis=(2, 4))
    assert _rel_err(gotp, refp) < 1e-3

    # linear
    xl = jax.random.normal(k1, (2, 256), jnp.float32)
    wl = jax.random.normal(k2, (256, 128), jnp.float32) * 0.1
    bl = jnp.ones((128,), jnp.float32) * 0.2
    gotl = matmul_bias_act(xl, wl, bl, relu=True)
    refl = jnp.maximum(xl @ wl + bl, 0.0)
    assert _rel_err(gotl, refl) < 3e-2


if __name__ == "__main__":
    key = jax.random.PRNGKey(0)
    kx, kp, kt = jax.random.split(key, 3)

    _self_test(kt)

    params = init_params(kp)
    # The FC head (25088 -> 4096) fixes the input spatial size at 224x224x3.
    x = jax.random.normal(kx, (2, 3, 224, 224), jnp.float32)

    fwd = jax.jit(vgg16_forward)
    out = fwd(x, params)
    out = jax.block_until_ready(out)

    assert out.shape == (2, 6), out.shape
    assert bool(jnp.all(jnp.isfinite(out)))
    print("KERNEL_OK")
</pallas_src>

<mosaic_0001>
module attributes {stable_mosaic.version = 11 : i64} {
  func.func @_conv3x3_kernel(%arg0: i32, %arg1: i32, %arg2: memref<1x18x18x64xbf16, #tpu.memory_space<vmem>>, %arg3: memref<576x128xbf16, #tpu.memory_space<vmem>>, %arg4: memref<1x128xf32, #tpu.memory_space<vmem>>, %arg5: memref<1x16x16x128xbf16, #tpu.memory_space<vmem>>) attributes {dimension_semantics = [#tpu.dimension_semantics<parallel>, #tpu.dimension_semantics<parallel>], iteration_bounds = array<i64: 2, 1>, scalar_prefetch = 0 : i64, scratch_operands = 0 : i64, tpu.core_type = #tpu.core_type<tc>, window_params = [{transform_indices = @transform_0, window_bounds = array<i64: 1, 18, 18, 64>}, {pipeline_mode = #tpu.pipeline_mode<synchronous>, transform_indices = @transform_1, window_bounds = array<i64: 576, 128>}, {pipeline_mode = #tpu.pipeline_mode<synchronous>, transform_indices = @transform_2, window_bounds = array<i64: 1, 128>}, {transform_indices = @transform_3, window_bounds = array<i64: 1, 16, 16, 128>}]} {
    %c16_i32 = arith.constant 16 : i32
    %0 = arith.muli %arg1, %c16_i32 : i32
    %c0_i32 = arith.constant 0 : i32
    %1 = arith.addi %0, %c0_i32 : i32
    %c0 = arith.constant 0 : index
    %2 = arith.index_cast %1 : i32 to index
    %c0_0 = arith.constant 0 : index
    %c0_1 = arith.constant 0 : index
    %3 = vector.load %arg2[%c0, %2, %c0_0, %c0_1] : memref<1x18x18x64xbf16, #tpu.memory_space<vmem>>, vector<1x16x16x64xbf16>
    %4 = vector.shape_cast %3 : vector<1x16x16x64xbf16> to vector<16x16x64xbf16>
    %5 = vector.shape_cast %4 : vector<16x16x64xbf16> to vector<256x64xbf16>
    %c0_2 = arith.constant 0 : index
    %c0_3 = arith.constant 0 : index
    %6 = vector.load %arg3[%c0_2, %c0_3] : memref<576x128xbf16, #tpu.memory_space<vmem>>, vector<64x128xbf16>
    %cst = arith.constant dense<0.000000e+00> : vector<256x128xf32>
    %7 = tpu.matmul %5, %6, %cst {dimension_numbers = #tpu.dot_dimension_numbers<[1], [0], [0], [1], [0, 0, 1, 1], [], []>} : vector<256x64xbf16>, vector<64x128xbf16>, vector<256x128xf32> -> vector<256x128xf32>
    %c0_i32_4 = arith.constant 0 : i32
    %8 = arith.addi %0, %c0_i32_4 : i32
    %c0_5 = arith.constant 0 : index
    %9 = arith.index_cast %8 : i32 to index
    %c1 = arith.constant 1 : index
    %c0_6 = arith.constant 0 : index
    %10 = vector.load %arg2[%c0_5, %9, %c1, %c0_6] : memref<1x18x18x64xbf16, #tpu.memory_space<vmem>>, vector<1x16x16x64xbf16>
    %11 = vector.shape_cast %10 : vector<1x16x16x64xbf16> to vector<16x16x64xbf16>
    %12 = vector.shape_cast %11 : vector<16x16x64xbf16> to vector<256x64xbf16>
    %c64 = arith.constant 64 : index
    %c0_7 = arith.constant 0 : index
    %13 = vector.load %arg3[%c64, %c0_7] : memref<576x128xbf16, #tpu.memory_space<vmem>>, vector<64x128xbf16>
    %cst_8 = arith.constant dense<0.000000e+00> : vector<256x128xf32>
    %14 = tpu.matmul %12, %13, %cst_8 {dimension_numbers = #tpu.dot_dimension_numbers<[1], [0], [0], [1], [0, 0, 1, 1], [], []>} : vector<256x64xbf16>, vector<64x128xbf16>, vector<256x128xf32> -> vector<256x128xf32>
    %15 = arith.addf %7, %14 : vector<256x128xf32>
    %c0_i32_9 = arith.constant 0 : i32
    %16 = arith.addi %0, %c0_i32_9 : i32
    %c0_10 = arith.constant 0 : index
    %17 = arith.index_cast %16 : i32 to index
    %c2 = arith.constant 2 : index
    %c0_11 = arith.constant 0 : index
    %18 = vector.load %arg2[%c0_10, %17, %c2, %c0_11] : memref<1x18x18x64xbf16, #tpu.memory_space<vmem>>, vector<1x16x16x64xbf16>
    %19 = vector.shape_cast %18 : vector<1x16x16x64xbf16> to vector<16x16x64xbf16>
    %20 = vector.shape_cast %19 : vector<16x16x64xbf16> to vector<256x64xbf16>
    %c128 = arith.constant 128 : index
    %c0_12 = arith.constant 0 : index
    %21 = vector.load %arg3[%c128, %c0_12] : memref<576x128xbf16, #tpu.memory_space<vmem>>, vector<64x128xbf16>
    %cst_13 = arith.constant dense<0.000000e+00> : vector<256x128xf32>
    %22 = tpu.matmul %20, %21, %cst_13 {dimension_numbers = #tpu.dot_dimension_numbers<[1], [0], [0], [1], [0, 0, 1, 1], [], []>} : vector<256x64xbf16>, vector<64x128xbf16>, vector<256x128xf32> -> vector<256x128xf32>
    %23 = arith.addf %15, %22 : vector<256x128xf32>
    %c1_i32 = arith.constant 1 : i32
    %24 = arith.addi %0, %c1_i32 : i32
    %c0_14 = arith.constant 0 : index
    %25 = arith.index_cast %24 : i32 to index
    %c0_15 = arith.constant 0 : index
    %c0_16 = arith.constant 0 : index
    %26 = vector.load %arg2[%c0_14, %25, %c0_15, %c0_16] : memref<1x18x18x64xbf16, #tpu.memory_space<vmem>>, vector<1x16x16x64xbf16>
    %27 = vector.shape_cast %26 : vector<1x16x16x64xbf16> to vector<16x16x64xbf16>
    %28 = vector.shape_cast %27 : vector<16x16x64xbf16> to vector<256x64xbf16>
    %c192 = arith.constant 192 : index
    %c0_17 = arith.constant 0 : index
    %29 = vector.load %arg3[%c192, %c0_17] : memref<576x128xbf16, #tpu.memory_space<vmem>>, vector<64x128xbf16>
    %cst_18 = arith.constant dense<0.000000e+00> : vector<256x128xf32>
    %30 = tpu.matmul %28, %29, %cst_18 {dimension_numbers = #tpu.dot_dimension_numbers<[1], [0], [0], [1], [0, 0, 1, 1], [], []>} : vector<256x64xbf16>, vector<64x128xbf16>, vector<256x128xf32> -> vector<256x128xf32>
    %31 = arith.addf %23, %30 : vector<256x128xf32>
    %c1_i32_19 = arith.constant 1 : i32
    %32 = arith.addi %0, %c1_i32_19 : i32
    %c0_20 = arith.constant 0 : index
    %33 = arith.index_cast %32 : i32 to index
    %c1_21 = arith.constant 1 : index
    %c0_22 = arith.constant 0 : index
    %34 = vector.load %arg2[%c0_20, %33, %c1_21, %c0_22] : memref<1x18x18x64xbf16, #tpu.memory_space<vmem>>, vector<1x16x16x64xbf16>
    %35 = vector.shape_cast %34 : vector<1x16x16x64xbf16> to vector<16x16x64xbf16>
    %36 = vector.shape_cast %35 : vector<16x16x64xbf16> to vector<256x64xbf16>
    %c256 = arith.constant 256 : index
    %c0_23 = arith.constant 0 : index
    %37 = vector.load %arg3[%c256, %c0_23] : memref<576x128xbf16, #tpu.memory_space<vmem>>, vector<64x128xbf16>
    %cst_24 = arith.constant dense<0.000000e+00> : vector<256x128xf32>
    %38 = tpu.matmul %36, %37, %cst_24 {dimension_numbers = #tpu.dot_dimension_numbers<[1], [0], [0], [1], [0, 0, 1, 1], [], []>} : vector<256x64xbf16>, vector<64x128xbf16>, vector<256x128xf32> -> vector<256x128xf32>
    %39 = arith.addf %31, %38 : vector<256x128xf32>
    %c1_i32_25 = arith.constant 1 : i32
    %40 = arith.addi %0, %c1_i32_25 : i32
    %c0_26 = arith.constant 0 : index
    %41 = arith.index_cast %40 : i32 to index
    %c2_27 = arith.constant 2 : index
    %c0_28 = arith.constant 0 : index
    %42 = vector.load %arg2[%c0_26, %41, %c2_27, %c0_28] : memref<1x18x18x64xbf16, #tpu.memory_space<vmem>>, vector<1x16x16x64xbf16>
    %43 = vector.shape_cast %42 : vector<1x16x16x64xbf16> to vector<16x16x64xbf16>
    %44 = vector.shape_cast %43 : vector<16x16x64xbf16> to vector<256x64xbf16>
    %c320 = arith.constant 320 : index
    %c0_29 = arith.constant 0 : index
    %45 = vector.load %arg3[%c320, %c0_29] : memref<576x128xbf16, #tpu.memory_space<vmem>>, vector<64x128xbf16>
    %cst_30 = arith.constant dense<0.000000e+00> : vector<256x128xf32>
    %46 = tpu.matmul %44, %45, %cst_30 {dimension_numbers = #tpu.dot_dimension_numbers<[1], [0], [0], [1], [0, 0, 1, 1], [], []>} : vector<256x64xbf16>, vector<64x128xbf16>, vector<256x128xf32> -> vector<256x128xf32>
    %47 = arith.addf %39, %46 : vector<256x128xf32>
    %c2_i32 = arith.constant 2 : i32
    %48 = arith.addi %0, %c2_i32 : i32
    %c0_31 = arith.constant 0 : index
    %49 = arith.index_cast %48 : i32 to index
    %c0_32 = arith.constant 0 : index
    %c0_33 = arith.constant 0 : index
    %50 = vector.load %arg2[%c0_31, %49, %c0_32, %c0_33] : memref<1x18x18x64xbf16, #tpu.memory_space<vmem>>, vector<1x16x16x64xbf16>
    %51 = vector.shape_cast %50 : vector<1x16x16x64xbf16> to vector<16x16x64xbf16>
    %52 = vector.shape_cast %51 : vector<16x16x64xbf16> to vector<256x64xbf16>
    %c384 = arith.constant 384 : index
    %c0_34 = arith.constant 0 : index
    %53 = vector.load %arg3[%c384, %c0_34] : memref<576x128xbf16, #tpu.memory_space<vmem>>, vector<64x128xbf16>
    %cst_35 = arith.constant dense<0.000000e+00> : vector<256x128xf32>
    %54 = tpu.matmul %52, %53, %cst_35 {dimension_numbers = #tpu.dot_dimension_numbers<[1], [0], [0], [1], [0, 0, 1, 1], [], []>} : vector<256x64xbf16>, vector<64x128xbf16>, vector<256x128xf32> -> vector<256x128xf32>
    %55 = arith.addf %47, %54 : vector<256x128xf32>
    %c2_i32_36 = arith.constant 2 : i32
    %56 = arith.addi %0, %c2_i32_36 : i32
    %c0_37 = arith.constant 0 : index
    %57 = arith.index_cast %56 : i32 to index
    %c1_38 = arith.constant 1 : index
    %c0_39 = arith.constant 0 : index
    %58 = vector.load %arg2[%c0_37, %57, %c1_38, %c0_39] : memref<1x18x18x64xbf16, #tpu.memory_space<vmem>>, vector<1x16x16x64xbf16>
    %59 = vector.shape_cast %58 : vector<1x16x16x64xbf16> to vector<16x16x64xbf16>
    %60 = vector.shape_cast %59 : vector<16x16x64xbf16> to vector<256x64xbf16>
    %c448 = arith.constant 448 : index
    %c0_40 = arith.constant 0 : index
    %61 = vector.load %arg3[%c448, %c0_40] : memref<576x128xbf16, #tpu.memory_space<vmem>>, vector<64x128xbf16>
    %cst_41 = arith.constant dense<0.000000e+00> : vector<256x128xf32>
    %62 = tpu.matmul %60, %61, %cst_41 {dimension_numbers = #tpu.dot_dimension_numbers<[1], [0], [0], [1], [0, 0, 1, 1], [], []>} : vector<256x64xbf16>, vector<64x128xbf16>, vector<256x128xf32> -> vector<256x128xf32>
    %63 = arith.addf %55, %62 : vector<256x128xf32>
    %c2_i32_42 = arith.constant 2 : i32
    %64 = arith.addi %0, %c2_i32_42 : i32
    %c0_43 = arith.constant 0 : index
    %65 = arith.index_cast %64 : i32 to index
    %c2_44 = arith.constant 2 : index
    %c0_45 = arith.constant 0 : index
    %66 = vector.load %arg2[%c0_43, %65, %c2_44, %c0_45] : memref<1x18x18x64xbf16, #tpu.memory_space<vmem>>, vector<1x16x16x64xbf16>
    %67 = vector.shape_cast %66 : vector<1x16x16x64xbf16> to vector<16x16x64xbf16>
    %68 = vector.shape_cast %67 : vector<16x16x64xbf16> to vector<256x64xbf16>
    %c512 = arith.constant 512 : index
    %c0_46 = arith.constant 0 : index
    %69 = vector.load %arg3[%c512, %c0_46] : memref<576x128xbf16, #tpu.memory_space<vmem>>, vector<64x128xbf16>
    %cst_47 = arith.constant dense<0.000000e+00> : vector<256x128xf32>
    %70 = tpu.matmul %68, %69, %cst_47 {dimension_numbers = #tpu.dot_dimension_numbers<[1], [0], [0], [1], [0, 0, 1, 1], [], []>} : vector<256x64xbf16>, vector<64x128xbf16>, vector<256x128xf32> -> vector<256x128xf32>
    %71 = arith.addf %63, %70 : vector<256x128xf32>
    %c0_48 = arith.constant 0 : index
    %c0_49 = arith.constant 0 : index
    %72 = vector.load %arg4[%c0_48, %c0_49] : memref<1x128xf32, #tpu.memory_space<vmem>>, vector<1x128xf32>
    %73 = vector.broadcast %72 : vector<1x128xf32> to vector<256x128xf32>
    %74 = arith.addf %71, %73 : vector<256x128xf32>
    %cst_50 = arith.constant 0.000000e+00 : f32
    %75 = vector.broadcast %cst_50 : f32 to vector<256x128xf32>
    %76 = arith.maximumf %74, %75 : vector<256x128xf32>
    %77 = vector.shape_cast %76 : vector<256x128xf32> to vector<16x16x128xf32>
    %78 = arith.truncf %77 : vector<16x16x128xf32> to vector<16x16x128xbf16>
    %c0_51 = arith.constant 0 : index
    %c0_52 = arith.constant 0 : index
    %c0_53 = arith.constant 0 : index
    %c0_54 = arith.constant 0 : index
    %79 = vector.load %arg5[%c0_51, %c0_52, %c0_53, %c0_54] : memref<1x16x16x128xbf16, #tpu.memory_space<vmem>>, vector<1x16x16x128xbf16>
    %80 = vector.shape_cast %79 : vector<1x16x16x128xbf16> to vector<16x16x128xbf16>
    %81 = vector.shape_cast %78 : vector<16x16x128xbf16> to vector<1x16x16x128xbf16>
    tpu.vector_store %arg5[%c0_51, %c0_52, %c0_53, %c0_54], %81 {strides = array<i32>} : memref<1x16x16x128xbf16, #tpu.memory_space<vmem>>, vector<1x16x16x128xbf16>,
    return
  }
  func.func @transform_0(%arg0: i32, %arg1: i32) -> (i32, i32, i32, i32) {
    %c0_i32 = arith.constant 0 : i32
    %c0_i32_0 = arith.constant 0 : i32
    %c0_i32_1 = arith.constant 0 : i32
    %c0_i32_2 = arith.constant 0 : i32
    return %arg0, %c0_i32, %c0_i32_0, %c0_i32_1 : i32, i32, i32, i32
  }
  func.func @transform_1(%arg0: i32, %arg1: i32) -> (i32, i32) {
    %c0_i32 = arith.constant 0 : i32
    %c0_i32_0 = arith.constant 0 : i32
    %c0_i32_1 = arith.constant 0 : i32
    return %c0_i32, %c0_i32_0 : i32, i32
  }
  func.func @transform_2(%arg0: i32, %arg1: i32) -> (i32, i32) {
    %c0_i32 = arith.constant 0 : i32
    %c0_i32_0 = arith.constant 0 : i32
    %c0_i32_1 = arith.constant 0 : i32
    return %c0_i32, %c0_i32_0 : i32, i32
  }
  func.func @transform_3(%arg0: i32, %arg1: i32) -> (i32, i32, i32, i32) {
    %c0_i32 = arith.constant 0 : i32
    %c0_i32_0 = arith.constant 0 : i32
    %c0_i32_1 = arith.constant 0 : i32
    return %arg0, %arg1, %c0_i32, %c0_i32_0 : i32, i32, i32, i32
  }
}

</mosaic_0001>

<bundles_post_ra>
// kernel: tpu_custom_call.1
= control target key start
LH: loop header
LB: loop body
LE: loop exit
PB: predicated region body
PF: predicated region fallthrough
CT: control target
= control target key end

     0   :  { %8 = vsyncpa [#allocation3], 0  ;;  %s9134_s0 = inlined_call_operand.vmem [shape: bf16[2,18,18,64], index: 0, kind: input, shape index: {}]   ;;  %s9135_s1 = inlined_call_operand.vmem [shape: bf16[576,128], index: 1, kind: input, shape index: {}]   ;;  %s9136_s2 = inlined_call_operand.vmem [shape: f32[1,128], index: 2, kind: input, shape index: {}]   ;;  %s9137_s3 = inlined_call_operand.hbm [shape: bf16[2,16,16,128], index: 3, kind: output, shape index: {}]  }
   0x1   :  { %10 = vsyncpa [#allocation3 + $0x1], 0  ;;  %s7180_s12 = smov 0   ;;  %s7182_s13 = smov 0  }
   0x2   :  { %s7184_s14 = smov 0   ;;  %s7186_s15 = smov 0  }
   0x3   :  { %s7188_s16 = smov 0   ;;  %s7190_s17 = smov 0  }
   0x4 LB: > { %s5328_s18 = sadd.s32 4294967295, %s7155_s17   ;;  %s5329_s19 = sadd.s32 4294967294, %s7155_s17   ;;  %s7155_s17 = sphi %s7190_s17, %s16_s17   ;;  %s7151_s16 = sphi %s7188_s16, %s9206_s16   ;;  %s7147_s15 = sphi %s7186_s15, %s9205_s15   ;;  %s7143_s14 = sphi %s7184_s14, %s9204_s14   ;;  %s7139_s13 = sphi %s7182_s13, %s9203_s13   ;;  %s7135_s12 = sphi %s7180_s12, %s9202_s12  }
   0x5   : > { %s28_s20 = sadd.s32 1, %s7151_s16  ;;  %s105_s21 = sadd.s32 1, %s7143_s14 }
   0x6   : > { %p30_p0 = scmp.ge.s32.totalorder %s28_s20, 2  ;;  %p115_p1 = scmp.ne.s32.totalorder %s7143_s14, %s7139_s13 }
   0x7   : > { %p116_p2 = scmp.eq.s32.totalorder %s5328_s18, 1  ;;  %p121_p3 = scmp.ne.s32.totalorder %s7139_s13, %s7135_s12 }
   0x8   : > { %s9208_s20 = smov (%p30_p0, %s28_s20), 0  ;;  %p122_p5 = scmp.eq.s32.totalorder %s5329_s19, 1 }
   0x9   : > { %p7220_p4 = por %p116_p2, %p115_p1  ;;  %s100_s23 = ssub.s32 %s7151_s16, %s9208_s20 }
   0xa   : > { %p5332_p6 = scmp.ge.s32.totalorder %s7155_s17, 1  ;;  %p103_p7 = scmp.eq.s32.totalorder %s100_s23, 0 }
   0xb   : > { %p7227_p8 = por %p122_p5, %p121_p3  ;;  %p154_p9 = scmp.lt.s32.totalorder %s7155_s17, 3 }
   0xc   : > { %s7233_s25 = scalar_select %p103_p7, %s7143_s14, %s105_s21  }
   0xd   : > { %p155_p10 = pnand %p5332_p6, %p154_p9 }
   0xf   : > { %158 = sbr.rel (%p155_p10) target bundleno = 613 (0x265), region = 32 }
  0x16   : > { %v6927_v0 = vld [vmem:[%s9135_s1 + $0x20] sm:$0xff]   ;;  %p178_p11 = scmp.lt.s32.totalorder %s7147_s15, 1  ;;  %v6929_v2 = vld [vmem:[%s9135_s1 + $0x28] sm:$0xff]   ;;  %v6931_v4 = vld [vmem:[%s9135_s1 + $0x30] sm:$0xff]   ;;  %vm245_vm0 = vsmask.f32 3328 }
  0x17   : > { %v6928_v1 = vld [vmem:[%s9135_s1 + $0x80] sm:$0xff]   ;;  %6245 = vmatprep.subr.bf16.mxu1 %v6927_v0  ;;  %v6930_v3 = vld [vmem:[%s9135_s1 + $0x88] sm:$0xff]   ;;  %v6932_v5 = vld [vmem:[%s9135_s1 + $0x90] sm:$0xff]   ;;  %vm246_vm1 = vsmask.f32 7440  ;;  %vm712_vm3 = vcmask 523264  }
  0x18   : > { %s179_s5 = scalar_select %p178_p11, %s7147_s15, 1  ;;  %6405 = vmatprep.subr.bf16.mxu0 %v6928_v1  ;;  %6246 = vmatpush3.bf16.msra.mxu1 %v6927_v0  ;;  %v6933_v6 = vld [vmem:[%s9135_s1 + $0x38] sm:$0xff]   ;;  %v7272_v18 = vld [vmem:[%s9135_s1] sm:$0xff]   ;;  %vm7288_vm2 = vmor %vm245_vm0, %vm246_vm1  ;;  %vm1283_vm4 = vcmask 1042432   ;;  %vm1284_vm5 = vcmask 1046532  }
  0x19   : > { %6406 = vmatpush3.bf16.msra.mxu0 %v6928_v1  ;;  %6247 = vmatprep.subr.bf16.mxu1 %v6929_v2  ;;  %v6934_v7 = vld [vmem:[%s9135_s1 + $0x98] sm:$0xff]   ;;  %v7278_v23 = vld [vmem:[%s9135_s1 + $0xa0] sm:$0xff]   ;;  %vm7521_vm6 = vmor %vm1283_vm4, %vm1284_vm5  ;;  %s175_s6 = sand.u32 1, %s7139_s13   ;;  %s5969_s9 = sshll.u32 %s7147_s15, 11 }
  0x1a   : > { %s6869_s10 = smul.u32 216, %s179_s5  ;;  %6407 = vmatprep.subr.bf16.mxu0 %v6930_v3  ;;  %s5333_s7 = sshll.u32 %s175_s6, 7 }
  0x1b   : > { %s9027_s8 = scalar_lea.vmem [#allocation2], %s5333_s7  ;;  %s9080_s19 = scalar_lea.hbm %s9137_s3, %s5969_s9 }
  0x1c   : > { %s7261_s27 = scalar_lea.vmem %s9134_s0, %s6869_s10  ;;  %6248 = vmatpush3.bf16.msra.mxu1 %v6929_v2  ;;  %s5245_s10 = sshll.u32 %s9027_s8, 4  ;;  %s9082_s10 = int_to_ptr.vmem [resolvable:$true] %s5245_s10 }
  0x1d   : > { %6408 = vmatpush3.bf16.msra.mxu0 %v6930_v3  ;;  %6249 = vmatprep.subr.bf16.mxu1 %v6931_v4  ;;  %v189_v8 = vld [vmem:[%s7261_s27] sm:$0xf]  ;;  %v190_v9 = vld [vmem:[%s7261_s27 + $0x4] sm:$0xf]  ;;  %v229_v10 = vld [vmem:[%s7261_s27 + $0x8] sm:$0x1] }
  0x1e   : > { %6409 = vmatprep.subr.bf16.mxu0 %v6932_v5  ;;  %v249_v11 = vshrl.u32 %v189_v8, 16  ;;  %v252_v12 = vshll.u32 %v189_v8, 16  ;;  %v258_v13 = vshll.u32 %v190_v9, 16  ;;  %v262_v14 = vshrl.u32 %v190_v9, 16  ;;  %v5527_v22 = vld [vmem:[%s7261_s27 + $0xc] sm:$0xf] }
  0x1f   : > { %v268_v15 = vshll.u32 %v229_v10, 16  ;;  %v7281_v25 = vld [vmem:[%s7261_s27 + $0x10] sm:$0xf]  ;;  %v7284_v26 = vld [vmem:[%s7261_s27 + $0x14] sm:$0x1]  ;;  %v2157_v27 = vshrl.u32 %v5527_v22, 16 }
  0x20   : > { %6250 = vmatpush3.bf16.msra.mxu1 %v6931_v4  ;;  %v251_v16 = vrot.slane %v249_v11, 4  ;;  %v254_v17 = vrot.slane %v252_v12, 5  ;;  %v260_v19 = vrot.slane %v258_v13, 5  ;;  %v264_v20 = vrot.slane %v262_v14, 4  ;;  %v191_v40 = vld [vmem:[%s7261_s27 + $0xc] sm:$0xf] }
  0x21   : > { %6410 = vmatpush3.bf16.msra.mxu0 %v6932_v5  ;;  %6251 = vmatprep.subr.bf16.mxu1 %v6933_v6  ;;  %v270_v21 = vrot.slane %v268_v15, 5  ;;  %v2160_v28 = vshll.u32 %v5527_v22, 16  ;;  %v2166_v31 = vshll.u32 %v7281_v25, 16  ;;  %v2170_v32 = vshrl.u32 %v7281_v25, 16  ;;  %v192_v44 = vld [vmem:[%s7261_s27 + $0x10] sm:$0xf] }
  0x22   : > { %6411 = vmatprep.subr.bf16.mxu0 %v6934_v7  ;;  %v255_v24 = vor.u32 %v254_v17, %v251_v16  ;;  %v265_v30 = vor.u32 %v264_v20, %v260_v19  ;;  %v2176_v33 = vshll.u32 %v7284_v26, 16  ;;  %v2159_v35 = vrot.slane %v2157_v27, 4  ;;  %v230_v45 = vld [vmem:[%s7261_s27 + $0x14] sm:$0x1]  ;;  %v5530_v55 = vld [vmem:[%s7261_s27 + $0x18] sm:$0xf] }
  0x23   : > { %v2162_v36 = vrot.slane %v2160_v28, 5  ;;  %v2168_v38 = vrot.slane %v2166_v31, 5  ;;  %v2172_v39 = vrot.slane %v2170_v32, 4  ;;  %v273_v46 = vshrl.u32 %v191_v40, 16  ;;  %v7306_v60 = vld [vmem:[%s7261_s27 + $0x1c] sm:$0xf] }
  0x24   : > { %6252 = vmatpush3.bf16.msra.mxu1 %v6933_v6  ;;  %v256_v34 = vrot.slane %v255_v24, 4  ;;  %v266_v37 = vrot.slane %v265_v30, 4  ;;  %v2178_v43 = vrot.slane %v2176_v33, 5  ;;  %v276_v49 = vshll.u32 %v191_v40, 16  ;;  %v7314_v1 = vld [vmem:[%s7261_s27 + $0x20] sm:$0x1] }
  0x25   : > { %6412 = vmatpush3.bf16.msra.mxu0 %v6934_v7  ;;  %6285 = vmatprep.subr.bf16.mxu1 %v7272_v18  ;;  %v2163_v42 = vor.u32 %v2162_v36, %v2159_v35  ;;  %v2173_v48 = vor.u32 %v2172_v39, %v2168_v38  ;;  %v282_v50 = vshll.u32 %v192_v44, 16  ;;  %v275_v53 = vrot.slane %v273_v46, 4  ;;  %v193_v10 = vld [vmem:[%s7261_s27 + $0x18] sm:$0xf]  ;;  %v194_v11 = vld [vmem:[%s7261_s27 + $0x1c] sm:$0xf] }
  0x26   : > { %v261_v41 = vsel %vm7288_vm2, %v256_v34, %v260_v19  ;;  %6445 = vmatprep.subr.bf16.mxu0 %v7278_v23  ;;  %v271_v47 = vsel %vm7288_vm2, %v266_v37, %v270_v21  ;;  %v286_v54 = vshrl.u32 %v192_v44, 16  ;;  %v278_v57 = vrot.slane %v276_v49, 5  ;;  %v231_v28 = vld [vmem:[%s7261_s27 + $0x20] sm:$0x1]  ;;  %v5533_v34 = vld [vmem:[%s7261_s27 + $0x24] sm:$0xf] }
  0x27   : > { %v5335_v51 = vcombine.low %v261_v41, %v271_v47  ;;  %v2164_v52 = vrot.slane %v2163_v42, 4  ;;  %v2174_v56 = vrot.slane %v2173_v48, 4  ;;  %v284_v58 = vrot.slane %v282_v50, 5  ;;  %v6938_v39 = vld [vmem:[%s9135_s1 + $0x8] sm:$0xff]   ;;  %s9088_s15 = scalar_lea.sflag [#allocation3], %s175_s6  ;;  %s7077_s21 = scalar_lea.vmem %s9082_s10, 2048 }
  0x28   : > { %v292_v59 = vshll.u32 %v230_v45, 16  ;;  %v2927_v62 = vrot.slane %v7281_v25, 5  ;;  %v2930_v63 = vrot.slane %v7284_v26, 5  ;;  %v288_v0 = vrot.slane %v286_v54, 4  ;;  %v7340_v44 = vld [vmem:[%s7261_s27 + $0x28] sm:$0xf]  ;;  %p7078_p12 = scmp.ne.s32.totalorder %s9082_s10, %s7077_s21 }
  0x29   : > { %6253 = vmatprep.mubr.msk.bf16.mxu1 %vm712_vm3, %v5335_v51  ;;  %v2169_v61 = vsel %vm7288_vm2, %v2164_v52, %v2168_v38  ;;  %v2179_v2 = vsel %vm7288_vm2, %v2174_v56, %v2178_v43  ;;  %v279_v3 = vor.u32 %v278_v57, %v275_v53  ;;  %v2181_v5 = vshrl.u32 %v5530_v55, 16  ;;  %v7344_v48 = vld [vmem:[%s7261_s27 + $0x2c] sm:$0x1]  ;;  %v6941_v56 = vld [vmem:[%s9135_s1 + $0x10] sm:$0xff]   ;;  %s7157_s23 = smov [#allocation2]  }
  0x2a   : > { %v294_v4 = vrot.slane %v292_v59, 5  ;;  %v5575_v6 = vcombine.low %v2169_v61, %v2179_v2  ;;  %v289_v7 = vor.u32 %v288_v0, %v284_v58  ;;  %v2184_v8 = vshll.u32 %v5530_v55, 16  ;;  %v6937_v54 = vld [vmem:[%s9135_s1 + $0xa8] sm:$0xff]   ;;  %v195_v55 = vld [vmem:[%s7261_s27 + $0x24] sm:$0xf]  ;;  %p7079_p13 = pnand %p7078_p12, %p7220_p4  ;;  %s7081_s26 = sshll.u32 %s7157_s23, 4  ;;  %s7082_s26 = int_to_ptr.vmem [resolvable:$false] %s7081_s26 }
  0x2b   : > { %v2190_v9 = vshll.u32 %v7306_v60, 16  ;;  %v280_v12 = vrot.slane %v279_v3, 4  ;;  %v2183_v13 = vrot.slane %v2181_v5, 4  ;;  %v2194_v14 = vshrl.u32 %v7306_v60, 16  ;;  %v196_v61 = vld [vmem:[%s7261_s27 + $0x28] sm:$0xf]  ;;  %p7084_p1 = scmp.lt.s32.totalorder %s9082_s10, %s7082_s26 }
  0x2c   : > { %v2200_v15 = vshll.u32 %v7314_v1, 16  ;;  %6413 = vmatprep.mubr.msk.bf16.mxu0 %vm712_vm3, %v5575_v6  ;;  %v290_v16 = vrot.slane %v289_v7, 4  ;;  %v2186_v17 = vrot.slane %v2184_v8, 5  ;;  %v2934_v20 = vrot.slane %v7306_v60, 5  ;;  %v232_v5 = vld [vmem:[%s7261_s27 + $0x2c] sm:$0x1]  ;;  %p7080_p0 = pneg %p7079_p13 }
  0x2d   : > { %v2192_v19 = vrot.slane %v2190_v9, 5  ;;  %v285_v21 = vsel %vm7288_vm2, %v280_v12, %v284_v58  ;;  %v2196_v22 = vrot.slane %v2194_v14, 4  ;;  %v2937_v27 = vrot.slane %v7314_v1, 5  ;;  %s7083_s28 = scalar_lea.vmem %s7082_s26, 4096 }
  0x2e   : > { %v2202_v24 = vrot.slane %v2200_v15, 5  ;;  %v295_v30 = vsel %vm7288_vm2, %v290_v16, %v294_v4  ;;  %v2187_v31 = vor.u32 %v2186_v17, %v2183_v13  ;;  %v7333_v32 = vrot.slane %v2934_v20, 4  ;;  %v7366_v15 = vld [vmem:[%s7261_s27 + $0x34] sm:$0xf]  ;;  %p7085_p2 = scmp.lt.s32.totalorder %s7083_s28, %s7077_s21 }
  0x2f   : > { %v297_v33 = vshrl.u32 %v193_v10, 16  ;;  %v5336_v35 = vcombine.low %v285_v21, %v295_v30  ;;  %v2197_v36 = vor.u32 %v2196_v22, %v2192_v19  ;;  %v300_v37 = vshll.u32 %v193_v10, 16  ;;  %v5536_v10 = vld [vmem:[%s7261_s27 + $0x30] sm:$0xf] }
  0x30   : > { %v306_v38 = vshll.u32 %v194_v11, 16  ;;  %v2188_v40 = vrot.slane %v2187_v31, 4  ;;  %v310_v42 = vshrl.u32 %v194_v11, 16  ;;  %v316_v43 = vshll.u32 %v231_v28, 16  ;;  %v6939_v31 = vld [vmem:[%s9135_s1 + $0xb0] sm:$0xff]   ;;  %p7086_p3 = por %p7085_p2, %p7084_p1 }
  0x31   : > { %v299_v41 = vrot.slane %v297_v33, 4  ;;  %6254 = vmatmul.mubr.msk.bf16.vlgmr.msra.gmra.mrb[0].mxu1 %vm712_vm3, %v5336_v35  ;;  %v2198_v45 = vrot.slane %v2197_v36, 4  ;;  %v302_v46 = vrot.slane %v300_v37, 5  ;;  %v2205_v49 = vshrl.u32 %v5533_v34, 16 }
  0x32   : > { %v308_v47 = vrot.slane %v306_v38, 5  ;;  %6286 = vmatpush3.bf16.msra.mxu1 %v7272_v18  ;;  %v2193_v50 = vsel %vm7288_vm2, %v2188_v40, %v2192_v19  ;;  %v312_v51 = vrot.slane %v310_v42, 4  ;;  %v318_v52 = vrot.slane %v316_v43, 5  ;;  %v7382_v40 = vld [vmem:[%s7261_s27 + $0x38] sm:$0x1]  ;;  %p7087_p5 = pnand %p7086_p3, %p7080_p0 }
  0x33   : > { %v2208_v53 = vshll.u32 %v5533_v34, 16  ;;  %v2203_v18 = vsel %vm7288_vm2, %v2198_v45, %v2202_v24  ;;  %v303_v57 = vor.u32 %v302_v46, %v299_v41  ;;  %v2207_v58 = vrot.slane %v2205_v49, 4  ;;  %6287 = vmatprep.subr.bf16.mxu1 %v6938_v39  ;;  %v6940_v42 = vld [vmem:[%s9135_s1 + $0xb8] sm:$0xff]   ;;  %v197_v49 = vld [vmem:[%s7261_s27 + $0x30] sm:$0xf] }
  0x34   : > { %v2214_v59 = vshll.u32 %v7340_v44, 16  ;;  %v5576_v0 = vcombine.low %v2193_v50, %v2203_v18  ;;  %v313_v2 = vor.u32 %v312_v51, %v308_v47  ;;  %v2218_v4 = vshrl.u32 %v7340_v44, 16 }
  0x35   : > { %v2210_v3 = vrot.slane %v2208_v53, 5  ;;  %v304_v6 = vrot.slane %v303_v57, 4  ;;  %v2224_v8 = vshll.u32 %v7344_v48, 16  ;;  %v321_v9 = vshrl.u32 %v195_v55, 16 }
  0x36   : > { %v2216_v7 = vrot.slane %v2214_v59, 5  ;;  %6414 = vmatmul.mubr.msk.bf16.vlgmr.msra.gmra.mrb[0].mxu0 %vm712_vm3, %v5576_v0  ;;  %v314_v11 = vrot.slane %v313_v2, 4  ;;  %v2220_v13 = vrot.slane %v2218_v4, 4  ;;  %v324_v14 = vshll.u32 %v195_v55, 16  ;;  %6288 = vmatpush3.bf16.msra.mxu1 %v6938_v39  ;;  %v198_v55 = vld [vmem:[%s7261_s27 + $0x34] sm:$0xf] }
  0x37   : > { %v2211_v12 = vor.u32 %v2210_v3, %v2207_v58  ;;  %6446 = vmatpush3.bf16.msra.mxu0 %v7278_v23  ;;  %v309_v16 = vsel %vm7288_vm2, %v304_v6, %v308_v47  ;;  %v2226_v17 = vrot.slane %v2224_v8, 5  ;;  %v323_v19 = vrot.slane %v321_v9, 4  ;;  %6289 = vmatprep.subr.bf16.mxu1 %v6941_v56  ;;  %v6943_v23 = vld [vmem:[%s9135_s1 + $0x18] sm:$0xff]  }
  0x38   : > { %v330_v21 = vshll.u32 %v196_v61, 16  ;;  %v319_v22 = vsel %vm7288_vm2, %v314_v11, %v318_v52  ;;  %v2221_v28 = vor.u32 %v2220_v13, %v2216_v7  ;;  %6447 = vmatprep.subr.bf16.mxu0 %v6937_v54  ;;  %v326_v30 = vrot.slane %v324_v14, 5  ;;  %v7406_v13 = vld [vmem:[%s9135_s1 + $0xc0] sm:$0xff]  }
  0x39   : > { %v2212_v24 = vrot.slane %v2211_v12, 4  ;;  %v5337_v33 = vcombine.low %v309_v16, %v319_v22  ;;  %v334_v35 = vshrl.u32 %v196_v61, 16  ;;  %v340_v36 = vshll.u32 %v232_v5, 16  ;;  %v233_v5 = vld [vmem:[%s7261_s27 + $0x38] sm:$0x1] }
  0x3a   : > { %v332_v34 = vrot.slane %v330_v21, 5  ;;  %v2222_v38 = vrot.slane %v2221_v28, 4  ;;  %v327_v39 = vor.u32 %v326_v30, %v323_v19  ;;  %v2229_v41 = vshrl.u32 %v5536_v10, 16  ;;  %6290 = vmatpush3.bf16.msra.mxu1 %v6941_v56  ;;  %v6946_v56 = vld [vmem:[%s9135_s1 + $0x40] sm:$0xff]   ;;  %v5539_v12 = vld [vmem:[%s7261_s27 + $0x3c] sm:$0xf] }
  0x3b   : > { %v2217_v37 = vsel %vm7288_vm2, %v2212_v24, %v2216_v7  ;;  %6257 = vmatprep.mubr.msk.bf16.mxu1 %vm712_vm3, %v5337_v33  ;;  %v336_v43 = vrot.slane %v334_v35, 4  ;;  %v342_v45 = vrot.slane %v340_v36, 5  ;;  %v2232_v46 = vshll.u32 %v5536_v10, 16  ;;  %6448 = vmatpush3.bf16.msra.mxu0 %v6937_v54  ;;  %v7411_v21 = vld [vmem:[%s7261_s27 + $0x40] sm:$0xf] }
  0x3c   : > { %v2238_v47 = vshll.u32 %v7366_v15, 16  ;;  %v2227_v50 = vsel %vm7288_vm2, %v2222_v38, %v2226_v17  ;;  %v328_v51 = vrot.slane %v327_v39, 4  ;;  %v2231_v52 = vrot.slane %v2229_v41, 4  ;;  %6449 = vmatprep.subr.bf16.mxu0 %v6939_v31  ;;  %6291 = vmatprep.subr.bf16.mxu1 %v6943_v23  ;;  %v7416_v33 = vld [vmem:[%s7261_s27 + $0x44] sm:$0x1] }
  0x3d   : > { %v2242_v53 = vshrl.u32 %v7366_v15, 16  ;;  %v5577_v18 = vcombine.low %v2217_v37, %v2227_v50  ;;  %v337_v57 = vor.u32 %v336_v43, %v332_v34  ;;  %v2234_v58 = vrot.slane %v2232_v46, 5  ;;  %v199_v41 = vld [vmem:[%s7261_s27 + $0x3c] sm:$0xf] }
  0x3e   : > { %v2240_v54 = vrot.slane %v2238_v47, 5  ;;  %v333_v59 = vsel %vm7288_vm2, %v328_v51, %v332_v34  ;;  %v2248_v0 = vshll.u32 %v7382_v40, 16  ;;  %v345_v2 = vshrl.u32 %v197_v49, 16  ;;  %6292 = vmatpush3.bf16.msra.mxu1 %v6943_v23 }
  0x3f   : > { %v2244_v61 = vrot.slane %v2242_v53, 4  ;;  %6417 = vmatprep.mubr.msk.bf16.mxu0 %vm712_vm3, %v5577_v18  ;;  %v338_v3 = vrot.slane %v337_v57, 4  ;;  %v2235_v4 = vor.u32 %v2234_v58, %v2231_v52  ;;  %v348_v6 = vshll.u32 %v197_v49, 16  ;;  %6450 = vmatpush3.bf16.msra.mxu0 %v6939_v31  ;;  %v200_v49 = vld [vmem:[%s7261_s27 + $0x40] sm:$0xf] }
  0x40   : > { %v354_v7 = vshll.u32 %v198_v55, 16  ;;  %v2250_v9 = vrot.slane %v2248_v0, 5  ;;  %v347_v10 = vrot.slane %v345_v2, 4  ;;  %v358_v11 = vshrl.u32 %v198_v55, 16  ;;  %6451 = vmatprep.subr.bf16.mxu0 %v6940_v42  ;;  %6325 = vmatprep.subr.bf16.mxu1 %v6946_v56  ;;  %v234_v56 = vld [vmem:[%s7261_s27 + $0x44] sm:$0x1] }
  0x41   : > { %v2245_v8 = vor.u32 %v2244_v61, %v2240_v54  ;;  %v343_v14 = vsel %vm7288_vm2, %v338_v3, %v342_v45  ;;  %v2236_v16 = vrot.slane %v2235_v4, 4  ;;  %v350_v17 = vrot.slane %v348_v6, 5  ;;  %v5542_v58 = vld [vmem:[%s7261_s27 + $0x48] sm:$0xf]  ;;  %v7435_v2 = vld [vmem:[%s7261_s27 + $0x4c] sm:$0xf] }
  0x42   : > { %v356_v19 = vrot.slane %v354_v7, 5  ;;  %v5338_v22 = vcombine.low %v333_v59, %v343_v14  ;;  %v360_v28 = vrot.slane %v358_v11, 4  ;;  %v364_v30 = vshll.u32 %v233_v5, 16  ;;  %v7438_v7 = vld [vmem:[%s7261_s27 + $0x50] sm:$0x1] }
  0x43   : > { %v2246_v24 = vrot.slane %v2245_v8, 4  ;;  %v2241_v31 = vsel %vm7288_vm2, %v2236_v16, %v2240_v54  ;;  %v351_v23 = vor.u32 %v350_v17, %v347_v10  ;;  %v2253_v34 = vshrl.u32 %v5539_v12, 16  ;;  %6452 = vmatpush3.bf16.msra.mxu0 %v6940_v42 }
  0x44   : > { %v2256_v35 = vshll.u32 %v5539_v12, 16  ;;  %6258 = vmatmul.mubr.msk.bf16.gmra.mrb[4].mxu1 %vm712_vm3, %v5338_v22  ;;  %v361_v37 = vor.u32 %v360_v28, %v356_v19  ;;  %v366_v38 = vrot.slane %v364_v30, 5  ;;  %v2262_v39 = vshll.u32 %v7411_v21, 16  ;;  %6485 = vmatprep.subr.bf16.mxu0 %v7406_v13 }
  0x45   : > { %v2251_v36 = vsel %vm7288_vm2, %v2246_v24, %v2250_v9  ;;  %v352_v45 = vrot.slane %v351_v23, 4  ;;  %v2255_v46 = vrot.slane %v2253_v34, 4  ;;  %v2266_v51 = vshrl.u32 %v7411_v21, 16 }
  0x46   : > { %v5578_v43 = vcombine.low %v2241_v31, %v2251_v36  ;;  %v2258_v47 = vrot.slane %v2256_v35, 5  ;;  %v362_v42 = vrot.slane %v361_v37, 4  ;;  %v2264_v50 = vrot.slane %v2262_v39, 5 }
  0x47   : > { %v2272_v52 = vshll.u32 %v7416_v33, 16  ;;  %v357_v53 = vsel %vm7288_vm2, %v352_v45, %v356_v19  ;;  %v369_v18 = vshrl.u32 %v199_v41, 16  ;;  %v372_v57 = vshll.u32 %v199_v41, 16  ;;  %v201_v19 = vld [vmem:[%s7261_s27 + $0x48] sm:$0xf] }
  0x48   : > { %6418 = vmatmul.mubr.msk.bf16.gmra.mrb[4].mxu0 %vm712_vm3, %v5578_v43  ;;  %v2259_v55 = vor.u32 %v2258_v47, %v2255_v46  ;;  %v367_v54 = vsel %vm7288_vm2, %v362_v42, %v366_v38  ;;  %v2268_v59 = vrot.slane %v2266_v51, 4  ;;  %v378_v0 = vshll.u32 %v200_v49, 16  ;;  %v202_v41 = vld [vmem:[%s7261_s27 + $0x4c] sm:$0xf] }
  0x49   : > { %v2274_v61 = vrot.slane %v2272_v52, 5  ;;  %v5339_v3 = vcombine.low %v357_v53, %v367_v54  ;;  %v371_v5 = vrot.slane %v369_v18, 4  ;;  %v374_v6 = vrot.slane %v372_v57, 5  ;;  %v5545_v57 = vld [vmem:[%s7261_s27 + $0x54] sm:$0xf] }
  0x4a   : > { %v2260_v4 = vrot.slane %v2259_v55, 4  ;;  %v2269_v8 = vor.u32 %v2268_v59, %v2264_v50  ;;  %v380_v9 = vrot.slane %v378_v0, 5  ;;  %v382_v10 = vshrl.u32 %v200_v49, 16  ;;  %v235_v49 = vld [vmem:[%s7261_s27 + $0x50] sm:$0x1] }
  0x4b   : > { %v388_v11 = vshll.u32 %v234_v56, 16  ;;  %6261 = vmatprep.mubr.msk.bf16.mxu1 %vm712_vm3, %v5339_v3  ;;  %v375_v14 = vor.u32 %v374_v6, %v371_v5  ;;  %v2277_v16 = vshrl.u32 %v5542_v58, 16  ;;  %v2280_v17 = vshll.u32 %v5542_v58, 16  ;;  %v7458_v0 = vld [vmem:[%s7261_s27 + $0x58] sm:$0xf] }
  0x4c   : > { %v2265_v12 = vsel %vm7288_vm2, %v2260_v4, %v2264_v50  ;;  %v2270_v22 = vrot.slane %v2269_v8, 4  ;;  %v384_v24 = vrot.slane %v382_v10, 4  ;;  %v2286_v30 = vshll.u32 %v7435_v2, 16 }
  0x4d   : > { %v390_v28 = vrot.slane %v388_v11, 5  ;;  %v376_v31 = vrot.slane %v375_v14, 4  ;;  %v2279_v23 = vrot.slane %v2277_v16, 4  ;;  %v2282_v34 = vrot.slane %v2280_v17, 5  ;;  %v7463_v11 = vld [vmem:[%s7261_s27 + $0x5c] sm:$0x1] }
  0x4e   : > { %v2290_v35 = vshrl.u32 %v7435_v2, 16  ;;  %v2275_v36 = vsel %vm7288_vm2, %v2270_v22, %v2274_v61  ;;  %v385_v37 = vor.u32 %v384_v24, %v380_v9  ;;  %v2288_v38 = vrot.slane %v2286_v30, 5  ;;  %v7471_v22 = vld [vmem:[%s7261_s27 + $0x54] sm:$0xf] }
  0x4f   : > { %v2296_v39 = vshll.u32 %v7438_v7, 16  ;;  %v5579_v43 = vcombine.low %v2265_v12, %v2275_v36  ;;  %v381_v45 = vsel %vm7288_vm2, %v376_v31, %v380_v9  ;;  %v2283_v46 = vor.u32 %v2282_v34, %v2279_v23  ;;  %v7474_v23 = vld [vmem:[%s7261_s27 + $0x58] sm:$0xf] }
  0x50   : > { %v2292_v47 = vrot.slane %v2290_v35, 4  ;;  %v386_v42 = vrot.slane %v385_v37, 4  ;;  %v393_v51 = vshrl.u32 %v201_v19, 16  ;;  %v396_v52 = vshll.u32 %v201_v19, 16 }
  0x51   : > { %v2298_v50 = vrot.slane %v2296_v39, 5  ;;  %6421 = vmatprep.mubr.msk.bf16.mxu0 %vm712_vm3, %v5579_v43  ;;  %v2284_v53 = vrot.slane %v2283_v46, 4  ;;  %v402_v56 = vshll.u32 %v202_v41, 16  ;;  %v406_v18 = vshrl.u32 %v202_v41, 16  ;;  %v5548_v46 = vld [vmem:[%s7261_s27 + $0x60] sm:$0xf] }
  0x52   : > { %v2293_v55 = vor.u32 %v2292_v47, %v2288_v38  ;;  %v391_v58 = vsel %vm7288_vm2, %v386_v42, %v390_v28  ;;  %v395_v54 = vrot.slane %v393_v51, 4  ;;  %v398_v59 = vrot.slane %v396_v52, 5 }
  0x53   : > { %v412_v61 = vshll.u32 %v235_v49, 16  ;;  %v5340_v3 = vcombine.low %v381_v45, %v391_v58  ;;  %v2289_v4 = vsel %vm7288_vm2, %v2284_v53, %v2288_v38  ;;  %v404_v6 = vrot.slane %v402_v56, 5  ;;  %v236_v38 = vld [vmem:[%s7261_s27 + $0x5c] sm:$0x1]  ;;  %v7489_v56 = vld [vmem:[%s7261_s27 + $0x64] sm:$0xf] }
  0x54   : > { %v2294_v5 = vrot.slane %v2293_v55, 4  ;;  %v399_v8 = vor.u32 %v398_v59, %v395_v54  ;;  %v408_v9 = vrot.slane %v406_v18, 4  ;;  %v2301_v12 = vshrl.u32 %v5545_v57, 16 }
  0x55   : > { %v414_v10 = vrot.slane %v412_v61, 5  ;;  %6262 = vmatmul.mubr.msk.bf16.gmra.mrb[8].mxu1 %vm712_vm3, %v5340_v3  ;;  %v2304_v16 = vshll.u32 %v5545_v57, 16  ;;  %v2310_v17 = vshll.u32 %v7458_v0, 16  ;;  %v2314_v19 = vshrl.u32 %v7458_v0, 16 }
  0x56   : > { %v2299_v14 = vsel %vm7288_vm2, %v2294_v5, %v2298_v50  ;;  %v400_v28 = vrot.slane %v399_v8, 4  ;;  %v409_v30 = vor.u32 %v408_v9, %v404_v6  ;;  %v2303_v31 = vrot.slane %v2301_v12, 4  ;;  %v7497_v8 = vld [vmem:[%s7261_s27 + $0x68] sm:$0x1]  ;;  %v7501_v12 = vld [vmem:[%s7261_s27 + $0x60] sm:$0xf] }
  0x57   : > { %v5580_v24 = vcombine.low %v2289_v4, %v2299_v14  ;;  %v2306_v34 = vrot.slane %v2304_v16, 5  ;;  %v2312_v35 = vrot.slane %v2310_v17, 5  ;;  %v2316_v36 = vrot.slane %v2314_v19, 4 }
  0x58   : > { %v2320_v37 = vshll.u32 %v7463_v11, 16  ;;  %v405_v39 = vsel %vm7288_vm2, %v400_v28, %v404_v6  ;;  %v410_v41 = vrot.slane %v409_v30, 4  ;;  %v417_v43 = vshrl.u32 %v7471_v22, 16 }
  0x59   : > { %6422 = vmatmul.mubr.msk.bf16.gmra.mrb[8].mxu0 %vm712_vm3, %v5580_v24  ;;  %v420_v45 = vshll.u32 %v7471_v22, 16  ;;  %v2307_v47 = vor.u32 %v2306_v34, %v2303_v31  ;;  %v2317_v49 = vor.u32 %v2316_v36, %v2312_v35  ;;  %v426_v50 = vshll.u32 %v7474_v23, 16  ;;  %v7504_v24 = vld [vmem:[%s7261_s27 + $0x64] sm:$0xf] }
  0x5a   : > { %v2322_v42 = vrot.slane %v2320_v37, 5  ;;  %v415_v51 = vsel %vm7288_vm2, %v410_v41, %v414_v10  ;;  %v419_v52 = vrot.slane %v417_v43, 4  ;;  %v430_v55 = vshrl.u32 %v7474_v23, 16 }
  0x5b   : > { %v422_v53 = vrot.slane %v420_v45, 5  ;;  %v5341_v18 = vcombine.low %v405_v39, %v415_v51  ;;  %v2308_v57 = vrot.slane %v2307_v47, 4  ;;  %v2318_v58 = vrot.slane %v2317_v49, 4  ;;  %v5611_v47 = vld [vmem:[%s7261_s27 + $0xc] sm:$0xe] }
  0x5c   : > { %v428_v54 = vrot.slane %v426_v50, 5  ;;  %v432_v61 = vrot.slane %v430_v55, 4  ;;  %v436_v3 = vshll.u32 %v236_v38, 16  ;;  %v2325_v4 = vshrl.u32 %v5548_v46, 16  ;;  %v237_v38 = vld [vmem:[%s7261_s27 + $0x68] sm:$0x1] }
  0x5d   : > { %v423_v59 = vor.u32 %v422_v53, %v419_v52  ;;  %6265 = vmatprep.mubr.msk.bf16.mxu1 %vm712_vm3, %v5341_v18  ;;  %v2313_v5 = vsel %vm7288_vm2, %v2308_v57, %v2312_v35  ;;  %v2323_v6 = vsel %vm7288_vm2, %v2318_v58, %v2322_v42  ;;  %v2328_v9 = vshll.u32 %v5548_v46, 16  ;;  %v7526_v58 = vld [vmem:[%s7261_s27 + $0x6c] sm:$0xf] }
  0x5e   : > { %v2334_v10 = vshll.u32 %v7489_v56, 16  ;;  %v5581_v14 = vcombine.low %v2313_v5, %v2323_v6  ;;  %v433_v17 = vor.u32 %v432_v61, %v428_v54  ;;  %v438_v19 = vrot.slane %v436_v3, 5 }
  0x5f   : > { %v424_v16 = vrot.slane %v423_v59, 4  ;;  %v2327_v28 = vrot.slane %v2325_v4, 4  ;;  %v2330_v30 = vrot.slane %v2328_v9, 5  ;;  %v2338_v34 = vshrl.u32 %v7489_v56, 16 }
  0x60   : > { %v2336_v31 = vrot.slane %v2334_v10, 5  ;;  %6425 = vmatprep.mubr.msk.bf16.mxu0 %vm712_vm3, %v5581_v14  ;;  %v434_v36 = vrot.slane %v433_v17, 4  ;;  %v2344_v37 = vshll.u32 %v7497_v8, 16  ;;  %v441_v39 = vshrl.u32 %v7501_v12, 16  ;;  %v7538_v17 = vld [vmem:[%s7261_s27 + $0x70] sm:$0xf] }
  0x61   : > { %v429_v35 = vsel %vm7288_vm2, %v424_v16, %v428_v54  ;;  %v2331_v41 = vor.u32 %v2330_v30, %v2327_v28  ;;  %v2340_v43 = vrot.slane %v2338_v34, 4  ;;  %v444_v45 = vshll.u32 %v7501_v12, 16  ;;  %v238_v34 = vld [vmem:[%s7261_s27 + $0x74] sm:$0x1] }
  0x62   : > { %v450_v46 = vshll.u32 %v7504_v24, 16  ;;  %v439_v49 = vsel %vm7288_vm2, %v434_v36, %v438_v19  ;;  %v2346_v42 = vrot.slane %v2344_v37, 5  ;;  %v443_v50 = vrot.slane %v441_v39, 4 }
  0x63   : > { %v454_v51 = vshrl.u32 %v7504_v24, 16  ;;  %v5342_v52 = vcombine.low %v429_v35, %v439_v49  ;;  %v2332_v53 = vrot.slane %v2331_v41, 4  ;;  %v2341_v55 = vor.u32 %v2340_v43, %v2336_v31  ;;  %v5612_v35 = vld [vmem:[%s7261_s27 + $0x18] sm:$0xe] }
  0x64   : > { %v446_v18 = vrot.slane %v444_v45, 5  ;;  %v452_v54 = vrot.slane %v450_v46, 5  ;;  %v460_v61 = vshll.u32 %v237_v38, 16  ;;  %v5627_v3 = vrot.slane %v5611_v47, 9  ;;  %v7555_v45 = vld [vmem:[%s7261_s27 + $0x78] sm:$0xf] }
  0x65   : > { %v456_v59 = vrot.slane %v454_v51, 4  ;;  %6266 = vmatmul.mubr.msk.bf16.gmra.mrb[12].mxu1 %vm712_vm3, %v5342_v52  ;;  %v2337_v4 = vsel %vm7288_vm2, %v2332_v53, %v2336_v31  ;;  %v2342_v5 = vrot.slane %v2341_v55, 4  ;;  %v2929_v9 = vrot.slane %v2927_v62, 4  ;;  %v239_v55 = vld [vmem:[%s7261_s27 + $0x80] sm:$0x1] }
  0x66   : > { %v447_v6 = vor.u32 %v446_v18, %v443_v50  ;;  %v462_v14 = vrot.slane %v460_v61, 5  ;;  %v2928_v16 = vsel %vm7521_vm6, %v5627_v3, %v2927_v62  ;;  %v465_v19 = vshrl.u32 %v7526_v58, 16 }
  0x67   : > { %v457_v10 = vor.u32 %v456_v59, %v452_v54  ;;  %v2347_v28 = vsel %vm7288_vm2, %v2342_v5, %v2346_v42  ;;  %v2931_v31 = vsel %vm7521_vm6, %v2929_v9, %v2930_v63  ;;  %v468_v25 = vshll.u32 %v7526_v58, 16  ;;  %v7566_v42 = vld [vmem:[%s7261_s27 + $0x7c] sm:$0xf]  ;;  %v7580_v5 = vld [vmem:[%s7261_s27 + $0x84] sm:$0xf] }
  0x68   : > { %v448_v30 = vrot.slane %v447_v6, 4  ;;  %v5582_v62 = vcombine.low %v2337_v4, %v2347_v28  ;;  %v5643_v37 = vcombine.low %v2928_v16, %v2931_v31  ;;  %v467_v38 = vrot.slane %v465_v19, 4 }
  0x69   : > { %v458_v36 = vrot.slane %v457_v10, 4  ;;  %v470_v41 = vrot.slane %v468_v25, 5  ;;  %v474_v43 = vshll.u32 %v7538_v17, 16  ;;  %v478_v26 = vshrl.u32 %v7538_v17, 16  ;;  %v7584_v10 = vld [vmem:[%s7261_s27 + $0x88] sm:$0xf] }
  0x6a   : > { %v453_v39 = vsel %vm7288_vm2, %v448_v30, %v452_v54  ;;  %6426 = vmatmul.mubr.msk.bf16.gmra.mrb[12].mxu0 %vm712_vm3, %v5582_v62  ;;  %v484_v46 = vshll.u32 %v238_v34, 16  ;;  %v5628_v47 = vrot.slane %v5612_v35, 9  ;;  %v2938_v49 = vsel %vm7521_vm6, %v7333_v32, %v2937_v27  ;;  %v5613_v32 = vld [vmem:[%s7261_s27 + $0x24] sm:$0xe]  ;;  %v6944_v35 = vld [vmem:[%s9135_s1 + $0xc8] sm:$0xff]  }
  0x6b   : > { %v463_v63 = vsel %vm7288_vm2, %v458_v36, %v462_v14  ;;  %6453 = vmatprep.mubr.msk.bf16.mxu0 %vm712_vm3, %v5643_v37  ;;  %v471_v51 = vor.u32 %v470_v41, %v467_v38  ;;  %v476_v52 = vrot.slane %v474_v43, 5  ;;  %v480_v53 = vrot.slane %v478_v26, 4  ;;  %v240_v37 = vld [vmem:[%s7261_s27 + $0x8c] sm:$0x1] }
  0x6c   : > { %v5343_v50 = vcombine.low %v453_v39, %v463_v63  ;;  %v486_v18 = vrot.slane %v484_v46, 5  ;;  %v2935_v1 = vsel %vm7521_vm6, %v5628_v47, %v2934_v20  ;;  %v489_v54 = vshrl.u32 %v7555_v45, 16  ;;  %v5614_v63 = vld [vmem:[%s7261_s27 + $0x30] sm:$0xe] }
  0x6d   : > { %v492_v27 = vshll.u32 %v7555_v45, 16  ;;  %v472_v59 = vrot.slane %v471_v51, 4  ;;  %v481_v61 = vor.u32 %v480_v53, %v476_v52  ;;  %v5644_v3 = vcombine.low %v2935_v1, %v2938_v49 }
  0x6e   : > { %6269 = vmatprep.mubr.msk.bf16.mxu1 %vm712_vm3, %v5343_v50  ;;  %v498_v4 = vshll.u32 %v7566_v42, 16  ;;  %v491_v6 = vrot.slane %v489_v54, 4  ;;  %v502_v9 = vshrl.u32 %v7566_v42, 16  ;;  %v508_v20 = vshll.u32 %v239_v55, 16 }
  0x6f   : > { %v494_v60 = vrot.slane %v492_v27, 5  ;;  %v477_v14 = vsel %vm7288_vm2, %v472_v59, %v476_v52  ;;  %v482_v16 = vrot.slane %v481_v61, 4  ;;  %v5629_v28 = vrot.slane %v5613_v32, 9  ;;  %v7614_v27 = vld [vmem:[%s7261_s27 + $0x90] sm:$0xf] }
  0x70   : > { %v500_v19 = vrot.slane %v498_v4, 5  ;;  %v504_v31 = vrot.slane %v502_v9, 4  ;;  %v510_v34 = vrot.slane %v508_v20, 5  ;;  %v2941_v25 = vrot.slane %v7340_v44, 5  ;;  %v7617_v32 = vld [vmem:[%s7261_s27 + $0x94] sm:$0xf] }
  0x71   : > { %v495_v30 = vor.u32 %v494_v60, %v491_v6  ;;  %v487_v62 = vsel %vm7288_vm2, %v482_v16, %v486_v18  ;;  %v2944_v36 = vrot.slane %v7344_v48, 5  ;;  %v513_v38 = vshrl.u32 %v7580_v5, 16 }
  0x72   : > { %v516_v39 = vshll.u32 %v7580_v5, 16  ;;  %v5344_v41 = vcombine.low %v477_v14, %v487_v62  ;;  %6454 = vmatmul.mubr.msk.bf16.vlgmr.msra.gmra.mrb[0].mxu0 %vm712_vm3, %v5644_v3  ;;  %v505_v26 = vor.u32 %v504_v31, %v500_v19  ;;  %v2942_v44 = vsel %vm7521_vm6, %v5629_v28, %v2941_v25  ;;  %v241_v14 = vld [vmem:[%s7261_s27 + $0x98] sm:$0x1]  ;;  %v5615_v31 = vld [vmem:[%s7261_s27 + $0x3c] sm:$0xe] }
  0x73   : > { %v496_v43 = vrot.slane %v495_v30, 4  ;;  %6486 = vmatpush3.bf16.msra.mxu0 %v7406_v13  ;;  %v2943_v46 = vrot.slane %v2941_v25, 4  ;;  %v515_v48 = vrot.slane %v513_v38, 4  ;;  %v522_v49 = vshll.u32 %v7584_v10, 16  ;;  %v6947_v13 = vld [vmem:[%s9135_s1 + $0xd0] sm:$0xff]  }
  0x74   : > { %v518_v47 = vrot.slane %v516_v39, 5  ;;  %6270 = vmatmul.mubr.msk.bf16.gmra.mrb[16].mxu1 %vm712_vm3, %v5344_v41  ;;  %v506_v51 = vrot.slane %v505_v26, 4  ;;  %v526_v52 = vshrl.u32 %v7584_v10, 16  ;;  %v532_v53 = vshll.u32 %v240_v37, 16  ;;  %6487 = vmatprep.subr.bf16.mxu0 %v6944_v35  ;;  %v7639_v62 = vld [vmem:[%s7261_s27 + $0x9c] sm:$0xf] }
  0x75   : > { %v501_v50 = vsel %vm7288_vm2, %v496_v43, %v500_v19  ;;  %v2945_v55 = vsel %vm7521_vm6, %v2943_v46, %v2944_v36  ;;  %v524_v1 = vrot.slane %v522_v49, 5  ;;  %v5630_v54 = vrot.slane %v5614_v63, 9  ;;  %v7642_v41 = vld [vmem:[%s7261_s27 + $0xa0] sm:$0xf]  ;;  %v242_v46 = vld [vmem:[%s7261_s27 + $0xa4] sm:$0x1] }
  0x76   : > { %v519_v18 = vor.u32 %v518_v47, %v515_v48  ;;  %v511_v59 = vsel %vm7288_vm2, %v506_v51, %v510_v34  ;;  %v5645_v61 = vcombine.low %v2942_v44, %v2945_v55  ;;  %v528_v3 = vrot.slane %v526_v52, 4  ;;  %v7653_v51 = vld [vmem:[%s9135_s1 + $0xe0] sm:$0xff]  }
  0x77   : > { %v534_v4 = vrot.slane %v532_v53, 5  ;;  %v5345_v6 = vcombine.low %v501_v50, %v511_v59  ;;  %v2948_v9 = vrot.slane %v7366_v15, 5  ;;  %v2951_v20 = vrot.slane %v7382_v40, 5  ;;  %6488 = vmatpush3.bf16.msra.mxu0 %v6944_v35  ;;  %v6953_v15 = vld [vmem:[%s9135_s1 + $0xd8] sm:$0xff]  }
  0x78   : > { %v520_v60 = vrot.slane %v519_v18, 4  ;;  %6457 = vmatprep.mubr.msk.bf16.mxu0 %vm712_vm3, %v5645_v61  ;;  %v529_v16 = vor.u32 %v528_v3, %v524_v1  ;;  %v537_v19 = vshrl.u32 %v7614_v27, 16  ;;  %v540_v28 = vshll.u32 %v7614_v27, 16  ;;  %6489 = vmatprep.subr.bf16.mxu0 %v6947_v13  ;;  %v5616_v18 = vld [vmem:[%s7261_s27 + $0x48] sm:$0xe] }
  0x79   : > { %v546_v30 = vshll.u32 %v7617_v32, 16  ;;  %6273 = vmatprep.mubr.msk.bf16.mxu1 %vm712_vm3, %v5345_v6  ;;  %v2949_v34 = vsel %vm7521_vm6, %v5630_v54, %v2948_v9  ;;  %v2950_v25 = vrot.slane %v2948_v9, 4  ;;  %v550_v35 = vshrl.u32 %v7617_v32, 16  ;;  %v7662_v61 = vld [vmem:[%s7261_s27 + $0xa8] sm:$0xf] }
  0x7a   : > { %v525_v40 = vsel %vm7288_vm2, %v520_v60, %v524_v1  ;;  %v530_v36 = vrot.slane %v529_v16, 4  ;;  %v539_v37 = vrot.slane %v537_v19, 4  ;;  %v542_v38 = vrot.slane %v540_v28, 5  ;;  %v7669_v60 = vld [vmem:[%s7261_s27 + $0xac] sm:$0xf] }
  0x7b   : > { %v548_v39 = vrot.slane %v546_v30, 5  ;;  %v2952_v43 = vsel %vm7521_vm6, %v2950_v25, %v2951_v20  ;;  %v552_v26 = vrot.slane %v550_v35, 4  ;;  %v556_v44 = vshll.u32 %v241_v14, 16  ;;  %6490 = vmatpush3.bf16.msra.mxu0 %v6947_v13  ;;  %v243_v35 = vld [vmem:[%s7261_s27 + $0xb0] sm:$0x1] }
  0x7c   : > { %v5631_v63 = vrot.slane %v5615_v31, 9  ;;  %v535_v48 = vsel %vm7288_vm2, %v530_v36, %v534_v4  ;;  %v5646_v47 = vcombine.low %v2949_v34, %v2952_v43  ;;  %v543_v49 = vor.u32 %v542_v38, %v539_v37  ;;  %6491 = vmatprep.subr.bf16.mxu0 %v6953_v15  ;;  %v5617_v36 = vld [vmem:[%s7261_s27 + $0x54] sm:$0xe] }
  0x7d   : > { %v2955_v50 = vrot.slane %v7411_v21, 5  ;;  %v5346_v52 = vcombine.low %v525_v40, %v535_v48  ;;  %v553_v53 = vor.u32 %v552_v26, %v548_v39  ;;  %v558_v55 = vrot.slane %v556_v44, 5 }
  0x7e   : > { %v2958_v13 = vrot.slane %v7416_v33, 5  ;;  %6458 = vmatmul.mubr.msk.bf16.gmra.mrb[4].mxu0 %vm712_vm3, %v5646_v47  ;;  %v544_v1 = vrot.slane %v543_v49, 4  ;;  %v561_v59 = vshrl.u32 %v7639_v62, 16  ;;  %v564_v4 = vshll.u32 %v7639_v62, 16 }
  0x7f   : > { %v2956_v54 = vsel %vm7521_vm6, %v5631_v63, %v2955_v50  ;;  %v2957_v21 = vrot.slane %v2955_v50, 4  ;;  %6274 = vmatmul.mubr.msk.bf16.gmra.mrb[20].mxu1 %vm712_vm3, %v5346_v52  ;;  %v554_v3 = vrot.slane %v553_v53, 4  ;;  %v570_v6 = vshll.u32 %v7642_v41, 16  ;;  %6492 = vmatpush3.bf16.msra.mxu0 %v6953_v15  ;;  %v7691_v50 = vld [vmem:[%s7261_s27 + $0xb4] sm:$0xf] }
  0x80   : > { %v574_v33 = vshrl.u32 %v7642_v41, 16  ;;  %v549_v9 = vsel %vm7288_vm2, %v544_v1, %v548_v39  ;;  %v563_v14 = vrot.slane %v561_v59, 4  ;;  %v580_v16 = vshll.u32 %v242_v46, 16  ;;  %6525 = vmatprep.subr.bf16.mxu0 %v7653_v51 }
  0x81   : > { %v2959_v20 = vsel %vm7521_vm6, %v2957_v21, %v2958_v13  ;;  %v559_v19 = vsel %vm7288_vm2, %v554_v3, %v558_v55  ;;  %v566_v30 = vrot.slane %v564_v4, 5  ;;  %v572_v31 = vrot.slane %v570_v6, 5  ;;  %v7694_v13 = vld [vmem:[%s7261_s27 + $0xb8] sm:$0xf] }
  0x82   : > { %v5647_v28 = vcombine.low %v2956_v54, %v2959_v20  ;;  %v5347_v40 = vcombine.low %v549_v9, %v559_v19  ;;  %v576_v34 = vrot.slane %v574_v33, 4  ;;  %v582_v25 = vrot.slane %v580_v16, 5  ;;  %v244_v16 = vld [vmem:[%s7261_s27 + $0xbc] sm:$0x1]  ;;  %v5618_v19 = vld [vmem:[%s7261_s27 + $0x60] sm:$0xe] }
  0x83   : > { %v5632_v15 = vrot.slane %v5616_v18, 9  ;;  %v567_v37 = vor.u32 %v566_v30, %v563_v14  ;;  %v2962_v38 = vrot.slane %v7435_v2, 5  ;;  %v2965_v39 = vrot.slane %v7438_v7, 5 }
  0x84   : > { %6461 = vmatprep.mubr.msk.bf16.mxu0 %vm712_vm3, %v5647_v28  ;;  %v585_v43 = vshrl.u32 %v7662_v61, 16  ;;  %6277 = vmatprep.mubr.msk.bf16.mxu1 %vm712_vm3, %v5347_v40  ;;  %v577_v26 = vor.u32 %v576_v34, %v572_v31  ;;  %v588_v44 = vshll.u32 %v7662_v61, 16  ;;  %v594_v63 = vshll.u32 %v7669_v60, 16 }
  0x85   : > { %v598_v46 = vshrl.u32 %v7669_v60, 16  ;;  %v568_v48 = vrot.slane %v567_v37, 4  ;;  %v2963_v47 = vsel %vm7521_vm6, %v5632_v15, %v2962_v38  ;;  %v2964_v49 = vrot.slane %v2962_v38, 4  ;;  %v5552_v15 = vld [vmem:[%s7261_s27 + $0x70] sm:$0xf] }
  0x86   : > { %v587_v2 = vrot.slane %v585_v43, 4  ;;  %v578_v7 = vrot.slane %v577_v26, 4  ;;  %v590_v52 = vrot.slane %v588_v44, 5  ;;  %v596_v53 = vrot.slane %v594_v63, 5  ;;  %v5619_v43 = vld [vmem:[%s7261_s27 + $0x6c] sm:$0xe] }
  0x87   : > { %v600_v55 = vrot.slane %v598_v46, 4  ;;  %v573_v18 = vsel %vm7288_vm2, %v568_v48, %v572_v31  ;;  %v2966_v1 = vsel %vm7521_vm6, %v2964_v49, %v2965_v39  ;;  %v604_v54 = vshll.u32 %v243_v35, 16  ;;  %v5553_v35 = vld [vmem:[%s7261_s27 + $0x74] sm:$0x1] }
  0x88   : > { %v5633_v21 = vrot.slane %v5617_v36, 9  ;;  %v583_v59 = vsel %vm7288_vm2, %v578_v7, %v582_v25  ;;  %v5648_v3 = vcombine.low %v2963_v47, %v2966_v1  ;;  %v591_v4 = vor.u32 %v590_v52, %v587_v2 }
  0x89   : > { %v601_v6 = vor.u32 %v600_v55, %v596_v53  ;;  %v5348_v33 = vcombine.low %v573_v18, %v583_v59  ;;  %v606_v9 = vrot.slane %v604_v54, 5  ;;  %v2969_v20 = vrot.slane %v7458_v0, 5  ;;  %v5620_v59 = vld [vmem:[%s7261_s27 + $0x78] sm:$0xe] }
  0x8a   : > { %v2972_v14 = vrot.slane %v7463_v11, 5  ;;  %6462 = vmatmul.mubr.msk.bf16.gmra.mrb[8].mxu0 %vm712_vm3, %v5648_v3  ;;  %v592_v28 = vrot.slane %v591_v4, 4  ;;  %v609_v31 = vshrl.u32 %v7691_v50, 16  ;;  %v612_v40 = vshll.u32 %v7691_v50, 16 }
  0x8b   : > { %v602_v30 = vrot.slane %v601_v6, 4  ;;  %6278 = vmatmul.mubr.msk.bf16.gmra.mrb[24].mxu1 %vm712_vm3, %v5348_v33  ;;  %v2970_v34 = vsel %vm7521_vm6, %v5633_v21, %v2969_v20  ;;  %v2971_v25 = vrot.slane %v2969_v20, 4  ;;  %v618_v0 = vshll.u32 %v7694_v13, 16  ;;  %v7731_v6 = vld [vmem:[%s7261_s27 + $0x7c] sm:$0xf] }
  0x8c   : > { %v622_v11 = vshrl.u32 %v7694_v13, 16  ;;  %v597_v36 = vsel %vm7288_vm2, %v592_v28, %v596_v53  ;;  %v611_v38 = vrot.slane %v609_v31, 4  ;;  %v614_v39 = vrot.slane %v612_v40, 5  ;;  %v7011_v28 = vld [vmem:[%s7261_s27] sm:$0xf] }
  0x8d   : > { %v607_v37 = vsel %vm7288_vm2, %v602_v30, %v606_v9  ;;  %v2973_v44 = vsel %vm7521_vm6, %v2971_v25, %v2972_v14  ;;  %v620_v63 = vrot.slane %v618_v0, 5  ;;  %v628_v49 = vshll.u32 %v244_v16, 16  ;;  %v5558_v14 = vld [vmem:[%s7261_s27 + $0x88] sm:$0xf]  ;;  %v7747_v30 = vld [vmem:[%s7261_s27 + $0x4] sm:$0xf] }
  0x8e   : > { %v5349_v26 = vcombine.low %v597_v36, %v607_v37  ;;  %v624_v46 = vrot.slane %v622_v11, 4  ;;  %v5649_v48 = vcombine.low %v2970_v34, %v2973_v44  ;;  %v615_v47 = vor.u32 %v614_v39, %v611_v38  ;;  %v5559_v40 = vld [vmem:[%s7261_s27 + $0x8c] sm:$0x1]  ;;  %v5621_v34 = vld [vmem:[%s7261_s27 + $0x84] sm:$0xe] }
  0x8f   : > { %v5634_v2 = vrot.slane %v5618_v19, 9  ;;  %v2976_v52 = vrot.slane %v7489_v56, 5  ;;  %v2979_v53 = vrot.slane %v7497_v8, 5  ;;  %v5635_v55 = vrot.slane %v5619_v43, 9  ;;  %v7734_v8 = vld [vmem:[%s7261_s27 + $0x80] sm:$0x1] }
  0x90   : > { %6281 = vmatprep.mubr.msk.bf16.mxu1 %vm712_vm3, %v5349_v26  ;;  %v625_v7 = vor.u32 %v624_v46, %v620_v63  ;;  %6465 = vmatprep.mubr.msk.bf16.mxu0 %vm712_vm3, %v5649_v48  ;;  %v616_v18 = vrot.slane %v615_v47, 4  ;;  %v630_v1 = vrot.slane %v628_v49, 5  ;;  %v2983_v54 = vrot.slane %v5552_v15, 5  ;;  %v5561_v15 = vld [vmem:[%s7261_s27 + $0x94] sm:$0xf] }
  0x91   : > { %v2986_v21 = vrot.slane %v5553_v35, 5  ;;  %v2977_v4 = vsel %vm7521_vm6, %v5634_v2, %v2976_v52  ;;  %v2978_v56 = vrot.slane %v2976_v52, 4  ;;  %v5371_v31 = vcombine.low %v7011_v28, %v7747_v30  ;;  %v5562_v37 = vld [vmem:[%s7261_s27 + $0x98] sm:$0x1]  ;;  %v5622_v38 = vld [vmem:[%s7261_s27 + $0x90] sm:$0xe] }
  0x92   : > { %v626_v3 = vrot.slane %v625_v7, 4  ;;  %v621_v33 = vsel %vm7288_vm2, %v616_v18, %v620_v63  ;;  %v2984_v9 = vsel %vm7521_vm6, %v5635_v55, %v2983_v54  ;;  %v2985_v20 = vrot.slane %v2983_v54, 4  ;;  %v5564_v44 = vld [vmem:[%s7261_s27 + $0xa0] sm:$0xf]  ;;  %v5565_v2 = vld [vmem:[%s7261_s27 + $0xa4] sm:$0x1] }
  0x93   : > { %v2980_v19 = vsel %vm7521_vm6, %v2978_v56, %v2979_v53  ;;  %v5636_v36 = vrot.slane %v5620_v59, 9  ;;  %v2990_v39 = vrot.slane %v7731_v6, 5  ;;  %v2993_v43 = vrot.slane %v7734_v8, 5  ;;  %v7013_v7 = vld [vmem:[%s7261_s27 + $0xc] sm:$0xf] }
  0x94   : > { %v631_v16 = vsel %vm7288_vm2, %v626_v3, %v630_v1  ;;  %v5650_v0 = vcombine.low %v2977_v4, %v2980_v19  ;;  %v2987_v11 = vsel %vm7521_vm6, %v2985_v20, %v2986_v21  ;;  %v5637_v26 = vrot.slane %v5621_v34, 9  ;;  %v7769_v52 = vld [vmem:[%s7261_s27 + $0x10] sm:$0xf]  ;;  %v5623_v1 = vld [vmem:[%s7261_s27 + $0x9c] sm:$0xe] }
  0x95   : > { %v5350_v25 = vcombine.low %v621_v33, %v631_v16  ;;  %v5651_v35 = vcombine.low %v2984_v9, %v2987_v11  ;;  %v2997_v63 = vrot.slane %v5558_v14, 5  ;;  %v3000_v46 = vrot.slane %v5559_v40, 5  ;;  %v7015_v21 = vld [vmem:[%s7261_s27 + $0x18] sm:$0xf]  ;;  %v7779_v59 = vld [vmem:[%s7261_s27 + $0x1c] sm:$0xf] }
  0x96   : > { %6466 = vmatmul.mubr.msk.bf16.gmra.mrb[12].mxu0 %vm712_vm3, %v5650_v0  ;;  %v2991_v48 = vsel %vm7521_vm6, %v5636_v36, %v2990_v39  ;;  %v2992_v47 = vrot.slane %v2990_v39, 4  ;;  %v3004_v49 = vrot.slane %v5561_v15, 5  ;;  %v5372_v53 = vcombine.low %v7013_v7, %v7769_v52  ;;  %v6952_v33 = vld [vmem:[%s9135_s1 + $0x48] sm:$0xff]   ;;  %v5568_v0 = vld [vmem:[%s7261_s27 + $0xb0] sm:$0x1]  ;;  %v7017_v11 = vld [vmem:[%s9135_s1 + $0x40] sm:$0xff]  }
  0x97   : > { %6282 = vmatmul.mubr.msk.bf16.gmra.mrb[28].mxu1 %vm712_vm3, %v5350_v25  ;;  %6469 = vmatprep.mubr.msk.bf16.mxu0 %vm712_vm3, %v5651_v35  ;;  %v2998_v55 = vsel %vm7521_vm6, %v5637_v26, %v2997_v63  ;;  %v2999_v18 = vrot.slane %v2997_v63, 4  ;;  %v5373_v3 = vcombine.low %v7015_v21, %v7779_v59  ;;  %v5638_v4 = vrot.slane %v5622_v38, 9  ;;  %v5567_v40 = vld [vmem:[%s7261_s27 + $0xac] sm:$0xf]  ;;  %v5570_v25 = vld [vmem:[%s7261_s27 + $0xb8] sm:$0xf] }
  0x98   : > { %6293 = vmatprep.mubr.msk.bf16.mxu1 %vm712_vm3, %v5371_v31  ;;  %v2994_v54 = vsel %vm7521_vm6, %v2992_v47, %v2993_v43  ;;  %v3007_v56 = vrot.slane %v5562_v37, 5  ;;  %v3006_v14 = vrot.slane %v3004_v49, 4  ;;  %v3011_v16 = vrot.slane %v5564_v44, 5  ;;  %v5624_v36 = vld [vmem:[%s7261_s27 + $0xa8] sm:$0xe]  ;;  %v6958_v26 = vld [vmem:[%s9135_s1 + $0x50] sm:$0xff]  }
  0x99   : > { %v5652_v9 = vcombine.low %v2991_v48, %v2994_v54  ;;  %v3001_v20 = vsel %vm7521_vm6, %v2999_v18, %v3000_v46  ;;  %v5639_v28 = vrot.slane %v5623_v1, 9  ;;  %v3014_v31 = vrot.slane %v5565_v2, 5  ;;  %v5571_v44 = vld [vmem:[%s7261_s27 + $0xbc] sm:$0x1]  ;;  %v5625_v63 = vld [vmem:[%s7261_s27 + $0xb4] sm:$0xe] }
  0x9a   : > { %v5653_v19 = vcombine.low %v2998_v55, %v3001_v20  ;;  %v3013_v34 = vrot.slane %v3011_v16, 4  ;;  %v3005_v15 = vsel %vm7521_vm6, %v5638_v4, %v3004_v49  ;;  %v3008_v35 = vsel %vm7521_vm6, %v3006_v14, %v3007_v56  ;;  %v7018_v46 = vld [vmem:[%s7261_s27 + $0x24] sm:$0xf]  ;;  %v7813_v48 = vld [vmem:[%s7261_s27 + $0x28] sm:$0xf] }
  0x9b   : > { %v3018_v37 = vrot.slane %v5567_v40, 5  ;;  %v3012_v38 = vsel %vm7521_vm6, %v5639_v28, %v3011_v16  ;;  %v3025_v43 = vrot.slane %v5570_v25, 5  ;;  %v5374_v47 = vcombine.low %v7018_v46, %v7813_v48  ;;  %v7020_v2 = vld [vmem:[%s7261_s27 + $0x30] sm:$0xf]  ;;  %v7818_v7 = vld [vmem:[%s7261_s27 + $0x34] sm:$0xf] }
  0x9c   : > { %v3015_v39 = vsel %vm7521_vm6, %v3013_v34, %v3014_v31  ;;  %v5654_v49 = vcombine.low %v3005_v15, %v3008_v35  ;;  %v5640_v18 = vrot.slane %v5624_v36, 9  ;;  %v3021_v54 = vrot.slane %v5568_v0, 5  ;;  %v5573_v56 = vld [vmem:[%s7261_s27 + $0xc4] sm:$0xf]  ;;  %v5626_v14 = vld [vmem:[%s7261_s27 + $0xc0] sm:$0xe] }
  0x9d   : > { %v5655_v55 = vcombine.low %v3012_v38, %v3015_v39  ;;  %v3020_v1 = vrot.slane %v3018_v37, 4  ;;  %v5641_v21 = vrot.slane %v5625_v63, 9  ;;  %v3028_v4 = vrot.slane %v5571_v44, 5  ;;  %v5574_v31 = vld [vmem:[%s7261_s27 + $0xc8] sm:$0x1]  ;;  %v7842_v40 = vld [vmem:[%s9135_s1 + $0x60] sm:$0xff]  }
  0x9e   : > { %6470 = vmatmul.mubr.msk.bf16.gmra.mrb[16].mxu0 %vm712_vm3, %v5652_v9  ;;  %v6968_v9 = vld [vmem:[%s9135_s1 + $0x58] sm:$0xff]   ;;  %v3032_v16 = vrot.slane %v5573_v56, 5  ;;  %v7846_v25 = vld [vmem:[%s7261_s27 + $0x40] sm:$0xf]  ;;  %v5642_v15 = vrot.slane %v5626_v14, 9  ;;  %v2382_v63 = vshll.u32 %v7731_v6, 16 }
  0x9f   : > { %6294 = vmatmul.mubr.msk.bf16.vlgmr.msra.gmra.mrb[0].mxu1 %vm712_vm3, %v5372_v53  ;;  %6473 = vmatprep.mubr.msk.bf16.mxu0 %vm712_vm3, %v5653_v19  ;;  %v5375_v53 = vcombine.low %v7020_v2, %v7818_v7  ;;  %v3022_v20 = vsel %vm7521_vm6, %v3020_v1, %v3021_v54  ;;  %v3026_v19 = vsel %vm7521_vm6, %v5641_v21, %v3025_v43  ;;  %v7022_v34 = vld [vmem:[%s7261_s27 + $0x3c] sm:$0xf]  ;;  %v7024_v35 = vld [vmem:[%s7261_s27 + $0x48] sm:$0xf]  ;;  %v7851_v36 = vld [vmem:[%s7261_s27 + $0x4c] sm:$0xf] }
  0xa0   : > { %6326 = vmatpush3.bf16.msra.mxu1 %v7017_v11  ;;  %6297 = vmatprep.mubr.msk.bf16.mxu1 %vm712_vm3, %v5373_v3  ;;  %v3027_v3 = vrot.slane %v3025_v43, 4  ;;  %v5376_v0 = vcombine.low %v7022_v34, %v7846_v25  ;;  %v3034_v39 = vrot.slane %v3032_v16, 4  ;;  %v3035_v43 = vrot.slane %v5574_v31, 5  ;;  %v1238_v56 = vld [vmem:[%s7261_s27 + $0x24] sm:$0xe] }
  0xa1   : > { %6327 = vmatprep.subr.bf16.mxu1 %v6952_v33  ;;  %v2386_v46 = vshrl.u32 %v7731_v6, 16  ;;  %v5379_v2 = vcombine.low %v7501_v12, %v7504_v24  ;;  %v7871_v1 = vrot.slane %v2382_v63, 5  ;;  %v1295_v21 = vrot.slane %v7769_v52, 5  ;;  %v1236_v12 = vld [vmem:[%s7261_s27 + $0xc] sm:$0xe] }
  0xa2   : > { %v3029_v28 = vsel %vm7521_vm6, %v3027_v3, %v3028_v4  ;;  %v3036_v44 = vsel %vm7521_vm6, %v3034_v39, %v3035_v43  ;;  %v7027_v24 = vld [vmem:[%s7261_s27 + $0x14] sm:$0x1]  ;;  %v1237_v3 = vld [vmem:[%s7261_s27 + $0x18] sm:$0xe]  ;;  %v1302_v52 = vrot.slane %v7779_v59, 5  ;;  %v2392_v4 = vshll.u32 %v7734_v8, 16 }
  0xa3   : > { %v5657_v38 = vcombine.low %v3026_v19, %v3029_v28  ;;  %9155 = vst [vmem:[#allocation5_spill] sm:$0xff] %v7871_v1  ;;  %v7873_v54 = vrot.slane %v2386_v46, 4  ;;  %v1298_v6 = vrot.slane %v7027_v24, 5  ;;  %v5381_v19 = vcombine.low %v7555_v45, %v7566_v42  ;;  %v6964_v59 = vld [vmem:[%s7261_s27 + $0x30] sm:$0xff]   ;;  %v6970_v8 = vld [vmem:[%s9135_s1 + $0xe8] sm:$0xff]  }
  0xa4   : > { %6328 = vmatpush3.bf16.msra.mxu1 %v6952_v33  ;;  %v3019_v33 = vsel %vm7521_vm6, %v5640_v18, %v3018_v37  ;;  %v5377_v37 = vcombine.low %v7024_v35, %v7851_v36  ;;  %v5409_v31 = vrot.slane %v1237_v3, 9  ;;  %v1239_v34 = vld [vmem:[%s7261_s27 + $0x30] sm:$0xe]  ;;  %v5382_v35 = vcombine.low %v7580_v5, %v7584_v10  ;;  %v5747_v24 = vld [vmem:[%s7261_s27 + $0x18] sm:$0xf] }
  0xa5   : > { %6329 = vmatprep.subr.bf16.mxu1 %v6958_v26  ;;  %v5656_v11 = vcombine.low %v3019_v33, %v3022_v20  ;;  %v5380_v33 = vcombine.low %v7526_v58, %v7538_v17  ;;  %v6962_v20 = vld [vmem:[%s7261_s27 + $0x24] sm:$0xff]   ;;  %v5410_v58 = vrot.slane %v1238_v56, 9  ;;  %v1316_v17 = vrot.slane %v7818_v7, 5 }
  0xa6   : > { %6474 = vmatmul.mubr.msk.bf16.gmra.mrb[20].mxu0 %vm712_vm3, %v5654_v49  ;;  %v5383_v45 = vcombine.low %v7614_v27, %v7617_v32  ;;  %v5384_v39 = vcombine.low %v7639_v62, %v7642_v41  ;;  %v7035_v10 = vld [vmem:[%s7261_s27 + $0x64] sm:$0xf] }
  0xa7   : > { %6298 = vmatmul.mubr.msk.bf16.gmra.mrb[4].mxu1 %vm712_vm3, %v5374_v47  ;;  %6477 = vmatprep.mubr.msk.bf16.mxu0 %vm712_vm3, %v5655_v55  ;;  %v5378_v47 = vcombine.low %v7471_v22, %v7474_v23  ;;  %v7026_v55 = vld [vmem:[%s7261_s27 + $0x8] sm:$0x1]  ;;  %v1235_v22 = vld [vmem:[%s7261_s27] sm:$0xe]  ;;  %v1288_v23 = vrot.slane %v7747_v30, 5 }
  0xa8   : > { %6301 = vmatprep.mubr.msk.bf16.mxu1 %vm712_vm3, %v5375_v53  ;;  %6330 = vmatpush3.bf16.msra.mxu1 %v6958_v26  ;;  %v3033_v26 = vsel %vm7521_vm6, %v5642_v15, %v3032_v16  ;;  %v6959_v53 = vld [vmem:[%s7261_s27 + $0x18] sm:$0xff]   ;;  %v1291_v18 = vrot.slane %v7026_v55, 5  ;;  %v5407_v14 = vrot.slane %v1235_v22, 9  ;;  %v5408_v16 = vrot.slane %v1236_v12, 9  ;;  %v1241_v22 = vld [vmem:[%s7261_s27 + $0x48] sm:$0xe] }
  0xa9   : > { %6331 = vmatprep.subr.bf16.mxu1 %v6968_v9  ;;  %v5658_v49 = vcombine.low %v3033_v26, %v3036_v44  ;;  %v1290_v28 = vrot.slane %v1288_v23, 4  ;;  %v1323_v26 = vrot.slane %v7846_v25, 5  ;;  %v7919_v44 = vrot.slane %v2392_v4, 5  ;;  %v1240_v25 = vld [vmem:[%s7261_s27 + $0x3c] sm:$0xe] }
  0xaa   : > { %v7912_v43 = vsel %vm7521_vm6, %v5407_v14, %v1288_v23  ;;  %v7916_v7 = vsel %vm7521_vm6, %v5408_v16, %v1295_v21  ;;  %v1318_v55 = vrot.slane %v1316_v17, 4  ;;  %v5412_v3 = vrot.slane %v1240_v25, 9  ;;  %v7031_v4 = vld [vmem:[%s7261_s27 + $0x44] sm:$0x1]  ;;  %v6969_v14 = vld [vmem:[%s7261_s27 + $0x48] sm:$0xff]  }
  0xab   : > { %9156 = vst [vmem:[#allocation6_spill] sm:$0xff] %v7919_v44  ;;  %v7925_v63 = vsel %vm7521_vm6, %v1290_v28, %v1291_v18  ;;  %v7030_v18 = vld [vmem:[%s7261_s27 + $0x38] sm:$0x1]  ;;  %v1326_v56 = vrot.slane %v7031_v4, 5  ;;  %v7973_v28 = vld [vmem:[%s7261_s27 + $0x54] sm:$0xe] }
  0xac   : > { %6332 = vmatpush3.bf16.msra.mxu1 %v6968_v9  ;;  %v1309_v9 = vrot.slane %v7813_v48, 5  ;;  %v1297_v48 = vrot.slane %v1295_v21, 4  ;;  %v1319_v21 = vrot.slane %v7030_v18, 5  ;;  %v7032_v25 = vld [vmem:[%s7261_s27 + $0x50] sm:$0x1] }
  0xad   : > { %6365 = vmatprep.subr.bf16.mxu1 %v7842_v40  ;;  %v5750_v18 = vld [vmem:[%s7261_s27 + $0x24] sm:$0xf] }
  0xae   : > { %6478 = vmatmul.mubr.msk.bf16.gmra.mrb[24].mxu0 %vm712_vm3, %v5656_v11  ;;  %v7028_v11 = vld [vmem:[%s7261_s27 + $0x20] sm:$0x1]  ;;  %v1311_v42 = vrot.slane %v1309_v9, 4  ;;  %v7929_v46 = vsel %vm7521_vm6, %v1297_v48, %v1298_v6  ;;  %v7952_v23 = vsel %vm7521_vm6, %v5410_v58, %v1309_v9  ;;  %v5748_v6 = vld [vmem:[%s7261_s27 + $0x1c] sm:$0xf]  ;;  %v7981_v48 = vsel %vm7521_vm6, %v1318_v55, %v1319_v21 }
  0xaf   : > { %6302 = vmatmul.mubr.msk.bf16.gmra.mrb[8].mxu1 %vm712_vm3, %v5376_v0  ;;  %6481 = vmatprep.mubr.msk.bf16.mxu0 %vm712_vm3, %v5657_v38  ;;  %v1304_v0 = vrot.slane %v1302_v52, 4  ;;  %v1305_v15 = vrot.slane %v7028_v11, 5  ;;  %v3805_v58 = vshll.u32 %v5748_v6, 16  ;;  %v5749_v55 = vld [vmem:[%s7261_s27 + $0x20] sm:$0x1]  ;;  %v5414_v21 = vrot.slane %v7973_v28, 9 }
  0xb0   : > { %6305 = vmatprep.mubr.msk.bf16.mxu1 %vm712_vm3, %v5377_v37  ;;  %v7029_v37 = vld [vmem:[%s7261_s27 + $0x2c] sm:$0x1]  ;;  %v6972_v28 = vld [vmem:[%s7261_s27 + $0x54] sm:$0xff]  }
  0xb1   : > { %v1312_v38 = vrot.slane %v7029_v37, 5  ;;  %v8028_v32 = vrot.slane %v3805_v58, 5  ;;  %v5754_v58 = vld [vmem:[%s7261_s27 + $0x34] sm:$0xf] }
  0xb2   : > { %v3853_v9 = vshll.u32 %v5754_v58, 16 }
  0xb3   : > { %v7956_v12 = vsel %vm7521_vm6, %v1311_v42, %v1312_v38  ;;  %v7993_v42 = vsel %vm7521_vm6, %v5412_v3, %v1323_v26 }
  0xb6   : > { %6482 = vmatmul.mubr.msk.bf16.gmra.mrb[28].mxu0 %vm712_vm3, %v5658_v49  ;;  %v6979_v49 = vld [vmem:[%s9135_s1 + $0xf0] sm:$0xff]  }
  0xb7   : > { %6306 = vmatmul.mubr.msk.bf16.gmra.mrb[12].mxu1 %vm712_vm3, %v5378_v47  ;;  %6493 = vmatprep.mubr.msk.bf16.mxu0 %vm712_vm3, %v6959_v53  ;;  %v7933_v47 = vsel %vm7521_vm6, %v5409_v31, %v1302_v52  ;;  %v5411_v53 = vrot.slane %v1239_v34, 9  ;;  %v1325_v52 = vrot.slane %v1323_v26, 4  ;;  %v7984_v31 = vld [vmem:[%s7261_s27 + $0x60] sm:$0xe]  ;;  %v3796_v34 = vshrl.u32 %v5747_v24, 16 }
  0xb8   : > { %6309 = vmatprep.mubr.msk.bf16.mxu1 %vm712_vm3, %v5379_v2  ;;  %v7943_v2 = vsel %vm7521_vm6, %v1304_v0, %v1305_v15  ;;  %v3799_v0 = vshll.u32 %v5747_v24, 16  ;;  %v5413_v15 = vrot.slane %v1241_v22, 9  ;;  %v7033_v22 = vld [vmem:[%s7261_s27 + $0x58] sm:$0xf]  ;;  %v5415_v5 = vrot.slane %v7984_v31, 9  ;;  %v6974_v31 = vld [vmem:[%s7261_s27 + $0x60] sm:$0xff]  }
  0xb9   : > { %v7997_v37 = vsel %vm7521_vm6, %v1325_v52, %v1326_v56  ;;  %v1337_v24 = vrot.slane %v7033_v22, 5  ;;  %v5751_v52 = vld [vmem:[%s7261_s27 + $0x28] sm:$0xf]  ;;  %v3798_v4 = vrot.slane %v3796_v34, 4  ;;  %v7036_v22 = vld [vmem:[%s7261_s27 + $0x70] sm:$0xf] }
  0xba   : > { %v3801_v56 = vrot.slane %v3799_v0, 5  ;;  %v8041_v0 = vld [vmem:[%s9135_s1 + $0x100] sm:$0xff]   ;;  %v7037_v26 = vld [vmem:[%s7261_s27 + $0x68] sm:$0x1] }
  0xbb   : > { %v1347_v11 = vrot.slane %v7037_v26, 5  ;;  %v7038_v26 = vld [vmem:[%s7261_s27 + $0x74] sm:$0x1]  ;;  %v8068_v62 = vsel %vm7521_vm6, %v5414_v21, %v1337_v24 }
  0xbe   : > { %6494 = vmatmul.mubr.msk.bf16.vlgmr.msra.gmra.mrb[0].mxu0 %vm712_vm3, %v6962_v20  ;;  %v6966_v20 = vld [vmem:[%s7261_s27 + $0x3c] sm:$0xff]  }
  0xbf   : > { %6310 = vmatmul.mubr.msk.bf16.gmra.mrb[16].mxu1 %vm712_vm3, %v5380_v33  ;;  %6526 = vmatpush3.bf16.msra.mxu0 %v7653_v51  ;;  %v1330_v33 = vrot.slane %v7851_v36, 5  ;;  %v7977_v36 = vsel %vm7521_vm6, %v5411_v53, %v1316_v17  ;;  %v3809_v17 = vshrl.u32 %v5748_v6, 16  ;;  %v1333_v53 = vrot.slane %v7032_v25, 5  ;;  %v7034_v6 = vld [vmem:[%s7261_s27 + $0x5c] sm:$0x1] }
  0xc0   : > { %6313 = vmatprep.mubr.msk.bf16.mxu1 %vm712_vm3, %v5381_v19  ;;  %6497 = vmatprep.mubr.msk.bf16.mxu0 %vm712_vm3, %v6964_v59  ;;  %v1340_v3 = vrot.slane %v7034_v6, 5  ;;  %v1351_v6 = vrot.slane %v7036_v22, 5  ;;  %v3833_v25 = vshrl.u32 %v5751_v52, 16  ;;  %v5752_v19 = vld [vmem:[%s7261_s27 + $0x2c] sm:$0x1] }
  0xc1   : > { %6527 = vmatprep.subr.bf16.mxu0 %v6970_v8  ;;  %v1332_v38 = vrot.slane %v1330_v33, 4  ;;  %v8026_v27 = vsel %vm7521_vm6, %v5413_v15, %v1330_v33  ;;  %v3820_v33 = vshrl.u32 %v5750_v18, 16  ;;  %v3823_v15 = vshll.u32 %v5750_v18, 16 }
  0xc2   : > { %v3857_v18 = vshrl.u32 %v5754_v58, 16  ;;  %v1245_v58 = vld [vmem:[%s7261_s27 + $0x78] sm:$0xe] }
  0xc3   : > { %6528 = vmatpush3.bf16.msra.mxu0 %v6970_v8  ;;  %v6985_v8 = vld [vmem:[%s9135_s1 + $0xf8] sm:$0xff]   ;;  %v8036_v34 = vsel %vm7521_vm6, %v1332_v38, %v1333_v53  ;;  %v3822_v22 = vrot.slane %v3820_v33, 4  ;;  %v3825_v51 = vrot.slane %v3823_v15, 5  ;;  %v3839_v33 = vshll.u32 %v5752_v19, 16 }
  0xc4   : > { %6529 = vmatprep.subr.bf16.mxu0 %v6979_v49  ;;  %v6978_v15 = vld [vmem:[%s7261_s27 + $0x78] sm:$0xff]  }
  0xc6   : > { %6498 = vmatmul.mubr.msk.bf16.gmra.mrb[4].mxu0 %vm712_vm3, %v6966_v20  ;;  %v5753_v20 = vld [vmem:[%s7261_s27 + $0x30] sm:$0xf] }
  0xc7   : > { %6314 = vmatmul.mubr.msk.bf16.gmra.mrb[20].mxu1 %vm712_vm3, %v5382_v35  ;;  %6501 = vmatprep.mubr.msk.bf16.mxu0 %vm712_vm3, %v6969_v14  ;;  %v1344_v35 = vrot.slane %v7035_v10, 5  ;;  %v8031_v14 = vld [vmem:[%s7261_s27 + $0x6c] sm:$0xe]  ;;  %v3829_v10 = vshll.u32 %v5751_v52, 16  ;;  %v3844_v38 = vshrl.u32 %v5753_v20, 16  ;;  %v3847_v53 = vshll.u32 %v5753_v20, 16 }
  0xc8   : > { %6317 = vmatprep.mubr.msk.bf16.mxu1 %vm712_vm3, %v5383_v45  ;;  %6530 = vmatpush3.bf16.msra.mxu0 %v6979_v49  ;;  %v3811_v45 = vrot.slane %v3809_v17, 4  ;;  %v3815_v49 = vshll.u32 %v5749_v55, 16  ;;  %v1339_v17 = vrot.slane %v1337_v24, 4  ;;  %v3802_v55 = vor.u32 %v3801_v56, %v3798_v4 }
  0xc9   : > { %6531 = vmatprep.subr.bf16.mxu0 %v6985_v8  ;;  %v1346_v30 = vrot.slane %v1344_v35, 4  ;;  %v5416_v52 = vrot.slane %v8031_v14, 9  ;;  %v1354_v4 = vrot.slane %v7038_v26, 5  ;;  %v8058_v56 = vrot.slane %v3829_v10, 5 }
  0xca   : > { %v3812_v59 = vor.u32 %v3811_v45, %v8028_v32  ;;  %v8048_v16 = vrot.slane %v3815_v49, 5  ;;  %v3835_v20 = vrot.slane %v3833_v25, 4  ;;  %v5755_v45 = vld [vmem:[%s7261_s27 + $0x38] sm:$0x1]  ;;  %v9157_v14 = vcombine.low %v7662_v61, %v7669_v60 }
  0xcb   : > { %v8072_v41 = vsel %vm7521_vm6, %v1339_v17, %v1340_v3  ;;  %v3803_v25 = vrot.slane %v3802_v55, 4  ;;  %v8074_v61 = vrot.slane %v3853_v9, 5  ;;  %v3859_v60 = vrot.slane %v3857_v18, 4  ;;  %v6976_v3 = vld [vmem:[%s7261_s27 + $0x6c] sm:$0xff]   ;;  %v7039_v17 = vld [vmem:[%s7261_s27 + $0x7c] sm:$0xf] }
  0xcc   : > { %6532 = vmatpush3.bf16.msra.mxu0 %v6985_v8  ;;  %v1353_v8 = vrot.slane %v1351_v6, 4  ;;  %v3813_v49 = vrot.slane %v3812_v59, 4  ;;  %v8080_v21 = vsel %vm7521_vm6, %v5415_v5, %v1344_v35  ;;  %v3826_v24 = vor.u32 %v3825_v51, %v3822_v22  ;;  %v7040_v22 = vld [vmem:[%s7261_s27 + $0x88] sm:$0xf] }
  0xcd   : > { %6565 = vmatprep.subr.bf16.mxu0 %v8041_v0  ;;  %v3836_v9 = vor.u32 %v3835_v20, %v8058_v56  ;;  %v1358_v10 = vrot.slane %v7039_v17, 5  ;;  %v8091_v5 = vsel %vm7521_vm6, %v1346_v30, %v1347_v11  ;;  %v8095_v51 = vsel %vm7521_vm6, %v5416_v52, %v1351_v6  ;;  %v1246_v11 = vld [vmem:[%s7261_s27 + $0x84] sm:$0xe]  ;;  %v5757_v52 = vld [vmem:[%s7261_s27 + $0x40] sm:$0xf] }
  0xce   : > { %6502 = vmatmul.mubr.msk.bf16.gmra.mrb[8].mxu0 %vm712_vm3, %v6972_v28  ;;  %v3849_v28 = vrot.slane %v3847_v53, 5  ;;  %v8099_v19 = vsel %vm7521_vm6, %v1353_v8, %v1354_v4  ;;  %v5756_v53 = vld [vmem:[%s7261_s27 + $0x3c] sm:$0xf]  ;;  %v3808_v55 = vsel %vm7288_vm2, %v3803_v25, %v8028_v32  ;;  %v3818_v18 = vsel %vm7288_vm2, %v3813_v49, %v8048_v16  ;;  %v7041_v20 = vld [vmem:[%s7261_s27 + $0x80] sm:$0x1] }
  0xcf   : > { %6318 = vmatmul.mubr.msk.bf16.gmra.mrb[24].mxu1 %vm712_vm3, %v5384_v39  ;;  %6505 = vmatprep.mubr.msk.bf16.mxu0 %vm712_vm3, %v6974_v31  ;;  %v3846_v39 = vrot.slane %v3844_v38, 4  ;;  %v3863_v38 = vshll.u32 %v5755_v45, 16  ;;  %v3860_v30 = vor.u32 %v3859_v60, %v8074_v61  ;;  %v1365_v6 = vrot.slane %v7040_v22, 5  ;;  %v6981_v22 = vld [vmem:[%s7261_s27 + $0x90] sm:$0xff]  }
  0xd0   : > { %6321 = vmatprep.mubr.msk.bf16.mxu1 %vm712_vm3, %v9157_v14  ;;  %v3827_v26 = vrot.slane %v3826_v24, 4  ;;  %v3841_v8 = vrot.slane %v3839_v33, 5  ;;  %v5417_v4 = vrot.slane %v1245_v58, 9  ;;  %v1361_v45 = vrot.slane %v7041_v20, 5  ;;  %v6980_v33 = vld [vmem:[%s7261_s27 + $0x84] sm:$0xff]  }
  0xd1   : > { %v3850_v35 = vor.u32 %v3849_v28, %v3846_v39  ;;  %v9158_v32 = vcombine.low %v7691_v50, %v7694_v13  ;;  %v3837_v16 = vrot.slane %v3836_v9, 4  ;;  %v1360_v14 = vrot.slane %v1358_v10, 4  ;;  %v5758_v13 = vld [vmem:[%s7261_s27 + $0x44] sm:$0x1]  ;;  %v7042_v58 = vld [vmem:[%s7261_s27 + $0x8c] sm:$0x1] }
  0xd2   : > { %v3865_v39 = vrot.slane %v3863_v38, 5  ;;  %v3868_v28 = vshrl.u32 %v5756_v53, 16  ;;  %v9159_v25 = vcombine.low %v7912_v43, %v7925_v63  ;;  %v5418_v50 = vrot.slane %v1246_v11, 9  ;;  %v5759_v43 = vld [vmem:[%s7261_s27 + $0x48] sm:$0xf] }
  0xd3   : > { %v3851_v49 = vrot.slane %v3850_v35, 4  ;;  %v3871_v60 = vshll.u32 %v5756_v53, 16  ;;  %v3877_v24 = vshll.u32 %v5757_v52, 16  ;;  %v1367_v9 = vrot.slane %v1365_v6, 4  ;;  %v8138_v11 = vld [vmem:[%s7261_s27 + $0x4c] sm:$0xf] }
  0xd4   : > { %v1368_v17 = vrot.slane %v7042_v58, 5  ;;  %v3881_v38 = vshrl.u32 %v5757_v52, 16  ;;  %v8135_v53 = vsel %vm7521_vm6, %v5417_v4, %v1358_v10  ;;  %v6983_v52 = vld [vmem:[%s9135_s1 + $0x68] sm:$0xff]   ;;  %v8152_v10 = vsel %vm7521_vm6, %v1360_v14, %v1361_v45  ;;  %v8155_v20 = vld [vmem:[%s7261_s27 + $0x58] sm:$0xf] }
  0xd5   : > { %v3870_v4 = vrot.slane %v3868_v28, 4  ;;  %v3887_v14 = vshll.u32 %v5758_v13, 16  ;;  %v1247_v28 = vld [vmem:[%s7261_s27 + $0x90] sm:$0xe]  ;;  %v3892_v58 = vshrl.u32 %v5759_v43, 16  ;;  %v3895_v35 = vshll.u32 %v5759_v43, 16 }
  0xd6   : > { %6506 = vmatmul.mubr.msk.bf16.gmra.mrb[12].mxu0 %vm712_vm3, %v6976_v3  ;;  %v3861_v3 = vrot.slane %v3860_v30, 4  ;;  %v5762_v30 = vld [vmem:[%s7261_s27 + $0x54] sm:$0xf]  ;;  %v8170_v45 = vsel %vm7521_vm6, %v1367_v9, %v1368_v17  ;;  %v5419_v9 = vrot.slane %v1247_v28, 9  ;;  %v5765_v17 = vld [vmem:[%s7261_s27 + $0x60] sm:$0xf] }
  0xd7   : > { %6322 = vmatmul.mubr.msk.bf16.gmra.mrb[28].mxu1 %vm712_vm3, %v9158_v32  ;;  %6509 = vmatprep.mubr.msk.bf16.mxu0 %vm712_vm3, %v6978_v15  ;;  %v8129_v15 = vcombine.low %v3808_v55, %v3818_v18  ;;  %v3832_v55 = vsel %vm7288_vm2, %v3827_v26, %v8058_v56  ;;  %v3842_v18 = vsel %vm7288_vm2, %v3837_v16, %v3841_v8  ;;  %v3873_v56 = vrot.slane %v3871_v60, 5  ;;  %v7044_v63 = vld [vmem:[%s7261_s27 + $0x98] sm:$0x1] }
  0xd8   : > { %6333 = vmatprep.mubr.msk.bf16.mxu1 %vm712_vm3, %v9159_v25  ;;  %v3856_v32 = vsel %vm7288_vm2, %v3851_v49, %v8074_v61  ;;  %v8162_v25 = vsel %vm7521_vm6, %v5418_v50, %v1365_v6  ;;  %v8164_v26 = vrot.slane %v3877_v24, 5  ;;  %v3866_v8 = vsel %vm7288_vm2, %v3861_v3, %v3865_v39  ;;  %v8181_v39 = vld [vmem:[%s7261_s27 + $0x50] sm:$0x1] }
  0xd9   : > { %v3883_v16 = vrot.slane %v3881_v38, 4  ;;  %v3901_v61 = vshll.u32 %v8138_v11, 16  ;;  %v3905_v6 = vshrl.u32 %v8138_v11, 16  ;;  %v9160_v49 = vcombine.low %v7916_v7, %v7929_v46  ;;  %v8196_v38 = vld [vmem:[%s7261_s27 + $0x64] sm:$0xf] }
  0xda   : > { %v3916_v50 = vshrl.u32 %v5762_v30, 16  ;;  %v3919_v13 = vshll.u32 %v5762_v30, 16  ;;  %v3925_v60 = vshll.u32 %v8155_v20, 16  ;;  %v3929_v24 = vshrl.u32 %v8155_v20, 16  ;;  %9162 = vst [vmem:[#allocation7_spill] sm:$0xff] %v8196_v38 }
  0xdb   : > { %v9161_v3 = vcombine.low %v7933_v47, %v7943_v2  ;;  %v8190_v7 = vcombine.low %v3832_v55, %v3842_v18  ;;  %v6989_v47 = vld [vmem:[%s9135_s1 + $0x70] sm:$0xff]   ;;  %v8203_v2 = vcombine.low %v3856_v32, %v3866_v8  ;;  %v3884_v30 = vor.u32 %v3883_v16, %v8164_v26  ;;  %v6984_v18 = vld [vmem:[%s7261_s27 + $0xa8] sm:$0xff]  }
  0xdc   : > { %v8208_v55 = vrot.slane %v3887_v14, 5  ;;  %v3907_v28 = vrot.slane %v3905_v6, 4  ;;  %v3918_v32 = vrot.slane %v3916_v50, 4  ;;  %v3921_v8 = vrot.slane %v3919_v13, 5  ;;  %v7043_v16 = vld [vmem:[%s7261_s27 + $0x94] sm:$0xf] }
  0xdd   : > { %v3931_v46 = vrot.slane %v3929_v24, 4  ;;  %v1372_v14 = vrot.slane %v7043_v16, 5  ;;  %v3940_v6 = vshrl.u32 %v5765_v17, 16  ;;  %v3943_v59 = vshll.u32 %v5765_v17, 16 }
  0xde   : > { %6510 = vmatmul.mubr.msk.bf16.gmra.mrb[16].mxu0 %vm712_vm3, %v6980_v33  ;;  %v3874_v33 = vor.u32 %v3873_v56, %v3870_v4  ;;  %v3894_v4 = vrot.slane %v3892_v58, 4  ;;  %v8211_v56 = vrot.slane %v3901_v61, 5  ;;  %v1375_v58 = vrot.slane %v7044_v63, 5  ;;  %v8224_v61 = vld [vmem:[%s7261_s27 + $0x5c] sm:$0x1] }
  0xdf   : > { %6334 = vmatmul.mubr.msk.bf16.vlgmr.msra.gmra.mrb[0].mxu1 %vm712_vm3, %v9160_v49  ;;  %6513 = vmatprep.mubr.msk.bf16.mxu0 %vm712_vm3, %v6981_v22  ;;  %v3897_v22 = vrot.slane %v3895_v35, 5  ;;  %v8214_v49 = vld [vmem:[%s7261_s27 + $0x9c] sm:$0xe]  ;;  %v3911_v35 = vshll.u32 %v8181_v39, 16  ;;  %9163 = vst [vmem:[#allocation8_spill] sm:$0xff] %v8224_v61  ;;  %v3949_v50 = vshll.u32 %v8196_v38, 16  ;;  %v9164_v17 = vcombine.low %v7952_v23, %v7956_v12 }
  0xe0   : > { %6366 = vmatpush3.bf16.msra.mxu1 %v7842_v40  ;;  %6337 = vmatprep.mubr.msk.bf16.mxu1 %vm712_vm3, %v9161_v3  ;;  %v6982_v40 = vld [vmem:[%s7261_s27 + $0x9c] sm:$0xff]   ;;  %v8216_v3 = vrot.slane %v3925_v60, 5  ;;  %v8218_v43 = vrot.slane %v3874_v33, 4  ;;  %v3953_v13 = vshrl.u32 %v8196_v38, 16  ;;  %v8228_v60 = vrot.slane %v3884_v30, 4 }
  0xe1   : > { %6367 = vmatprep.subr.bf16.mxu1 %v6983_v52  ;;  %v3898_v24 = vor.u32 %v3897_v22, %v3894_v4  ;;  %v3908_v63 = vor.u32 %v3907_v28, %v8211_v56  ;;  %v7045_v33 = vld [vmem:[%s7261_s27 + $0xa0] sm:$0xf]  ;;  %v8242_v30 = vsel %vm7521_vm6, %v5419_v9, %v1372_v14  ;;  %v3922_v31 = vor.u32 %v3921_v8, %v3918_v32  ;;  %v1249_v9 = vld [vmem:[%s7261_s27 + $0xa8] sm:$0xe]  ;;  %v7046_v28 = vld [vmem:[%s7261_s27 + $0xac] sm:$0xf] }
  0xe2   : > { %v1379_v16 = vrot.slane %v7045_v33, 5  ;;  %v3932_v44 = vor.u32 %v3931_v46, %v8216_v3  ;;  %v3935_v4 = vshll.u32 %v8224_v61, 16  ;;  %v9165_v22 = vcombine.low %v7977_v36, %v7981_v48  ;;  %v1250_v61 = vld [vmem:[%s7261_s27 + $0xb4] sm:$0xe] }
  0xe3   : > { %v1374_v23 = vrot.slane %v1372_v14, 4  ;;  %v3913_v12 = vrot.slane %v3911_v35, 5  ;;  %v1386_v32 = vrot.slane %v7046_v28, 5  ;;  %v3942_v46 = vrot.slane %v3940_v6, 4  ;;  %v7047_v35 = vld [vmem:[%s7261_s27 + $0xa4] sm:$0x1] }
  0xe4   : > { %6368 = vmatpush3.bf16.msra.mxu1 %v6983_v52  ;;  %v6991_v52 = vld [vmem:[%s9135_s1 + $0x78] sm:$0xff]   ;;  %v3945_v8 = vrot.slane %v3943_v59, 5  ;;  %v8254_v33 = vrot.slane %v3949_v50, 5  ;;  %v3955_v36 = vrot.slane %v3953_v13, 4  ;;  %v3899_v48 = vrot.slane %v3898_v24, 4  ;;  %v6987_v59 = vld [vmem:[%s7261_s27 + $0xc0] sm:$0xff]  }
  0xe5   : > { %6369 = vmatprep.subr.bf16.mxu1 %v6989_v47  ;;  %v1381_v14 = vrot.slane %v1379_v16, 4  ;;  %v3923_v38 = vrot.slane %v3922_v31, 4  ;;  %v3937_v6 = vrot.slane %v3935_v4, 5  ;;  %v5421_v28 = vrot.slane %v1249_v9, 9 }
  0xe6   : > { %6514 = vmatmul.mubr.msk.bf16.gmra.mrb[20].mxu0 %vm712_vm3, %v6982_v40  ;;  %v5420_v40 = vrot.slane %v8214_v49, 9  ;;  %v6986_v49 = vld [vmem:[%s7261_s27 + $0xb4] sm:$0xff]   ;;  %v3880_v50 = vsel %vm7288_vm2, %v8218_v43, %v8164_v26  ;;  %v3890_v13 = vsel %vm7288_vm2, %v8228_v60, %v8208_v55  ;;  %v1388_v24 = vrot.slane %v1386_v32, 4  ;;  %v5768_v26 = vld [vmem:[%s7261_s27 + $0x6c] sm:$0xf] }
  0xe7   : > { %6338 = vmatmul.mubr.msk.bf16.gmra.mrb[4].mxu1 %vm712_vm3, %v9164_v17  ;;  %6517 = vmatprep.mubr.msk.bf16.mxu0 %vm712_vm3, %v6984_v18  ;;  %v3909_v18 = vrot.slane %v3908_v63, 4  ;;  %v1382_v17 = vrot.slane %v7047_v35, 5  ;;  %v7048_v63 = vld [vmem:[%s7261_s27 + $0xb0] sm:$0x1]  ;;  %v8273_v31 = vsel %vm7521_vm6, %v1374_v23, %v1375_v58  ;;  %v3956_v4 = vor.u32 %v3955_v36, %v8254_v33 }
  0xe8   : > { %6341 = vmatprep.mubr.msk.bf16.mxu1 %vm712_vm3, %v9165_v22  ;;  %6370 = vmatpush3.bf16.msra.mxu1 %v6989_v47  ;;  %v8258_v22 = vld [vmem:[%s7261_s27 + $0x68] sm:$0x1]  ;;  %v3933_v47 = vrot.slane %v3932_v44, 4  ;;  %v1389_v35 = vrot.slane %v7048_v63, 5  ;;  %v3946_v44 = vor.u32 %v3945_v8, %v3942_v46  ;;  %v3904_v43 = vsel %vm7288_vm2, %v3899_v48, %v8211_v56 }
  0xe9   : > { %6371 = vmatprep.subr.bf16.mxu1 %v6991_v52  ;;  %v3959_v9 = vshll.u32 %v8258_v22, 16  ;;  %v3914_v55 = vsel %vm7288_vm2, %v3909_v18, %v3913_v12  ;;  %v8286_v58 = vsel %vm7521_vm6, %v5420_v40, %v1379_v16  ;;  %v8290_v60 = vsel %vm7521_vm6, %v1381_v14, %v1382_v17 }
  0xea   : > { %v9167_v56 = vor.u32 %v7873_v54, %v7871_v1  ;;  %v9169_v16 = vcombine.low %v7993_v42, %v7997_v37  ;;  %v3928_v12 = vsel %vm7288_vm2, %v3923_v38, %v8216_v3  ;;  %v3938_v40 = vsel %vm7288_vm2, %v3933_v47, %v3937_v6  ;;  %v7050_v38 = vld [vmem:[%s7261_s27 + $0xb8] sm:$0xf]  ;;  %v8348_v47 = vld [vmem:[%s7261_s27 + $0x7c] sm:$0xf]  ;;  %v5774_v6 = vld [vmem:[%s7261_s27 + $0x84] sm:$0xf] }
  0xeb   : > { %v8315_v46 = vsel %vm7521_vm6, %v5421_v28, %v1386_v32  ;;  %v9170_v54 = vcombine.low %v8026_v27, %v8036_v34  ;;  %v8324_v42 = vsel %vm7521_vm6, %v1388_v24, %v1389_v35  ;;  %v5422_v37 = vrot.slane %v1250_v61, 9  ;;  %v8328_v32 = vld [vmem:[%s7261_s27 + $0x70] sm:$0xf]  ;;  %9172 = vst [vmem:[#allocation12_spill] sm:$0xff] %v8348_v47  ;;  %v8360_v35 = vld [vmem:[%s7261_s27 + $0x88] sm:$0xf] }
  0xec   : > { %6372 = vmatpush3.bf16.msra.mxu1 %v6991_v52  ;;  %v8295_v52 = vld [vmem:[%s9135_s1 + $0x80] sm:$0xff]   ;;  %v8301_v23 = vrot.slane %v9167_v56, 4  ;;  %v1393_v3 = vrot.slane %v7050_v38, 5  ;;  %9171 = vst [vmem:[#allocation11_spill] sm:$0xff] %v8328_v32  ;;  %v3964_v8 = vshrl.u32 %v5768_v26, 16  ;;  %v8330_v27 = vcombine.low %v3880_v50, %v3890_v13  ;;  %v6988_v28 = vld [vmem:[%s7261_s27 + $0xcc] sm:$0xff]  }
  0xed   : > { %9166 = vst [vmem:[#allocation9_spill] sm:$0xff] %v8295_v52  ;;  %6605 = vmatprep.subr.bf16.mxu1 %v8295_v52  ;;  %v8332_v34 = vrot.slane %v3946_v44, 4  ;;  %v8334_v36 = vrot.slane %v3956_v4, 4  ;;  %v8336_v48 = vrot.slane %v3959_v9, 5  ;;  %v8340_v61 = vcombine.low %v3904_v43, %v3914_v55  ;;  %v8355_v50 = vld [vmem:[%s7261_s27 + $0xbc] sm:$0x1] }
  0xee   : > { %9168 = vst [vmem:[#allocation10_spill] sm:$0xff] %v8301_v23  ;;  %6518 = vmatmul.mubr.msk.bf16.gmra.mrb[24].mxu0 %vm712_vm3, %v6986_v49  ;;  %v8344_v17 = vcombine.low %v3928_v12, %v3938_v40  ;;  %v5771_v49 = vld [vmem:[%s7261_s27 + $0x78] sm:$0xf]  ;;  %v3967_v24 = vshll.u32 %v5768_v26, 16  ;;  %v3973_v63 = vshll.u32 %v8328_v32, 16  ;;  %9173 = vst [vmem:[#allocation13_spill] sm:$0xff] %v8360_v35  ;;  %v8364_v44 = vsel %vm7521_vm6, %v5422_v37, %v1393_v3 }
  0xef   : > { %6342 = vmatmul.mubr.msk.bf16.gmra.mrb[8].mxu1 %vm712_vm3, %v9169_v16  ;;  %6521 = vmatprep.mubr.msk.bf16.mxu0 %vm712_vm3, %v6987_v59  ;;  %v8366_v4 = vrot.slane %v1393_v3, 4  ;;  %v8368_v9 = vrot.slane %v3964_v8, 4  ;;  %v3977_v43 = vshrl.u32 %v8328_v32, 16  ;;  %v5777_v55 = vld [vmem:[%s7261_s27 + $0x90] sm:$0xf]  ;;  %v3988_v16 = vshrl.u32 %v5771_v49, 16 }
  0xf0   : > { %6345 = vmatprep.mubr.msk.bf16.mxu1 %vm712_vm3, %v9170_v54  ;;  %v3991_v12 = vshll.u32 %v5771_v49, 16  ;;  %v8381_v40 = vld [vmem:[%s7261_s27 + $0x94] sm:$0xf]  ;;  %v3997_v37 = vshll.u32 %v8348_v47, 16  ;;  %v4001_v38 = vshrl.u32 %v8348_v47, 16  ;;  %v4012_v3 = vshrl.u32 %v5774_v6, 16 }
  0xf1   : > { %9174 = vst [vmem:[#allocation14_spill] sm:$0xff] %v8381_v40  ;;  %v8384_v54 = vld [vmem:[%s7261_s27 + $0x74] sm:$0x1]  ;;  %v4015_v8 = vshll.u32 %v5774_v6, 16  ;;  %v9176_v59 = vcombine.low %v8068_v62, %v8072_v41  ;;  %v4021_v49 = vshll.u32 %v8360_v35, 16  ;;  %v4025_v14 = vshrl.u32 %v8360_v35, 16 }
  0xf2   : > { %9175 = vst [vmem:[#allocation15_spill] sm:$0xff] %v8384_v54  ;;  %v4036_v26 = vshrl.u32 %v5777_v55, 16  ;;  %v4039_v56 = vshll.u32 %v5777_v55, 16  ;;  %v9177_v18 = vcombine.low %v8080_v21, %v8091_v5  ;;  %v3969_v62 = vrot.slane %v3967_v24, 5  ;;  %v8404_v6 = vld [vmem:[%s7261_s27 + $0x80] sm:$0x1] }
  0xf3   : > { %v8401_v41 = vrot.slane %v3973_v63, 5  ;;  %v3979_v55 = vrot.slane %v3977_v43, 4  ;;  %v3983_v13 = vshll.u32 %v8384_v54, 16  ;;  %v3990_v21 = vrot.slane %v3988_v16, 4  ;;  %v8413_v24 = vld [vmem:[%s7261_s27 + $0x8c] sm:$0x1] }
  0xf4   : > { %v3993_v5 = vrot.slane %v3991_v12, 5  ;;  %v8410_v1 = vrot.slane %v3997_v37, 5  ;;  %v4014_v63 = vrot.slane %v4012_v3, 4  ;;  %v4017_v52 = vrot.slane %v4015_v8, 5  ;;  %v8421_v43 = vld [vmem:[%s7261_s27 + $0x98] sm:$0x1] }
  0xf5   : > { %v8415_v35 = vrot.slane %v4021_v49, 5  ;;  %v4027_v23 = vrot.slane %v4025_v14, 4  ;;  %v4038_v47 = vrot.slane %v4036_v26, 4  ;;  %v4041_v32 = vrot.slane %v4039_v56, 5  ;;  %9179 = vst [vmem:[#allocation17_spill] sm:$0xff] %v8421_v43 }
  0xf6   : > { %6522 = vmatmul.mubr.msk.bf16.gmra.mrb[28].mxu0 %vm712_vm3, %v6988_v28  ;;  %v4045_v28 = vshll.u32 %v8381_v40, 16  ;;  %v3970_v3 = vor.u32 %v3969_v62, %v8368_v9  ;;  %v3980_v8 = vor.u32 %v3979_v55, %v8401_v41  ;;  %v3994_v14 = vor.u32 %v3993_v5, %v3990_v21 }
  0xf7   : > { %6346 = vmatmul.mubr.msk.bf16.gmra.mrb[12].mxu1 %vm712_vm3, %v9176_v59  ;;  %6533 = vmatprep.mubr.msk.bf16.mxu0 %vm712_vm3, %v8129_v15  ;;  %v4049_v59 = vshrl.u32 %v8381_v40, 16  ;;  %v4003_v15 = vrot.slane %v4001_v38, 4  ;;  %v8418_v40 = vld [vmem:[%s7261_s27 + $0xa0] sm:$0xf]  ;;  %v6992_v38 = vld [vmem:[%s9135_s1 + $0x108] sm:$0xff]   ;;  %v4007_v26 = vshll.u32 %v8404_v6, 16  ;;  %v4018_v49 = vor.u32 %v4017_v52, %v4014_v63 }
  0xf8   : > { %6349 = vmatprep.mubr.msk.bf16.mxu1 %vm712_vm3, %v9177_v18  ;;  %v5780_v18 = vld [vmem:[%s7261_s27 + $0x9c] sm:$0xf]  ;;  %9178 = vst [vmem:[#allocation16_spill] sm:$0xff] %v8418_v40  ;;  %v8423_v54 = vrot.slane %v4045_v28, 5  ;;  %v4069_v28 = vshll.u32 %v8418_v40, 16  ;;  %v4028_v9 = vor.u32 %v4027_v23, %v8415_v35  ;;  %v4031_v62 = vshll.u32 %v8413_v24, 16 }
  0xf9   : > { %v4051_v16 = vrot.slane %v4049_v59, 4  ;;  %v4060_v12 = vshrl.u32 %v5780_v18, 16  ;;  %v4063_v37 = vshll.u32 %v5780_v18, 16  ;;  %v4004_v56 = vor.u32 %v4003_v15, %v8410_v1 }
  0xfa   : > { %v4073_v59 = vshrl.u32 %v8418_v40, 16  ;;  %v9180_v18 = vcombine.low %v8095_v51, %v8099_v19  ;;  %v4042_v55 = vor.u32 %v4041_v32, %v4038_v47  ;;  %v4055_v52 = vshll.u32 %v8421_v43, 16  ;;  %v6994_v19 = vld [vmem:[%s9135_s1 + $0x110] sm:$0xff]   ;;  %v5783_v47 = vld [vmem:[%s7261_s27 + $0xa8] sm:$0xf] }
  0xfb   : > { %v9181_v21 = vcombine.low %v8135_v53, %v8152_v10  ;;  %v3985_v51 = vrot.slane %v3983_v13, 5  ;;  %v4062_v23 = vrot.slane %v4060_v12, 4  ;;  %v4065_v5 = vrot.slane %v4063_v37, 5  ;;  %v8458_v40 = vld [vmem:[%s7261_s27 + $0xa4] sm:$0x1] }
  0xfc   : > { %v3981_v32 = vrot.slane %v3980_v8, 4  ;;  %v3995_v53 = vrot.slane %v3994_v14, 4  ;;  %v4009_v10 = vrot.slane %v4007_v26, 5  ;;  %v4005_v13 = vrot.slane %v4004_v56, 4 }
  0xfd   : > { %v4019_v15 = vrot.slane %v4018_v49, 4  ;;  %v8455_v63 = vrot.slane %v4069_v28, 5  ;;  %v4043_v12 = vrot.slane %v4042_v55, 4  ;;  %v4057_v37 = vrot.slane %v4055_v52, 5 }
  0xfe   : > { %6534 = vmatmul.mubr.msk.bf16.vlgmr.msra.gmra.mrb[0].mxu0 %vm712_vm3, %v8190_v7  ;;  %v4052_v7 = vor.u32 %v4051_v16, %v8423_v54  ;;  %v4033_v16 = vrot.slane %v4031_v62, 5  ;;  %v4066_v43 = vor.u32 %v4065_v5, %v4062_v23  ;;  %v4084_v8 = vshrl.u32 %v5783_v47, 16 }
  0xff   : > { %6350 = vmatmul.mubr.msk.bf16.gmra.mrb[16].mxu1 %vm712_vm3, %v9180_v18  ;;  %6566 = vmatpush3.bf16.msra.mxu0 %v8041_v0  ;;  %v3971_v0 = vrot.slane %v3970_v3, 4  ;;  %v4075_v18 = vrot.slane %v4073_v59, 4  ;;  %v8461_v3 = vld [vmem:[%s7261_s27 + $0xac] sm:$0xf]  ;;  %v4087_v14 = vshll.u32 %v5783_v47, 16  ;;  %v9182_v26 = vrot.slane %v8355_v50, 5 }
 0x100   : > { %6353 = vmatprep.mubr.msk.bf16.mxu1 %vm712_vm3, %v9181_v21  ;;  %6537 = vmatprep.mubr.msk.bf16.mxu0 %vm712_vm3, %v8203_v2  ;;  %v4029_v21 = vrot.slane %v4028_v9, 4  ;;  %v4053_v2 = vrot.slane %v4052_v7, 4  ;;  %v4000_v28 = vsel %vm7288_vm2, %v3995_v53, %v8410_v1  ;;  %v4010_v50 = vsel %vm7288_vm2, %v4005_v13, %v4009_v10  ;;  %v6999_v9 = vld [vmem:[%s9135_s1 + $0x118] sm:$0xff]   ;;  %v5836_v47 = vld [vmem:[%s7261_s27 + $0x54] sm:$0xe] }
 0x101   : > { %6567 = vmatprep.subr.bf16.mxu0 %v6992_v38  ;;  %v8468_v56 = vsel %vm7521_vm6, %v8366_v4, %v9182_v26  ;;  %v3976_v49 = vsel %vm7288_vm2, %v3971_v0, %v8401_v41  ;;  %v4024_v4 = vsel %vm7288_vm2, %v4019_v15, %v8415_v35  ;;  %v4076_v59 = vor.u32 %v4075_v18, %v8455_v63 }
 0x102   : > { %v4079_v41 = vshll.u32 %v8458_v40, 16  ;;  %v9183_v1 = vcombine.low %v8162_v25, %v8170_v45  ;;  %v4034_v62 = vsel %vm7288_vm2, %v4029_v21, %v4033_v16  ;;  %v4048_v35 = vsel %vm7288_vm2, %v4043_v12, %v8423_v54  ;;  %v8513_v54 = vld [vmem:[%s7261_s27 + $0xb0] sm:$0x1]  ;;  %v5837_v12 = vld [vmem:[%s7261_s27 + $0x60] sm:$0xe] }
 0x103   : > { %6568 = vmatpush3.bf16.msra.mxu0 %v6992_v38  ;;  %v3986_v38 = vsel %vm7288_vm2, %v3981_v32, %v3985_v51  ;;  %v4093_v55 = vshll.u32 %v8461_v3, 16  ;;  %v4097_v52 = vshrl.u32 %v8461_v3, 16  ;;  %v5835_v51 = vld [vmem:[%s7261_s27 + $0x48] sm:$0xe]  ;;  %v9184_v25 = vcombine.low %v8242_v30, %v8273_v31  ;;  %v5786_v32 = vld [vmem:[%s7261_s27 + $0xb4] sm:$0xf] }
 0x104   : > { %6569 = vmatprep.subr.bf16.mxu0 %v6994_v19  ;;  %v4058_v45 = vsel %vm7288_vm2, %v4053_v2, %v4057_v37  ;;  %v4086_v7 = vrot.slane %v4084_v8, 4  ;;  %v4089_v23 = vrot.slane %v4087_v14, 5  ;;  %v9185_v30 = vsel %vm7288_vm2, %v8334_v36, %v8336_v48  ;;  %v9187_v14 = vld [vmem:[#allocation8_spill] sm:$0xff] }
 0x105   : > { %v9186_v31 = vsel %vm7288_vm2, %v8332_v34, %v8254_v33  ;;  %v5438_v5 = vcombine.low %v8364_v44, %v8468_v56  ;;  %v8529_v0 = vcombine.low %v4000_v28, %v4010_v50  ;;  %v8532_v53 = vcombine.low %v4024_v4, %v4034_v62  ;;  %v8564_v50 = vld [vmem:[%s7261_s27 + $0xb8] sm:$0xf] }
 0x106   : > { %6538 = vmatmul.mubr.msk.bf16.gmra.mrb[4].mxu0 %vm712_vm3, %v8330_v27  ;;  %v8510_v27 = vrot.slane %v4066_v43, 4  ;;  %v8527_v43 = vcombine.low %v3976_v49, %v3986_v38  ;;  %v4077_v10 = vrot.slane %v4076_v59, 4  ;;  %v4081_v36 = vrot.slane %v4079_v41, 5  ;;  %v5838_v49 = vld [vmem:[%s7261_s27 + $0x6c] sm:$0xe] }
 0x107   : > { %6354 = vmatmul.mubr.msk.bf16.gmra.mrb[20].mxu1 %vm712_vm3, %v9183_v1  ;;  %6541 = vmatprep.mubr.msk.bf16.mxu0 %vm712_vm3, %v8340_v61  ;;  %v5801_v61 = vcombine.low %v9186_v31, %v9185_v30  ;;  %v5851_v48 = vrot.slane %v5835_v51, 9  ;;  %v8535_v33 = vcombine.low %v4048_v35, %v4058_v45  ;;  %v8537_v34 = vrot.slane %v4093_v55, 5  ;;  %v5789_v45 = vld [vmem:[%s7261_s27 + $0xc0] sm:$0xf] }
 0x108   : > { %6357 = vmatprep.mubr.msk.bf16.mxu1 %vm712_vm3, %v9184_v25  ;;  %6570 = vmatpush3.bf16.msra.mxu0 %v6994_v19  ;;  %v4099_v13 = vrot.slane %v4097_v52, 4  ;;  %v4103_v15 = vshll.u32 %v8513_v54, 16  ;;  %v4072_v19 = vsel %vm7288_vm2, %v8510_v27, %v8455_v63  ;;  %v4090_v18 = vor.u32 %v4089_v23, %v4086_v7  ;;  %v9192_v52 = vld [vmem:[#allocation15_spill] sm:$0xff] }
 0x109   : > { %6571 = vmatprep.subr.bf16.mxu0 %v6999_v9  ;;  %v4594_v21 = vrot.slane %v8138_v11, 5  ;;  %v4597_v16 = vrot.slane %v8181_v39, 5  ;;  %v4108_v37 = vshrl.u32 %v5786_v32, 16  ;;  %v5852_v2 = vrot.slane %v5836_v47, 9 }
 0x10a   : > { %v4601_v8 = vrot.slane %v8155_v20, 5  ;;  %v4604_v26 = vrot.slane %v9187_v14, 5  ;;  %v4082_v38 = vsel %vm7288_vm2, %v4077_v10, %v4081_v36  ;;  %v4111_v28 = vshll.u32 %v5786_v32, 16  ;;  %v5839_v32 = vld [vmem:[%s7261_s27 + $0x78] sm:$0xe]  ;;  %v6993_v10 = vld [vmem:[%s7261_s27 + $0xc] sm:$0xff]  }
 0x10b   : > { %v8554_v63 = vsel %vm7521_vm6, %v5851_v48, %v4594_v21  ;;  %v4596_v11 = vrot.slane %v4594_v21, 4  ;;  %v9188_v39 = vcombine.low %v8286_v58, %v8290_v60  ;;  %v4100_v20 = vor.u32 %v4099_v13, %v8537_v34  ;;  %v9190_v60 = vld [vmem:[#allocation7_spill] sm:$0xff] }
 0x10c   : > { %6572 = vmatpush3.bf16.msra.mxu0 %v6999_v9  ;;  %v8568_v4 = vsel %vm7521_vm6, %v5852_v2, %v4601_v8  ;;  %v4603_v59 = vrot.slane %v4601_v8, 4  ;;  %v5853_v41 = vrot.slane %v5837_v12, 9  ;;  %v9189_v9 = vcombine.low %v8315_v46, %v8324_v42  ;;  %v9191_v42 = vld [vmem:[#allocation11_spill] sm:$0xff] }
 0x10d   : > { %v8577_v58 = vsel %vm7521_vm6, %v4596_v11, %v4597_v16  ;;  %v4611_v1 = vrot.slane %v8258_v22, 5  ;;  %v5854_v62 = vrot.slane %v5838_v49, 9  ;;  %v4615_v55 = vrot.slane %v9191_v42, 5  ;;  %v8622_v12 = vld [vmem:[%s7261_s27 + $0xc4] sm:$0xf]  ;;  %v9196_v42 = vld [vmem:[#allocation13_spill] sm:$0xff] }
 0x10e   : > { %6542 = vmatmul.mubr.msk.bf16.gmra.mrb[8].mxu0 %vm712_vm3, %v8344_v17  ;;  %v4608_v17 = vrot.slane %v9190_v60, 5  ;;  %v5867_v35 = vcombine.low %v8554_v63, %v8577_v58  ;;  %v8585_v46 = vsel %vm7521_vm6, %v4603_v59, %v4604_v26  ;;  %v4618_v51 = vrot.slane %v9192_v52, 5  ;;  %v5840_v26 = vld [vmem:[%s7261_s27 + $0x84] sm:$0xe]  ;;  %v8642_v49 = vld [vmem:[%s7261_s27 + $0xbc] sm:$0x1] }
 0x10f   : > { %6358 = vmatmul.mubr.msk.bf16.gmra.mrb[24].mxu1 %vm712_vm3, %v9188_v39  ;;  %6545 = vmatprep.mubr.msk.bf16.mxu0 %vm712_vm3, %v5801_v61  ;;  %v4117_v25 = vshll.u32 %v8564_v50, 16  ;;  %v5868_v22 = vcombine.low %v8568_v4, %v8585_v46  ;;  %v8597_v23 = vrot.slane %v4103_v15, 5  ;;  %v4121_v30 = vshrl.u32 %v8564_v50, 16  ;;  %v5554_v15 = vld [vmem:[%s7261_s27 + $0x78] sm:$0xf] }
 0x110   : > { %6361 = vmatprep.mubr.msk.bf16.mxu1 %vm712_vm3, %v9189_v9  ;;  %v8595_v27 = vsel %vm7521_vm6, %v5853_v41, %v4608_v17  ;;  %v4610_v7 = vrot.slane %v4608_v17, 4  ;;  %v8602_v31 = vsel %vm7521_vm6, %v5854_v62, %v4615_v55  ;;  %v4617_v61 = vrot.slane %v4615_v55, 4  ;;  %v9195_v59 = vld [vmem:[#allocation10_spill] sm:$0xff]  ;;  %v7068_v46 = vld [vmem:[%s7261_s27 + $0x8c] sm:$0x1] }
 0x111   : > { %v8606_v36 = vcombine.low %v4072_v19, %v4082_v38  ;;  %v8608_v48 = vrot.slane %v4090_v18, 4  ;;  %v8610_v47 = vrot.slane %v4108_v37, 4  ;;  %v8617_v21 = vrot.slane %v4100_v20, 4  ;;  %v6995_v52 = vld [vmem:[%s7261_s27 + $0x18] sm:$0xff]  }
 0x112   : > { %v8614_v13 = vsel %vm7521_vm6, %v4610_v7, %v4611_v1  ;;  %v8619_v16 = vrot.slane %v4111_v28, 5  ;;  %v8628_v18 = vsel %vm7521_vm6, %v4617_v61, %v4618_v51  ;;  %v8630_v37 = vrot.slane %v4117_v25, 5  ;;  %v9193_v28 = vld [vmem:[#allocation12_spill] sm:$0xff] }
 0x113   : > { %v5869_v19 = vcombine.low %v8595_v27, %v8614_v13  ;;  %v4132_v2 = vshrl.u32 %v5789_v45, 16  ;;  %v5870_v8 = vcombine.low %v8602_v31, %v8628_v18  ;;  %v5855_v14 = vrot.slane %v5839_v32, 9  ;;  %v6996_v61 = vld [vmem:[%s7261_s27 + $0x24] sm:$0xff]  }
 0x114   : > { %v4135_v38 = vshll.u32 %v5789_v45, 16  ;;  %v4622_v11 = vrot.slane %v9193_v28, 5  ;;  %v4625_v39 = vrot.slane %v8404_v6, 5  ;;  %v2373_v20 = vshrl.u32 %v5554_v15, 16  ;;  %v5792_v45 = vld [vmem:[%s7261_s27 + $0xcc] sm:$0xf] }
 0x115   : > { %v4141_v44 = vshll.u32 %v8622_v12, 16  ;;  %v4145_v56 = vshrl.u32 %v8622_v12, 16  ;;  %v5856_v17 = vrot.slane %v5840_v26, 9  ;;  %v4127_v1 = vshll.u32 %v8642_v49, 16  ;;  %v5841_v26 = vld [vmem:[%s7261_s27 + $0x90] sm:$0xe] }
 0x116   : > { %6546 = vmatmul.mubr.msk.bf16.gmra.mrb[12].mxu0 %vm712_vm3, %v8527_v43  ;;  %v9194_v43 = vld [vmem:[#allocation6_spill] sm:$0xff]  ;;  %v8657_v6 = vsel %vm7521_vm6, %v5855_v14, %v4622_v11  ;;  %v4624_v9 = vrot.slane %v4622_v11, 4  ;;  %v2375_v60 = vrot.slane %v2373_v20, 4  ;;  %v4629_v55 = vrot.slane %v9196_v42, 5 }
 0x117   : > { %6362 = vmatmul.mubr.msk.bf16.gmra.mrb[28].mxu1 %vm712_vm3, %v5438_v5  ;;  %6549 = vmatprep.mubr.msk.bf16.mxu0 %vm712_vm3, %v8529_v0  ;;  %v2376_v5 = vshll.u32 %v5554_v15, 16  ;;  %v2395_v41 = vsel %vm7288_vm2, %v9195_v59, %v9194_v43  ;;  %v4123_v0 = vrot.slane %v4121_v30, 4  ;;  %v4096_v51 = vsel %vm7288_vm2, %v8608_v48, %v8537_v34 }
 0x118   : > { %6373 = vmatprep.mubr.msk.bf16.mxu1 %vm712_vm3, %v6993_v10  ;;  %v4114_v25 = vor.u32 %v8619_v16, %v8610_v47  ;;  %v8671_v7 = vsel %vm7521_vm6, %v4624_v9, %v4625_v39  ;;  %v4632_v30 = vrot.slane %v8413_v24, 5  ;;  %v4134_v32 = vrot.slane %v4132_v2, 4  ;;  %v8681_v47 = vld [vmem:[%s7261_s27 + $0xd0] sm:$0xf] }
 0x119   : > { %v2378_v62 = vrot.slane %v2376_v5, 5  ;;  %v4137_v10 = vrot.slane %v4135_v38, 5  ;;  %v5871_v15 = vcombine.low %v8657_v6, %v8671_v7  ;;  %v8678_v34 = vrot.slane %v4141_v44, 5  ;;  %v8693_v38 = vld [vmem:[%s7261_s27 + $0xc8] sm:$0x1]  ;;  %v9197_v5 = vld [vmem:[#allocation14_spill] sm:$0xff] }
 0x11a   : > { %v4147_v48 = vrot.slane %v4145_v56, 4  ;;  %v8685_v16 = vsel %vm7521_vm6, %v5856_v17, %v4629_v55  ;;  %v4631_v28 = vrot.slane %v4629_v55, 4  ;;  %v4106_v24 = vsel %vm7288_vm2, %v8617_v21, %v8597_v23  ;;  %v9198_v23 = vld [vmem:[#allocation9_spill] sm:$0xff]  ;;  %v7052_v17 = vld [vmem:[%s9135_s1 + $0x88] sm:$0xff]  }
 0x11b   : > { %v2379_v14 = vor.u32 %v2378_v62, %v2375_v60  ;;  %v4124_v2 = vor.u32 %v4123_v0, %v8630_v37  ;;  %v4156_v11 = vshrl.u32 %v5792_v45, 16  ;;  %v4159_v20 = vshll.u32 %v5792_v45, 16  ;;  %v9199_v9 = vld [vmem:[#allocation5_spill] sm:$0xff] }
 0x11c   : > { %v8700_v44 = vsel %vm7521_vm6, %v4631_v28, %v4632_v30  ;;  %v5857_v56 = vrot.slane %v5841_v26, 9  ;;  %v4636_v43 = vrot.slane %v9197_v5, 5  ;;  %v4165_v21 = vshll.u32 %v8681_v47, 16  ;;  %v9200_v30 = vld [vmem:[#allocation17_spill] sm:$0xff]  ;;  %v6998_v5 = vld [vmem:[%s7261_s27 + $0x3c] sm:$0xff]  }
 0x11d   : > { %v2380_v39 = vrot.slane %v2379_v14, 4  ;;  %v4169_v59 = vshrl.u32 %v8681_v47, 16  ;;  %v5872_v60 = vcombine.low %v8685_v16, %v8700_v44  ;;  %v4138_v0 = vor.u32 %v4137_v10, %v4134_v32  ;;  %v6997_v14 = vld [vmem:[%s7261_s27 + $0x30] sm:$0xff]   ;;  %v5842_v10 = vld [vmem:[%s7261_s27 + $0x9c] sm:$0xe] }
 0x11e   : > { %6550 = vmatmul.mubr.msk.bf16.gmra.mrb[16].mxu0 %vm712_vm3, %v8532_v53  ;;  %v4148_v62 = vor.u32 %v4147_v48, %v8678_v34  ;;  %v4151_v42 = vshll.u32 %v8693_v38, 16  ;;  %v8723_v45 = vsel %vm7521_vm6, %v5857_v56, %v4636_v43  ;;  %v5807_v26 = vcombine.low %v4096_v51, %v4106_v24  ;;  %v8730_v48 = vld [vmem:[%s7261_s27 + $0xd4] sm:$0x1]  ;;  %v7074_v16 = vld [vmem:[%s7261_s27 + $0xc4] sm:$0xf] }
 0x11f   : > { %6374 = vmatmul.mubr.msk.bf16.vlgmr.msra.gmra.mrb[0].mxu1 %vm712_vm3, %v6995_v52  ;;  %v2385_v53 = vsel %vm7288_vm2, %v2380_v39, %v9199_v9  ;;  %6553 = vmatprep.mubr.msk.bf16.mxu0 %vm712_vm3, %v8535_v33  ;;  %v4129_v52 = vrot.slane %v4127_v1, 5  ;;  %v4638_v33 = vrot.slane %v4636_v43, 4  ;;  %v4115_v28 = vrot.slane %v4114_v25, 4  ;;  %v7053_v51 = vld [vmem:[%s9135_s1 + $0x90] sm:$0xff]  }
 0x120   : > { %6609 = vmatpush3.bf16.msra.mxu1 %v9198_v23  ;;  %6377 = vmatprep.mubr.msk.bf16.mxu1 %vm712_vm3, %v6996_v61  ;;  %v8719_v55 = vcombine.low %v2385_v53, %v2395_v41  ;;  %v4639_v61 = vrot.slane %v9200_v30, 5  ;;  %v4125_v39 = vrot.slane %v4124_v2, 4  ;;  %v4158_v32 = vrot.slane %v4156_v11, 4  ;;  %v9201_v2 = vld [vmem:[#allocation16_spill] sm:$0xff] }
 0x121   : > { %6606 = vmatprep.subr.bf16.mxu1 %v7052_v17  ;;  %v4161_v41 = vrot.slane %v4159_v20, 5  ;;  %v8732_v23 = vrot.slane %v4165_v21, 5  ;;  %v4171_v1 = vrot.slane %v4169_v59, 4  ;;  %v4139_v43 = vrot.slane %v4138_v0, 4 }
 0x122   : > { %v8736_v56 = vsel %vm7521_vm6, %v4638_v33, %v4639_v61  ;;  %v4149_v9 = vrot.slane %v4148_v62, 4  ;;  %v4153_v53 = vrot.slane %v4151_v42, 5  ;;  %v5858_v24 = vrot.slane %v5842_v10, 9  ;;  %v5831_v62 = vld [vmem:[%s7261_s27 + $0x18] sm:$0xe] }
 0x123   : > { %v5873_v25 = vcombine.low %v8723_v45, %v8736_v56  ;;  %v4643_v11 = vrot.slane %v9201_v2, 5  ;;  %v4120_v20 = vsel %vm7288_vm2, %v4115_v28, %v8630_v37  ;;  %v4130_v21 = vsel %vm7288_vm2, %v4125_v39, %v4129_v52  ;;  %v7054_v33 = vld [vmem:[%s7261_s27 + $0x1c] sm:$0xf]  ;;  %v7000_v28 = vld [vmem:[%s7261_s27 + $0x48] sm:$0xff]  }
 0x124   : > { %6610 = vmatpush3.bf16.msra.mxu1 %v7052_v17  ;;  %v4175_v59 = vshll.u32 %v8730_v48, 16  ;;  %v4646_v17 = vrot.slane %v8458_v40, 5  ;;  %v4162_v0 = vor.u32 %v4161_v41, %v4158_v32  ;;  %v4144_v40 = vsel %vm7288_vm2, %v4139_v43, %v8678_v34  ;;  %v7055_v61 = vld [vmem:[%s9135_s1 + $0x98] sm:$0xff]  }
 0x125   : > { %6607 = vmatprep.subr.bf16.mxu1 %v7053_v51  ;;  %v8760_v37 = vsel %vm7521_vm6, %v5858_v24, %v4643_v11  ;;  %v4645_v42 = vrot.slane %v4643_v11, 4  ;;  %v4154_v52 = vsel %vm7288_vm2, %v4149_v9, %v4153_v53  ;;  %v4566_v30 = vrot.slane %v7054_v33, 5  ;;  %v7056_v9 = vld [vmem:[%s7261_s27 + $0x20] sm:$0x1] }
 0x126   : > { %6554 = vmatmul.mubr.msk.bf16.gmra.mrb[20].mxu0 %vm712_vm3, %v8606_v36  ;;  %v4172_v36 = vor.u32 %v4171_v1, %v8732_v23  ;;  %v5808_v34 = vcombine.low %v4120_v20, %v4130_v21  ;;  %v4177_v39 = vrot.slane %v4175_v59, 5  ;;  %v5847_v32 = vrot.slane %v5831_v62, 9  ;;  %v5844_v20 = vld [vmem:[%s7261_s27 + $0xb4] sm:$0xe] }
 0x127   : > { %6378 = vmatmul.mubr.msk.bf16.gmra.mrb[4].mxu1 %vm712_vm3, %v6997_v14  ;;  %6557 = vmatprep.mubr.msk.bf16.mxu0 %vm712_vm3, %v5807_v26  ;;  %v8773_v14 = vsel %vm7521_vm6, %v4645_v42, %v4646_v17  ;;  %v5843_v26 = vld [vmem:[%s7261_s27 + $0xa8] sm:$0xe]  ;;  %v5809_v41 = vcombine.low %v4144_v40, %v4154_v52  ;;  %v4163_v1 = vrot.slane %v4162_v0, 4  ;;  %v4569_v53 = vrot.slane %v7056_v9, 5  ;;  %v5832_v0 = vld [vmem:[%s7261_s27 + $0x24] sm:$0xe] }
 0x128   : > { %6381 = vmatprep.mubr.msk.bf16.mxu1 %vm712_vm3, %v6998_v5  ;;  %6611 = vmatpush3.bf16.msra.mxu1 %v7053_v51  ;;  %v5874_v10 = vcombine.low %v8760_v37, %v8773_v14  ;;  %v7001_v5 = vld [vmem:[%s7261_s27 + $0x54] sm:$0xff]   ;;  %v4173_v43 = vrot.slane %v4172_v36, 4  ;;  %v4568_v51 = vrot.slane %v4566_v30, 4  ;;  %v5859_v24 = vrot.slane %v5843_v26, 9  ;;  %v7057_v36 = vld [vmem:[%s7261_s27 + $0x28] sm:$0xf] }
 0x129   : > { %6608 = vmatprep.subr.bf16.mxu1 %v7055_v61  ;;  %v4650_v2 = vrot.slane %v8461_v3, 5  ;;  %v4653_v11 = vrot.slane %v8513_v54, 5  ;;  %v4168_v3 = vsel %vm7288_vm2, %v4163_v1, %v8732_v23  ;;  %v4567_v17 = vsel %vm7521_vm6, %v5847_v32, %v4566_v30  ;;  %v7058_v40 = vld [vmem:[%s7261_s27 + $0x34] sm:$0xf]  ;;  %v7059_v32 = vld [vmem:[%s7261_s27 + $0x2c] sm:$0x1] }
 0x12a   : > { %v4178_v54 = vsel %vm7288_vm2, %v4173_v43, %v4177_v39  ;;  %v4573_v62 = vrot.slane %v7057_v36, 5  ;;  %v4570_v42 = vsel %vm7521_vm6, %v4568_v51, %v4569_v53  ;;  %v4580_v52 = vrot.slane %v7058_v40, 5  ;;  %v7003_v1 = vld [vmem:[%s7261_s27 + $0x6c] sm:$0xff]  }
 0x12b   : > { %v8788_v21 = vsel %vm7521_vm6, %v5859_v24, %v4650_v2  ;;  %v4652_v59 = vrot.slane %v4650_v2, 4  ;;  %v5860_v23 = vrot.slane %v5844_v20, 9  ;;  %v4657_v30 = vrot.slane %v8564_v50, 5  ;;  %v7060_v50 = vld [vmem:[%s7261_s27 + $0x38] sm:$0x1] }
 0x12c   : > { %6612 = vmatpush3.bf16.msra.mxu1 %v7055_v61  ;;  %v5833_v61 = vld [vmem:[%s7261_s27 + $0x30] sm:$0xe]  ;;  %v5848_v39 = vrot.slane %v5832_v0, 9  ;;  %v5863_v43 = vcombine.low %v4567_v17, %v4570_v42  ;;  %v4575_v9 = vrot.slane %v4573_v62, 4  ;;  %v4582_v2 = vrot.slane %v4580_v52, 4 }
 0x12d   : > { %v8806_v33 = vsel %vm7521_vm6, %v4652_v59, %v4653_v11  ;;  %v8818_v53 = vsel %vm7521_vm6, %v5860_v23, %v4657_v30  ;;  %v4659_v51 = vrot.slane %v4657_v30, 4  ;;  %v5849_v24 = vrot.slane %v5833_v61, 9  ;;  %v5845_v20 = vld [vmem:[%s7261_s27 + $0xc0] sm:$0xe]  ;;  %v5834_v23 = vld [vmem:[%s7261_s27 + $0x3c] sm:$0xe] }
 0x12e   : > { %6558 = vmatmul.mubr.msk.bf16.gmra.mrb[24].mxu0 %vm712_vm3, %v5808_v34  ;;  %v5875_v26 = vcombine.low %v8788_v21, %v8806_v33  ;;  %v5810_v34 = vcombine.low %v4168_v3, %v4178_v54  ;;  %v4583_v11 = vrot.slane %v7060_v50, 5  ;;  %v4574_v3 = vsel %vm7521_vm6, %v5848_v39, %v4573_v62  ;;  %v7061_v17 = vld [vmem:[%s7261_s27 + $0x40] sm:$0xf]  ;;  %v5551_v62 = vld [vmem:[%s7261_s27 + $0x6c] sm:$0xf] }
 0x12f   : > { %6382 = vmatmul.mubr.msk.bf16.gmra.mrb[8].mxu1 %vm712_vm3, %v7000_v28  ;;  %6561 = vmatprep.mubr.msk.bf16.mxu0 %vm712_vm3, %v5809_v41  ;;  %v7002_v28 = vld [vmem:[%s7261_s27 + $0x60] sm:$0xff]   ;;  %v4660_v41 = vrot.slane %v8642_v49, 5  ;;  %v4587_v0 = vrot.slane %v7061_v17, 5  ;;  %v5861_v36 = vrot.slane %v5845_v20, 9  ;;  %v4581_v42 = vsel %vm7521_vm6, %v5849_v24, %v4580_v52 }
 0x130   : > { %6385 = vmatprep.mubr.msk.bf16.mxu1 %vm712_vm3, %v7001_v5  ;;  %v4576_v5 = vrot.slane %v7059_v32, 5  ;;  %v4584_v40 = vsel %vm7521_vm6, %v4582_v2, %v4583_v11  ;;  %v4664_v61 = vrot.slane %v8622_v12, 5  ;;  %v4667_v30 = vrot.slane %v8693_v38, 5  ;;  %v7063_v11 = vld [vmem:[%s7261_s27 + $0x70] sm:$0xf] }
 0x131   : > { %v8824_v59 = vsel %vm7521_vm6, %v4659_v51, %v4660_v41  ;;  %v7005_v41 = vld [vmem:[%s7261_s27 + $0x84] sm:$0xff]   ;;  %v5865_v52 = vcombine.low %v4581_v42, %v4584_v40  ;;  %v2349_v24 = vshrl.u32 %v5551_v62, 16  ;;  %v2352_v12 = vshll.u32 %v5551_v62, 16 }
 0x132   : > { %v5876_v49 = vcombine.low %v8818_v53, %v8824_v59  ;;  %v4577_v54 = vsel %vm7521_vm6, %v4575_v9, %v4576_v5  ;;  %v8849_v32 = vsel %vm7521_vm6, %v5861_v36, %v4664_v61  ;;  %v4666_v5 = vrot.slane %v4664_v61, 4  ;;  %v7062_v9 = vld [vmem:[%s7261_s27 + $0x44] sm:$0x1] }
 0x133   : > { %v5864_v39 = vcombine.low %v4574_v3, %v4577_v54  ;;  %v4590_v51 = vrot.slane %v7062_v9, 5  ;;  %v2358_v20 = vshll.u32 %v7063_v11, 16  ;;  %v2362_v3 = vshrl.u32 %v7063_v11, 16  ;;  %v5560_v11 = vld [vmem:[%s7261_s27 + $0x90] sm:$0xf] }
 0x134   : > { %v8855_v38 = vsel %vm7521_vm6, %v4666_v5, %v4667_v30  ;;  %v4671_v54 = vrot.slane %v8681_v47, 5  ;;  %v4674_v17 = vrot.slane %v8730_v48, 5  ;;  %v2351_v40 = vrot.slane %v2349_v24, 4  ;;  %v7006_v30 = vld [vmem:[%s7261_s27 + $0x90] sm:$0xff]  }
 0x135   : > { %v5877_v50 = vcombine.low %v8849_v32, %v8855_v38  ;;  %v2360_v62 = vrot.slane %v2358_v20, 5  ;;  %v7008_v20 = vld [vmem:[%s7261_s27 + $0xa8] sm:$0xff]   ;;  %v2421_v63 = vshrl.u32 %v5560_v11, 16  ;;  %v2424_v58 = vshll.u32 %v5560_v11, 16  ;;  %v7010_v11 = vld [vmem:[%s7261_s27 + $0xc0] sm:$0xff]  }
 0x136   : > { %6562 = vmatmul.mubr.msk.bf16.gmra.mrb[28].mxu0 %vm712_vm3, %v5810_v34  ;;  %v7004_v34 = vld [vmem:[%s7261_s27 + $0x78] sm:$0xff]   ;;  %v4673_v47 = vrot.slane %v4671_v54, 4  ;;  %v2526_v44 = vshll.u32 %v7074_v16, 16 }
 0x137   : > { %6386 = vmatmul.mubr.msk.bf16.gmra.mrb[12].mxu1 %vm712_vm3, %v7002_v28  ;;  %6573 = vmatprep.mubr.msk.bf16.mxu0 %vm712_vm3, %v5863_v43  ;;  %v5846_v28 = vld [vmem:[%s7261_s27 + $0xcc] sm:$0xe]  ;;  %v4589_v43 = vrot.slane %v4587_v0, 4 }
 0x138   : > { %6389 = vmatprep.mubr.msk.bf16.mxu1 %vm712_vm3, %v7003_v1  ;;  %v5850_v1 = vrot.slane %v5834_v23, 9  ;;  %v5862_v2 = vrot.slane %v5846_v28, 9  ;;  %v2354_v23 = vrot.slane %v2352_v12, 5  ;;  %v2364_v28 = vrot.slane %v2362_v3, 4 }
 0x139   : > { %v4591_v42 = vsel %vm7521_vm6, %v4589_v43, %v4590_v51  ;;  %v7065_v51 = vld [vmem:[%s7261_s27 + $0x88] sm:$0xf]  ;;  %v2528_v45 = vrot.slane %v2526_v44, 5 }
 0x13a   : > { %v4588_v36 = vsel %vm7521_vm6, %v5850_v1, %v4587_v0  ;;  %v8872_v61 = vsel %vm7521_vm6, %v5862_v2, %v4671_v54  ;;  %v7007_v0 = vld [vmem:[%s7261_s27 + $0x9c] sm:$0xff]   ;;  %v7064_v1 = vld [vmem:[%s7261_s27 + $0x74] sm:$0x1]  ;;  %v2406_v24 = vshll.u32 %v7065_v51, 16  ;;  %v2410_v12 = vshrl.u32 %v7065_v51, 16 }
 0x13b   : > { %v5866_v48 = vcombine.low %v4588_v36, %v4591_v42  ;;  %v2368_v43 = vshll.u32 %v7064_v1, 16  ;;  %v5563_v42 = vld [vmem:[%s7261_s27 + $0x9c] sm:$0xf]  ;;  %v7067_v1 = vld [vmem:[%s7261_s27 + $0xa0] sm:$0xf] }
 0x13d   : > { %v2370_v54 = vrot.slane %v2368_v43, 5  ;;  %v2458_v43 = vshrl.u32 %v7067_v1, 16 }
 0x13e   : > { %6574 = vmatmul.mubr.msk.bf16.vlgmr.msra.gmra.mrb[0].mxu0 %vm712_vm3, %v5864_v39  ;;  %v5557_v39 = vld [vmem:[%s7261_s27 + $0x84] sm:$0xf] }
 0x13f   : > { %6390 = vmatmul.mubr.msk.bf16.gmra.mrb[16].mxu1 %vm712_vm3, %v7004_v34  ;;  %6577 = vmatprep.mubr.msk.bf16.mxu0 %vm712_vm3, %v5865_v52  ;;  %v8877_v34 = vsel %vm7521_vm6, %v4673_v47, %v4674_v17  ;;  %v2365_v52 = vor.u32 %v2364_v28, %v2360_v62  ;;  %v2397_v57 = vshrl.u32 %v5557_v39, 16  ;;  %v2400_v9 = vshll.u32 %v5557_v39, 16 }
 0x140   : > { %6393 = vmatprep.mubr.msk.bf16.mxu1 %vm712_vm3, %v7005_v41  ;;  %v5878_v5 = vcombine.low %v8872_v61, %v8877_v34  ;;  %v2355_v41 = vor.u32 %v2354_v23, %v2351_v40  ;;  %v7009_v40 = vld [vmem:[%s7261_s27 + $0xb4] sm:$0xff]   ;;  %v8896_v23 = vrot.slane %v2406_v24, 5  ;;  %v2412_v47 = vrot.slane %v2410_v12, 4 }
 0x141   : > { %v2366_v3 = vrot.slane %v2365_v52, 4  ;;  %v2399_v17 = vrot.slane %v2397_v57, 4  ;;  %v2402_v36 = vrot.slane %v2400_v9, 5  ;;  %v2448_v39 = vshll.u32 %v5563_v42, 16 }
 0x142   : > { %v2356_v2 = vrot.slane %v2355_v41, 4  ;;  %v2413_v4 = vor.u32 %v2412_v47, %v8896_v23  ;;  %v2423_v57 = vrot.slane %v2421_v63, 4  ;;  %v2426_v9 = vrot.slane %v2424_v58, 5  ;;  %v7070_v58 = vld [vmem:[%s7261_s27 + $0xa4] sm:$0x1] }
 0x143   : > { %v2371_v41 = vsel %vm7288_vm2, %v2366_v3, %v2370_v54  ;;  %v2403_v52 = vor.u32 %v2402_v36, %v2399_v17  ;;  %v5566_v3 = vld [vmem:[%s7261_s27 + $0xa8] sm:$0xf] }
 0x144   : > { %v2414_v54 = vrot.slane %v2413_v4, 4  ;;  %v2427_v36 = vor.u32 %v2426_v9, %v2423_v57  ;;  %v7072_v4 = vld [vmem:[%s7261_s27 + $0xb8] sm:$0xf] }
 0x145   : > { %v2404_v27 = vrot.slane %v2403_v52, 4 }
 0x146   : > { %6578 = vmatmul.mubr.msk.bf16.gmra.mrb[4].mxu0 %vm712_vm3, %v5866_v48  ;;  %v2428_v18 = vrot.slane %v2427_v36, 4 }
 0x147   : > { %6394 = vmatmul.mubr.msk.bf16.gmra.mrb[20].mxu1 %vm712_vm3, %v7006_v30  ;;  %6581 = vmatprep.mubr.msk.bf16.mxu0 %vm712_vm3, %v5867_v35  ;;  %v2361_v35 = vsel %vm7288_vm2, %v2356_v2, %v2360_v62  ;;  %v7066_v30 = vld [vmem:[%s7261_s27 + $0x94] sm:$0xf]  ;;  %v2454_v62 = vshll.u32 %v7067_v1, 16  ;;  %v2450_v2 = vrot.slane %v2448_v39, 5  ;;  %v7071_v39 = vld [vmem:[%s7261_s27 + $0xac] sm:$0xf]  ;;  %v2409_v1 = vsel %vm7288_vm2, %v2404_v27, %v8896_v23 }
 0x148   : > { %6397 = vmatprep.mubr.msk.bf16.mxu1 %vm712_vm3, %v7007_v0  ;;  %v2430_v48 = vshll.u32 %v7066_v30, 16  ;;  %v2434_v28 = vshrl.u32 %v7066_v30, 16  ;;  %v2445_v0 = vshrl.u32 %v5563_v42, 16  ;;  %v7069_v42 = vld [vmem:[%s7261_s27 + $0x98] sm:$0x1]  ;;  %v2464_v30 = vshll.u32 %v7070_v58, 16 }
 0x149   : > { %v8919_v13 = vrot.slane %v2454_v62, 5  ;;  %v2482_v52 = vshrl.u32 %v7071_v39, 16  ;;  %v2530_v58 = vshrl.u32 %v7074_v16, 16 }
 0x14a   : > { %v8916_v51 = vrot.slane %v2430_v48, 5  ;;  %v2436_v24 = vrot.slane %v2434_v28, 4  ;;  %v2447_v12 = vrot.slane %v2445_v0, 4  ;;  %v2469_v48 = vshrl.u32 %v5566_v3, 16  ;;  %v5569_v28 = vld [vmem:[%s7261_s27 + $0xb4] sm:$0xf] }
 0x14b   : > { %v2472_v0 = vshll.u32 %v5566_v3, 16  ;;  %v2493_v62 = vshrl.u32 %v5569_v28, 16  ;;  %v2466_v6 = vrot.slane %v2464_v30, 5  ;;  %v2484_v23 = vrot.slane %v2482_v52, 4  ;;  %v5572_v3 = vld [vmem:[%s7261_s27 + $0xc0] sm:$0xf] }
 0x14c   : > { %v2437_v47 = vor.u32 %v2436_v24, %v8916_v51  ;;  %v2451_v63 = vor.u32 %v2450_v2, %v2447_v12  ;;  %v2471_v7 = vrot.slane %v2469_v48, 4  ;;  %v7075_v48 = vld [vmem:[%s7261_s27 + $0xbc] sm:$0x1]  ;;  %v2532_v56 = vrot.slane %v2530_v58, 4 }
 0x14d   : > { %v2474_v24 = vrot.slane %v2472_v0, 5 }
 0x14e   : > { %6582 = vmatmul.mubr.msk.bf16.gmra.mrb[8].mxu0 %vm712_vm3, %v5868_v22  ;;  %v2416_v22 = vshll.u32 %v7068_v46, 16  ;;  %v2502_v46 = vshll.u32 %v7072_v4, 16  ;;  %v2438_v57 = vrot.slane %v2437_v47, 4  ;;  %v2452_v9 = vrot.slane %v2451_v63, 4  ;;  %v7073_v47 = vld [vmem:[%s7261_s27 + $0xb0] sm:$0x1] }
 0x14f   : > { %6398 = vmatmul.mubr.msk.bf16.gmra.mrb[24].mxu1 %vm712_vm3, %v7008_v20  ;;  %6585 = vmatprep.mubr.msk.bf16.mxu0 %vm712_vm3, %v5869_v19  ;;  %v5583_v20 = vcombine.low %v2361_v35, %v2371_v41  ;;  %v2460_v19 = vrot.slane %v2458_v43, 4  ;;  %v2478_v41 = vshll.u32 %v7071_v39, 16  ;;  %v2496_v43 = vshll.u32 %v5569_v28, 16 }
 0x150   : > { %6401 = vmatprep.mubr.msk.bf16.mxu1 %vm712_vm3, %v7009_v40  ;;  %v2418_v17 = vrot.slane %v2416_v22, 5  ;;  %v2440_v40 = vshll.u32 %v7069_v42, 16  ;;  %v2506_v22 = vshrl.u32 %v7072_v4, 16  ;;  %v2504_v27 = vrot.slane %v2502_v46, 5 }
 0x151   : > { %v2461_v35 = vor.u32 %v2460_v19, %v8919_v13  ;;  %v2480_v12 = vrot.slane %v2478_v41, 5  ;;  %v2457_v36 = vsel %vm7288_vm2, %v2452_v9, %v8919_v13  ;;  %v2488_v63 = vshll.u32 %v7073_v47, 16 }
 0x152   : > { %v2419_v31 = vsel %vm7288_vm2, %v2414_v54, %v2418_v17  ;;  %v2508_v19 = vrot.slane %v2506_v22, 4  ;;  %v2433_v54 = vsel %vm7288_vm2, %v2428_v18, %v8916_v51  ;;  %v2475_v51 = vor.u32 %v2474_v24, %v2471_v7  ;;  %v7076_v22 = vld [vmem:[%s7261_s27 + $0xc8] sm:$0x1] }
 0x153   : > { %v5585_v2 = vcombine.low %v2409_v1, %v2419_v31  ;;  %v2520_v13 = vshll.u32 %v5572_v3, 16  ;;  %v2512_v28 = vshll.u32 %v7075_v48, 16  ;;  %v2490_v52 = vrot.slane %v2488_v63, 5 }
 0x154   : > { %v2509_v30 = vor.u32 %v2508_v19, %v2504_v27  ;;  %v2476_v39 = vrot.slane %v2475_v51, 4  ;;  %v2533_v46 = vor.u32 %v2532_v56, %v2528_v45  ;;  %v9018_v19 = vld [vmem:[%s9136_s2] ss:$0 sm:$0xff] }
 0x155   : > { %v2522_v31 = vrot.slane %v2520_v13, 5 }
 0x156   : > { %6586 = vmatmul.mubr.msk.bf16.gmra.mrb[12].mxu0 %vm712_vm3, %v5870_v8  ;;  %v2442_v8 = vrot.slane %v2440_v40, 5  ;;  %v2485_v40 = vor.u32 %v2484_v23, %v2480_v12  ;;  %v2510_v18 = vrot.slane %v2509_v30, 4  ;;  %v2534_v7 = vrot.slane %v2533_v46, 4 }
 0x157   : > { %6402 = vmatmul.mubr.msk.bf16.gmra.mrb[28].mxu1 %vm712_vm3, %v7010_v11  ;;  %6589 = vmatprep.mubr.msk.bf16.mxu0 %vm712_vm3, %v5871_v15  ;;  %v2462_v15 = vrot.slane %v2461_v35, 4  ;;  %v2495_v11 = vrot.slane %v2493_v62, 4  ;;  %v2481_v62 = vsel %vm7288_vm2, %v2476_v39, %v2480_v12 }
 0x158   : > { %6429 = vmatprep.mubr.msk.bf16.mxu1 %vm712_vm3, %v5583_v20  ;;  %v2498_v20 = vrot.slane %v2496_v43, 5  ;;  %v2443_v17 = vsel %vm7288_vm2, %v2438_v57, %v2442_v8  ;;  %v2486_v41 = vrot.slane %v2485_v40, 4  ;;  %v2514_v8 = vrot.slane %v2512_v28, 5 }
 0x159   : > { %v2467_v42 = vsel %vm7288_vm2, %v2462_v15, %v2466_v6  ;;  %v5586_v35 = vcombine.low %v2433_v54, %v2443_v17  ;;  %v2536_v57 = vshll.u32 %v7076_v22, 16 }
 0x15a   : > { %v5587_v0 = vcombine.low %v2457_v36, %v2467_v42  ;;  %v2491_v43 = vsel %vm7288_vm2, %v2486_v41, %v2490_v52  ;;  %v2515_v14 = vsel %vm7288_vm2, %v2510_v18, %v2514_v8 }
 0x15b   : > { %v2538_v21 = vrot.slane %v2536_v57, 5 }
 0x15e   : > { %6590 = vmatmul.mubr.msk.bf16.gmra.mrb[16].mxu0 %vm712_vm3, %v5872_v60  ;;  %v2499_v60 = vor.u32 %v2498_v20, %v2495_v11 }
 0x15f   : > { %6430 = vmatmul.mubr.msk.bf16.vlgmr.msra.gmra.mrb[16].mxu1 %vm712_vm3, %v8719_v55  ;;  %6593 = vmatprep.mubr.msk.bf16.mxu0 %vm712_vm3, %v5873_v25  ;;  %v2517_v55 = vshrl.u32 %v5572_v3, 16 }
 0x160   : > { %6433 = vmatprep.mubr.msk.bf16.mxu1 %vm712_vm3, %v5585_v2  ;;  %v2500_v25 = vrot.slane %v2499_v60, 4 }
 0x161   : > { %v2519_v1 = vrot.slane %v2517_v55, 4 }
 0x162   : > { %v2505_v37 = vsel %vm7288_vm2, %v2500_v25, %v2504_v27 }
 0x163   : > { %v2523_v4 = vor.u32 %v2522_v31, %v2519_v1  ;;  %v5589_v9 = vcombine.low %v2505_v37, %v2515_v14 }
 0x165   : > { %v2524_v6 = vrot.slane %v2523_v4, 4 }
 0x166   : > { %6594 = vmatmul.mubr.msk.bf16.gmra.mrb[20].mxu0 %vm712_vm3, %v5874_v10  ;;  %v5588_v10 = vcombine.low %v2481_v62, %v2491_v43 }
 0x167   : > { %6434 = vmatmul.mubr.msk.bf16.gmra.mrb[20].mxu1 %vm712_vm3, %v5586_v35  ;;  %6597 = vmatprep.mubr.msk.bf16.mxu0 %vm712_vm3, %v5875_v26  ;;  %v2529_v33 = vsel %vm7288_vm2, %v2524_v6, %v2528_v45  ;;  %v2539_v26 = vsel %vm7288_vm2, %v2534_v7, %v2538_v21 }
 0x168   : > { %6437 = vmatprep.mubr.msk.bf16.mxu1 %vm712_vm3, %v5587_v0  ;;  %v5590_v15 = vcombine.low %v2529_v33, %v2539_v26 }
 0x16e   : > { %6598 = vmatmul.mubr.msk.bf16.gmra.mrb[24].mxu0 %vm712_vm3, %v5876_v49 }
 0x16f   : > { %6438 = vmatmul.mubr.msk.bf16.gmra.mrb[24].mxu1 %vm712_vm3, %v5588_v10  ;;  %6601 = vmatprep.mubr.msk.bf16.mxu0 %vm712_vm3, %v5877_v50 }
 0x170   : > { %6441 = vmatprep.mubr.msk.bf16.mxu1 %vm712_vm3, %v5589_v9 }
 0x176   : > { %6602 = vmatmul.mubr.msk.bf16.gmra.mrb[28].mxu0 %vm712_vm3, %v5878_v5 }
 0x177   : > { %6442 = vmatmul.mubr.msk.bf16.gmra.mrb[28].mxu1 %vm712_vm3, %v5590_v15 }
 0x1f2   : > { %v6375_v53 = vpop.f32.mrb[0].mxu1 }
 0x1f3   : > { %v1949_v59 = vpop.f32.mrb[1].mxu1 }
 0x1f4   : > { %v6376_v49 = vpop.f32.mrb[2].mxu1 }
 0x1f5   : > { %v1952_v32 = vpop.f32.mrb[3].mxu1 }
 0x1fa   : > { %v6379_v38 = vpop.f32.mrb[4].mxu1 }
 0x1fb   : > { %v1965_v50 = vpop.f32.mrb[5].mxu1 }
 0x1fc   : > { %v6380_v24 = vpop.f32.mrb[6].mxu1 }
 0x1fd   : > { %v1968_v12 = vpop.f32.mrb[7].mxu1 }
 0x202   : > { %v6383_v23 = vpop.f32.mrb[8].mxu1 }
 0x203   : > { %v1981_v29 = vpop.f32.mrb[9].mxu1 }
 0x204   : > { %v6384_v2 = vpop.f32.mrb[10].mxu1 }
 0x205   : > { %v1984_v11 = vpop.f32.mrb[11].mxu1 }
 0x20a   : > { %v9007_v20 = vpop.f32.mrb[12].mxu1 }
 0x20b   : > { %v9009_v27 = vpop.f32.mrb[13].mxu1 }
 0x20c   : > { %v9011_v61 = vpop.f32.mrb[14].mxu1 }
 0x20d   : > { %v9013_v34 = vpop.f32.mrb[15].mxu1 }
 0x211   : > { %v6575_v5 = vpop.f32.mrb[0].mxu0 }
 0x212   : > { %v6613_v3 = vadd.f32 %v6575_v5, %v6375_v53  ;;  %v4838_v54 = vpop.f32.mrb[1].mxu0 }
 0x213   : > { %v6614_v17 = vadd.f32 %v4838_v54, %v1949_v59  ;;  %v6576_v36 = vpop.f32.mrb[2].mxu0 }
 0x214   : > { %v5006_v42 = vadd.f32 %v6613_v3, %v9018_v19  ;;  %v6615_v51 = vadd.f32 %v6576_v36, %v6376_v49  ;;  %v4841_v40 = vpop.f32.mrb[3].mxu0 }
 0x215   : > { %v5004_v47 = vadd.f32 %v6614_v17, %v9018_v19  ;;  %v6616_v63 = vadd.f32 %v4841_v40, %v1952_v32 }
 0x216   : > { %v5007_v55 = vadd.f32 %v6615_v51, %v9018_v19  ;;  %v5038_v16 = vmax.f32 %v5006_v42, 0.0 }
 0x217   : > { %v5005_v13 = vadd.f32 %v6616_v63, %v9018_v19  ;;  %v5036_v58 = vmax.f32 %v5004_v47, 0.0 }
 0x218   : > { %v5039_v44 = vmax.f32 %v5007_v55, 0.0 }
 0x219   : > { %v5037_v60 = vmax.f32 %v5005_v13, 0.0  ;;  %v6579_v30 = vpop.f32.mrb[4].mxu0 }
 0x21a   : > { %v5978_v48 = vpack.c.bf16 %v5039_v44, %v5038_v16  ;;  %v6617_v28 = vadd.f32 %v6579_v30, %v6379_v38  ;;  %v4854_v35 = vpop.f32.mrb[5].mxu0 }
 0x21b   : > { %v5973_v0 = vpack.c.bf16 %v5037_v60, %v5036_v58  ;;  %v6618_v39 = vadd.f32 %v4854_v35, %v1965_v50  ;;  %v6580_v41 = vpop.f32.mrb[6].mxu0 }
 0x21c   : > { %6050 = vst [vmem:[%s9027_s8 + $0x8] sm:$0xff] %v5978_v48   ;;  %v5010_v52 = vadd.f32 %v6617_v28, %v9018_v19  ;;  %v6619_v1 = vadd.f32 %v6580_v41, %v6380_v24  ;;  %v4857_v31 = vpop.f32.mrb[7].mxu0 }
 0x21d   : > { %5974 = vst [vmem:[%s9027_s8] sm:$0xff] %v5973_v0   ;;  %v5008_v45 = vadd.f32 %v6618_v39, %v9018_v19  ;;  %v6620_v56 = vadd.f32 %v4857_v31, %v1968_v12 }
 0x21e   : > { %v5011_v25 = vadd.f32 %v6619_v1, %v9018_v19  ;;  %v5042_v8 = vmax.f32 %v5010_v52, 0.0 }
 0x21f   : > { %v5009_v18 = vadd.f32 %v6620_v56, %v9018_v19  ;;  %v5040_v43 = vmax.f32 %v5008_v45, 0.0 }
 0x220   : > { %v5043_v62 = vmax.f32 %v5011_v25, 0.0 }
 0x221   : > { %v5041_v4 = vmax.f32 %v5009_v18, 0.0  ;;  %v6583_v46 = vpop.f32.mrb[8].mxu0 }
 0x222   : > { %v5988_v22 = vpack.c.bf16 %v5043_v62, %v5042_v8  ;;  %v6621_v57 = vadd.f32 %v6583_v46, %v6383_v23  ;;  %v4870_v37 = vpop.f32.mrb[9].mxu0 }
 0x223   : > { %v5983_v14 = vpack.c.bf16 %v5041_v4, %v5040_v43  ;;  %v6622_v10 = vadd.f32 %v4870_v37, %v1981_v29  ;;  %v6584_v9 = vpop.f32.mrb[10].mxu0 }
 0x224   : > { %6052 = vst [vmem:[%s9027_s8 + $0x18] sm:$0xff] %v5988_v22   ;;  %v5014_v6 = vadd.f32 %v6621_v57, %v9018_v19  ;;  %v6623_v7 = vadd.f32 %v6584_v9, %v6384_v2  ;;  %v4873_v21 = vpop.f32.mrb[11].mxu0 }
 0x225   : > { %6051 = vst [vmem:[%s9027_s8 + $0x10] sm:$0xff] %v5983_v14   ;;  %v5012_v33 = vadd.f32 %v6622_v10, %v9018_v19  ;;  %v6624_v26 = vadd.f32 %v4873_v21, %v1984_v11 }
 0x226   : > { %v5015_v15 = vadd.f32 %v6623_v7, %v9018_v19  ;;  %v5046_v59 = vmax.f32 %v5014_v6, 0.0 }
 0x227   : > { %v5013_v53 = vadd.f32 %v6624_v26, %v9018_v19  ;;  %v5044_v32 = vmax.f32 %v5012_v33, 0.0 }
 0x228   : > { %v5047_v49 = vmax.f32 %v5015_v15, 0.0 }
 0x229   : > { %v5045_v38 = vmax.f32 %v5013_v53, 0.0  ;;  %v6587_v50 = vpop.f32.mrb[12].mxu0 }
 0x22a   : > { %v5998_v24 = vpack.c.bf16 %v5047_v49, %v5046_v59  ;;  %v6625_v12 = vadd.f32 %v6587_v50, %v9007_v20  ;;  %v4886_v23 = vpop.f32.mrb[13].mxu0 }
 0x22b   : > { %v5993_v29 = vpack.c.bf16 %v5045_v38, %v5044_v32  ;;  %v6626_v2 = vadd.f32 %v4886_v23, %v9009_v27  ;;  %v6588_v5 = vpop.f32.mrb[14].mxu0 }
 0x22c   : > { %6054 = vst [vmem:[%s9027_s8 + $0x28] sm:$0xff] %v5998_v24   ;;  %v5018_v11 = vadd.f32 %v6625_v12, %v9018_v19  ;;  %v6627_v3 = vadd.f32 %v6588_v5, %v9011_v61  ;;  %v4889_v54 = vpop.f32.mrb[15].mxu0 }
 0x22d   : > { %6053 = vst [vmem:[%s9027_s8 + $0x20] sm:$0xff] %v5993_v29   ;;  %v5016_v17 = vadd.f32 %v6626_v2, %v9018_v19  ;;  %v6628_v36 = vadd.f32 %v4889_v54, %v9013_v34 }
 0x22e   : > { %v5019_v42 = vadd.f32 %v6627_v3, %v9018_v19  ;;  %v5050_v51 = vmax.f32 %v5018_v11, 0.0 }
 0x22f   : > { %v5017_v20 = vadd.f32 %v6628_v36, %v9018_v19  ;;  %v5048_v27 = vmax.f32 %v5016_v17, 0.0 }
 0x230   : > { %v5051_v40 = vmax.f32 %v5019_v42, 0.0 }
 0x231   : > { %v5049_v47 = vmax.f32 %v5017_v20, 0.0  ;;  %v6591_v55 = vpop.f32.mrb[16].mxu0 }
 0x232   : > { %v6431_v63 = vpop.f32.mrb[16].mxu1  ;;  %v6008_v13 = vpack.c.bf16 %v5051_v40, %v5050_v51  ;;  %v4902_v44 = vpop.f32.mrb[17].mxu0 }
 0x233   : > { %v6629_v61 = vadd.f32 %v6591_v55, %v6431_v63  ;;  %v2766_v16 = vpop.f32.mrb[17].mxu1  ;;  %v6003_v58 = vpack.c.bf16 %v5049_v47, %v5048_v27  ;;  %v6592_v34 = vpop.f32.mrb[18].mxu0 }
 0x234   : > { %v6630_v60 = vadd.f32 %v4902_v44, %v2766_v16  ;;  %v6432_v30 = vpop.f32.mrb[18].mxu1  ;;  %6056 = vst [vmem:[%s9027_s8 + $0x38] sm:$0xff] %v6008_v13   ;;  %v4905_v0 = vpop.f32.mrb[19].mxu0 }
 0x235   : > { %v5022_v48 = vadd.f32 %v6629_v61, %v9018_v19  ;;  %v6631_v28 = vadd.f32 %v6592_v34, %v6432_v30  ;;  %v2769_v35 = vpop.f32.mrb[19].mxu1  ;;  %6055 = vst [vmem:[%s9027_s8 + $0x30] sm:$0xff] %v6003_v58  }
 0x236   : > { %v5020_v39 = vadd.f32 %v6630_v60, %v9018_v19  ;;  %v6632_v41 = vadd.f32 %v4905_v0, %v2769_v35 }
 0x237   : > { %v5023_v52 = vadd.f32 %v6631_v28, %v9018_v19  ;;  %v5054_v31 = vmax.f32 %v5022_v48, 0.0 }
 0x238   : > { %v5021_v1 = vadd.f32 %v6632_v41, %v9018_v19  ;;  %v5052_v56 = vmax.f32 %v5020_v39, 0.0 }
 0x239   : > { %v5055_v45 = vmax.f32 %v5023_v52, 0.0  ;;  %v6595_v8 = vpop.f32.mrb[20].mxu0 }
 0x23a   : > { %v5053_v25 = vmax.f32 %v5021_v1, 0.0  ;;  %v6435_v18 = vpop.f32.mrb[20].mxu1  ;;  %v4918_v46 = vpop.f32.mrb[21].mxu0 }
 0x23b   : > { %v6018_v62 = vpack.c.bf16 %v5055_v45, %v5054_v31  ;;  %v6633_v43 = vadd.f32 %v6595_v8, %v6435_v18  ;;  %v2782_v4 = vpop.f32.mrb[21].mxu1  ;;  %v6596_v14 = vpop.f32.mrb[22].mxu0 }
 0x23c   : > { %v6013_v22 = vpack.c.bf16 %v5053_v25, %v5052_v56  ;;  %v6634_v57 = vadd.f32 %v4918_v46, %v2782_v4  ;;  %v6436_v37 = vpop.f32.mrb[22].mxu1  ;;  %v4921_v7 = vpop.f32.mrb[23].mxu0 }
 0x23d   : > { %6058 = vst [vmem:[%s9027_s8 + $0x48] sm:$0xff] %v6018_v62   ;;  %v5026_v10 = vadd.f32 %v6633_v43, %v9018_v19  ;;  %v6635_v9 = vadd.f32 %v6596_v14, %v6436_v37  ;;  %v2785_v6 = vpop.f32.mrb[23].mxu1 }
 0x23e   : > { %6057 = vst [vmem:[%s9027_s8 + $0x40] sm:$0xff] %v6013_v22   ;;  %v5024_v21 = vadd.f32 %v6634_v57, %v9018_v19  ;;  %v6636_v33 = vadd.f32 %v4921_v7, %v2785_v6 }
 0x23f   : > { %v5027_v26 = vadd.f32 %v6635_v9, %v9018_v19  ;;  %v5058_v53 = vmax.f32 %v5026_v10, 0.0 }
 0x240   : > { %v5025_v15 = vadd.f32 %v6636_v33, %v9018_v19  ;;  %v5056_v49 = vmax.f32 %v5024_v21, 0.0 }
 0x241   : > { %v5059_v59 = vmax.f32 %v5027_v26, 0.0  ;;  %v6599_v50 = vpop.f32.mrb[24].mxu0 }
 0x242   : > { %v5057_v32 = vmax.f32 %v5025_v15, 0.0  ;;  %v6439_v38 = vpop.f32.mrb[24].mxu1  ;;  %v4934_v29 = vpop.f32.mrb[25].mxu0 }
 0x243   : > { %v6028_v24 = vpack.c.bf16 %v5059_v59, %v5058_v53  ;;  %v6637_v12 = vadd.f32 %v6599_v50, %v6439_v38  ;;  %v2798_v23 = vpop.f32.mrb[25].mxu1  ;;  %v6600_v3 = vpop.f32.mrb[26].mxu0 }
 0x244   : > { %v6023_v2 = vpack.c.bf16 %v5057_v32, %v5056_v49  ;;  %v6638_v5 = vadd.f32 %v4934_v29, %v2798_v23  ;;  %v6440_v11 = vpop.f32.mrb[26].mxu1  ;;  %v4937_v42 = vpop.f32.mrb[27].mxu0 }
 0x245   : > { %6060 = vst [vmem:[%s9027_s8 + $0x58] sm:$0xff] %v6028_v24   ;;  %v5030_v54 = vadd.f32 %v6637_v12, %v9018_v19  ;;  %v6639_v17 = vadd.f32 %v6600_v3, %v6440_v11  ;;  %v2801_v36 = vpop.f32.mrb[27].mxu1 }
 0x246   : > { %6059 = vst [vmem:[%s9027_s8 + $0x50] sm:$0xff] %v6023_v2   ;;  %v5028_v20 = vadd.f32 %v6638_v5, %v9018_v19  ;;  %v6640_v51 = vadd.f32 %v4937_v42, %v2801_v36 }
 0x247   : > { %v5031_v40 = vadd.f32 %v6639_v17, %v9018_v19  ;;  %v5062_v47 = vmax.f32 %v5030_v54, 0.0 }
 0x248   : > { %v5029_v27 = vadd.f32 %v6640_v51, %v9018_v19  ;;  %v5060_v55 = vmax.f32 %v5028_v20, 0.0 }
 0x249   : > { %v5063_v63 = vmax.f32 %v5031_v40, 0.0  ;;  %v6603_v16 = vpop.f32.mrb[28].mxu0 }
 0x24a   : > { %v5061_v13 = vmax.f32 %v5029_v27, 0.0  ;;  %v6443_v61 = vpop.f32.mrb[28].mxu1  ;;  %v4950_v30 = vpop.f32.mrb[29].mxu0 }
 0x24b   : > { %v6038_v44 = vpack.c.bf16 %v5063_v63, %v5062_v47  ;;  %v6641_v58 = vadd.f32 %v6603_v16, %v6443_v61  ;;  %v2814_v60 = vpop.f32.mrb[29].mxu1  ;;  %v6604_v35 = vpop.f32.mrb[30].mxu0 }
 0x24c   : > { %v6033_v34 = vpack.c.bf16 %v5061_v13, %v5060_v55  ;;  %v6642_v48 = vadd.f32 %v4950_v30, %v2814_v60  ;;  %v6444_v28 = vpop.f32.mrb[30].mxu1  ;;  %v4953_v52 = vpop.f32.mrb[31].mxu0 }
 0x24d   : > { %6062 = vst [vmem:[%s9027_s8 + $0x68] sm:$0xff] %v6038_v44   ;;  %v5034_v0 = vadd.f32 %v6641_v58, %v9018_v19  ;;  %v6643_v39 = vadd.f32 %v6604_v35, %v6444_v28  ;;  %v2817_v41 = vpop.f32.mrb[31].mxu1 }
 0x24e   : > { %6061 = vst [vmem:[%s9027_s8 + $0x60] sm:$0xff] %v6033_v34   ;;  %v5032_v1 = vadd.f32 %v6642_v48, %v9018_v19  ;;  %v6644_v31 = vadd.f32 %v4953_v52, %v2817_v41 }
 0x24f   : > { %v5035_v45 = vadd.f32 %v6643_v39, %v9018_v19  ;;  %v5066_v25 = vmax.f32 %v5034_v0, 0.0 }
 0x250   : > { %v5033_v56 = vadd.f32 %v6644_v31, %v9018_v19  ;;  %v5064_v8 = vmax.f32 %v5032_v1, 0.0 }
 0x251   : > { %v5067_v18 = vmax.f32 %v5035_v45, 0.0 }
 0x252   : > { %v5065_v62 = vmax.f32 %v5033_v56, 0.0 }
 0x253   : > { %v6048_v43 = vpack.c.bf16 %v5067_v18, %v5066_v25 }
 0x254   : > { %v6043_v4 = vpack.c.bf16 %v5065_v62, %v5064_v8 }
 0x255   : > { %6064 = vst [vmem:[%s9027_s8 + $0x78] sm:$0xff] %v6048_v43  }
 0x256   : > { %6063 = vst [vmem:[%s9027_s8 + $0x70] sm:$0xff] %v6043_v4  }
 0x257   : > { %7090 = shalt.err (!%p7087_p5)
}
 0x258   : > { %s7091_s29 = scalar_lea.hbm %s9080_s19, 2048  ;;  %s7095_s27 = scalar_lea.hbm %s9137_s3, 4096 }
 0x259   : > { %p7092_p6 = scmp.ne.s32.totalorder %s9080_s19, %s7091_s29  ;;  %p7096_p10 = scmp.lt.u32.totalorder %s9080_s19, %s9137_s3 }
 0x25a   : > { %p7097_p11 = scmp.lt.u32.totalorder %s7095_s27, %s7091_s29  ;;  %p7099_p13 = scmp.lt.u32.totalorder %s7091_s29, %s9080_s19 }
 0x25b   : > { %p7093_p7 = pnand %p7092_p6, %p7220_p4 }
 0x25c   : > { %p7098_p12 = por %p7097_p11, %p7096_p10 }
 0x25d   : > { %p7094_p9 = pneg %p7093_p7 }
 0x25e   : > { %p7100_p0 = por %p7099_p13, %p7098_p12 }
 0x260   : > { %p7101_p1 = pnand %p7100_p0, %p7094_p9 }
 0x262   : > { %7104 = shalt.err (!%p7101_p1)
}
 0x263   : > { %s7158_s7 = smov 64   ;;  %s7159_s8 = smov 4  }
 0x264   : > { %6870 = dma.vmem_to_hbm [thread:$0]  (%p7220_p4), %s9082_s10, 2048, %s9080_s19, %s9088_s15, %s7158_s7, %s7158_s7, %s7159_s8  }
 0x265 PF: > { %p6876_p2 = scmp.ge.s32.totalorder %s7155_s17, 2  ;;  %s5260_s9 = sand.u32 1, %s7135_s12  }
 0x266   : > { %s5261_s11 = scalar_lea.sflag [#allocation3], %s5260_s9 }
 0x267   : > { %p6873_p3 = pnand %p6876_p2, %p7227_p8 }
 0x269   : > { %7130 = dma.done.wait (!%p6873_p3), %s5261_s11, 2048  }
 0x26a   : > { %7132 = vsyncadd (!%p6873_p3), %s5261_s11, 4294965248  ;;  %s16_s17 = sadd.s32 1, %s7155_s17   ;;  %s9202_s12 = smov %s7139_s13 }
 0x26b   : > { %p13_p5 = scmp.ge.s32.totalorder %s16_s17, 4   ;;  %s9203_s13 = smov %s7143_s14 }
 0x26c   : > { %s9204_s14 = smov %s7233_s25  ;;  %s9205_s15 = smov %s7151_s16 }
 0x26d   : > { %s9206_s16 = smov %s9208_s20  ;;  %15 = sbr.rel (!%p13_p5) target bundleno = 4 (0x4), region = 70 }
 0x274   :  { %5266 = vsyncpa [#allocation3], 1 }
 0x275   :  { %5268 = vsyncpa [#allocation3 + $0x1], 1 }

</bundles_post_ra>
